<compile_context>
chip_gen: v7x
topology: tpu7x:2x2x1
jax: 0.10.0
libtpu: 0.0.40
codegen_flags: <defaults>
</compile_context>

<pallas_src>
import numpy as np

import jax
import jax.numpy as jnp
from jax.experimental import pallas as pl
from jax.experimental.pallas import tpu as pltpu


_HW = 64      # 8x8 coarse cells; every layer works on this fixed row grid
_GW = 8       # coarse grid width


# ----------------------------------------------------------------------------
# In-kernel helpers
# ----------------------------------------------------------------------------
def _taps_cat(x, pad_ref):
    """x: (64, K) f32 value on the 8x8 cell grid (raster or phase-blocked
    lanes).  Returns (64, 4K) bf16 = [x | x(c+1) | x(r+1) | x(r+1,c+1)] with
    zeros outside the 8x8 grid.  pad_ref: (80, K) f32 scratch whose tail rows
    are zeroed here so the +1/+8/+9 row-shift loads never read garbage."""
    K = x.shape[1]
    pad_ref[pl.ds(_HW, 16), :] = jnp.zeros((16, K), jnp.float32)
    pad_ref[pl.ds(0, _HW), :] = x

    col = jax.lax.broadcasted_iota(jnp.int32, (_HW, 1), 0) % _GW
    keep = col != (_GW - 1)                      # False on the last column

    bf = jnp.bfloat16
    x01 = jnp.where(keep, pad_ref[pl.ds(1, _HW), :], 0.0).astype(bf)      # c+1
    x10 = pad_ref[pl.ds(_GW, _HW), :].astype(bf)                          # r+1
    x11 = jnp.where(keep, pad_ref[pl.ds(_GW + 1, _HW), :], 0.0).astype(bf)
    return jnp.concatenate([x.astype(bf), x01, x10, x11], axis=1)


def _decoder_kernel(x_ref, w1_ref, b1_ref, w2_ref, b2_ref, w3_ref, b3_ref,
                    o_ref, pad1, pad2, pad3):
    x0 = x_ref[0]                                             # (64, 128) f32
    # layer 1: 8x8x128 -> 16x16x64 (phase-blocked lanes), ReLU
    h1 = jnp.dot(_taps_cat(x0, pad1), w1_ref[...],
                 preferred_element_type=jnp.float32) + b1_ref[...]
    x1 = jnp.maximum(h1, 0.0)                                 # (64, 256)
    # layer 2: 16x16x64 -> 32x32x32 (phase-blocked lanes), ReLU
    h2 = jnp.dot(_taps_cat(x1, pad2), w2_ref[...],
                 preferred_element_type=jnp.float32) + b2_ref[...]
    x2 = jnp.maximum(h2, 0.0)                                 # (64, 512)
    # layer 3: 32x32x32 -> 64x64xnc (phase-blocked lanes), Tanh
    h3 = jnp.dot(_taps_cat(x2, pad3), w3_ref[...],
                 preferred_element_type=jnp.float32) + b3_ref[...]
    o_ref[0] = jnp.tanh(h3).astype(o_ref.dtype)               # (64, 64*nc)


# ----------------------------------------------------------------------------
# pallas_call wrapper
# ----------------------------------------------------------------------------
def _conv_stack(x0, w1, b1, w2, b2, w3, b3):
    N = x0.shape[0]
    n3 = w3.shape[1]                       # 64 * n_channel
    return pl.pallas_call(
        _decoder_kernel,
        out_shape=jax.ShapeDtypeStruct((N, 64, n3), jnp.float32),
        grid=(N,),
        in_specs=[
            pl.BlockSpec((1, 64, 128), lambda n: (n, 0, 0)),
            pl.BlockSpec((512, 256), lambda n: (0, 0)),
            pl.BlockSpec((1, 256), lambda n: (0, 0)),
            pl.BlockSpec((1024, 512), lambda n: (0, 0)),
            pl.BlockSpec((1, 512), lambda n: (0, 0)),
            pl.BlockSpec((2048, n3), lambda n: (0, 0)),
            pl.BlockSpec((1, n3), lambda n: (0, 0)),
        ],
        out_specs=pl.BlockSpec((1, 64, n3), lambda n: (n, 0, 0)),
        scratch_shapes=[
            pltpu.VMEM((80, 128), jnp.float32),     # layer 1 shift scratch
            pltpu.VMEM((80, 256), jnp.float32),     # layer 2
            pltpu.VMEM((80, 512), jnp.float32),     # layer 3
        ],
        compiler_params=pltpu.CompilerParams(
            dimension_semantics=("parallel",)),
    )(x0, w1, b1, w2, b2, w3, b3)


# ----------------------------------------------------------------------------
# One-time parameter preparation (hoisted out of the forward pass)
# ----------------------------------------------------------------------------
def _kidx(a, b, di, dj):
    """Kernel index (kh, kw) of the tap (di, dj) contributing to output phase
    (a, b) of ConvTranspose2d(3, stride 2, pad 1, out_pad 1); None if none."""
    kh, kw = a + 1 - 2 * di, b + 1 - 2 * dj
    if 0 <= kh < 3 and 0 <= kw < 3:
        return kh, kw
    return None


def _build_w1(w_pt):
    """torch (128, 64, 3, 3) -> (512, 256): K = tap-block x 128ch,
    N = output-phase-block x 64ch."""
    cin, cout = w_pt.shape[0], w_pt.shape[1]
    W = np.zeros((4 * cin, 4 * cout), np.float32)
    for di in range(2):
        for dj in range(2):
            t = 2 * di + dj
            for a in range(2):
                for b in range(2):
                    k = _kidx(a, b, di, dj)
                    if k is None:
                        continue
                    p = 2 * a + b
                    W[t * cin:(t + 1) * cin,
                      p * cout:(p + 1) * cout] = w_pt[:, :, k[0], k[1]]
    return W


def _build_w2(w_pt):
    """torch (64, 32, 3, 3) -> (1024, 512).
    K = cell-shift s (4) x input-phase q (4) x 64ch.
    N = input-subpos m (4)  x output-phase p' (4) x 32ch."""
    cin, cout = w_pt.shape[0], w_pt.shape[1]
    W = np.zeros((16 * cin, 16 * cout), np.float32)
    for ao in range(2):
        for bo in range(2):
            m = 2 * ao + bo
            for ap in range(2):
                for bp in range(2):
                    col0 = (m * 4 + 2 * ap + bp) * cout
                    for di in range(2):
                        for dj in range(2):
                            k = _kidx(ap, bp, di, dj)
                            if k is None:
                                continue
                            ar, bc = ao + di, bo + dj
                            s = 2 * (ar >> 1) + (bc >> 1)
                            q = 2 * (ar & 1) + (bc & 1)
                            row0 = (s * 4 + q) * cin
                            W[row0:row0 + cin,
                              col0:col0 + cout] = w_pt[:, :, k[0], k[1]]
    return W


def _build_w3(w_pt):
    """torch (32, nc, 3, 3) -> (2048, 64*nc).
    K = cell-shift s (4) x subpos m (4) x phase q (4) x 32ch.
    N = input-subpos (u,v) (16) x output-phase p'' (4) x nc."""
    cin, cout = w_pt.shape[0], w_pt.shape[1]
    W = np.zeros((64 * cin, 64 * cout), np.float32)
    for u in range(4):
        for v in range(4):
            for a in range(2):
                for b in range(2):
                    col0 = ((4 * u + v) * 4 + 2 * a + b) * cout
                    for di in range(2):
                        for dj in range(2):
                            k = _kidx(a, b, di, dj)
                            if k is None:
                                continue
                            ut, vt = u + di, v + dj
                            s = 2 * (ut >> 2) + (vt >> 2)
                            ut, vt = ut & 3, vt & 3
                            m = 2 * (ut >> 1) + (vt >> 1)
                            q = 2 * (ut & 1) + (vt & 1)
                            row0 = ((s * 4 + m) * 4 + q) * cin
                            W[row0:row0 + cin,
                              col0:col0 + cout] = w_pt[:, :, k[0], k[1]]
    return W


def init_decoder_params(key, latent_dim, n_channel):
    """Parameters in torch-equivalent layouts."""
    ks = jax.random.split(key, 8)
    s = 0.05
    return {
        "fc_w": s * jax.random.normal(ks[0], (latent_dim, 128 * 8 * 8), jnp.float32),
        "fc_b": s * jax.random.normal(ks[1], (128 * 8 * 8,), jnp.float32),
        "ct1_w": s * jax.random.normal(ks[2], (128, 64, 3, 3), jnp.float32),
        "ct1_b": s * jax.random.normal(ks[3], (64,), jnp.float32),
        "ct2_w": s * jax.random.normal(ks[4], (64, 32, 3, 3), jnp.float32),
        "ct2_b": s * jax.random.normal(ks[5], (32,), jnp.float32),
        "ct3_w": s * jax.random.normal(ks[6], (32, n_channel, 3, 3), jnp.float32),
        "ct3_b": s * jax.random.normal(ks[7], (n_channel,), jnp.float32),
    }


def prepare_decoder_params(params):
    """One-time transforms: fc column permutation (NCHW view -> cell-major),
    blocked bf16 conv weights, tiled biases."""
    ld = params["fc_w"].shape[0]
    nc = params["ct3_w"].shape[1]
    fc_w = (params["fc_w"].reshape(ld, 128, 8, 8)
            .transpose(0, 2, 3, 1).reshape(ld, 8192))
    fc_b = (params["fc_b"].reshape(128, 8, 8)
            .transpose(1, 2, 0).reshape(8192))
    w1 = jnp.asarray(_build_w1(np.asarray(params["ct1_w"])), jnp.bfloat16)
    w2 = jnp.asarray(_build_w2(np.asarray(params["ct2_w"])), jnp.bfloat16)
    w3 = jnp.asarray(_build_w3(np.asarray(params["ct3_w"])), jnp.bfloat16)
    return {
        "fc_w": fc_w, "fc_b": fc_b,
        "w1": w1, "b1": jnp.tile(params["ct1_b"], 4).reshape(1, 256),
        "w2": w2, "b2": jnp.tile(params["ct2_b"], 16).reshape(1, 512),
        "w3": w3, "b3": jnp.tile(params["ct3_b"], 64).reshape(1, 64 * nc),
    }


# ----------------------------------------------------------------------------
# Decoder forward
# ----------------------------------------------------------------------------
@jax.jit
def decoder_forward(z, prep):
    """z: (N, latent_dim) -> (N, n_channel, 64, 64)  (NCHW, like torch)."""
    N = z.shape[0]
    nc = prep["b3"].shape[1] // 64
    # fc + ReLU: tiny matmul, plain XLA; columns already in cell-major order.
    a = jnp.maximum(jnp.dot(z, prep["fc_w"]) + prep["fc_b"], 0.0)
    x0 = a.reshape(N, 64, 128)                       # (n, cell, ch) f32
    o = _conv_stack(x0, prep["w1"], prep["b1"], prep["w2"], prep["b2"],
                    prep["w3"], prep["b3"])          # (N, 64, 64*nc)
    # un-block: lane = (4u+v)*4*nc + (2a+b)*nc + ch ; row = 8r+c
    o = o.reshape(N, 8, 8, 4, 4, 2, 2, nc)           # [n, r, c, u, v, a, b, ch]
    o = o.transpose(0, 7, 1, 3, 5, 2, 4, 6)          # [n, ch, r, u, a, c, v, b]
    return o.reshape(N, nc, 64, 64)


# ----------------------------------------------------------------------------
# Pure-JAX reference (zero-insert + flipped-kernel dense conv; validated form)
# ----------------------------------------------------------------------------
def _ref_conv_transpose(x_nhwc, w_pt, b):
    N, H, W, Cin = x_nhwc.shape
    Cout = w_pt.shape[1]
    wc = jnp.flip(w_pt, axis=(2, 3)).transpose(2, 3, 0, 1)     # (3,3,Cin,Cout)
    up = jnp.zeros((N, 2 * H - 1, 2 * W - 1, Cin), x_nhwc.dtype)
    up = up.at[:, ::2, ::2, :].set(x_nhwc)
    xp = jnp.pad(up, ((0, 0), (1, 2), (1, 2), (0, 0)))
    acc = jnp.zeros((N, 2 * H, 2 * W, Cout), jnp.float32)
    for di in range(3):
        for dj in range(3):
            acc = acc + jnp.einsum(
                "nhwc,cd->nhwd",
                xp[:, di:di + 2 * H, dj:dj + 2 * W, :], wc[di, dj])
    return acc + b.reshape(1, 1, 1, Cout)


@jax.jit
def decoder_forward_ref(z, params):
    N = z.shape[0]
    x = jnp.maximum(jnp.dot(z, params["fc_w"]) + params["fc_b"], 0.0)
    x = x.reshape(N, 128, 8, 8).transpose(0, 2, 3, 1)
    x = jnp.maximum(_ref_conv_transpose(x, params["ct1_w"], params["ct1_b"]), 0.0)
    x = jnp.maximum(_ref_conv_transpose(x, params["ct2_w"], params["ct2_b"]), 0.0)
    x = jnp.tanh(_ref_conv_transpose(x, params["ct3_w"], params["ct3_b"]))
    return x.transpose(0, 3, 1, 2)


if __name__ == "__main__":
    latent_dim, n_channel, batch = 32, 4, 2
    key = jax.random.PRNGKey(0)
    kz, kp = jax.random.split(key)
    z = jax.random.normal(kz, (batch, latent_dim), jnp.float32)

    params = init_decoder_params(kp, latent_dim, n_channel)
    prep = prepare_decoder_params(params)

    out = jax.block_until_ready(decoder_forward(z, prep))
    assert out.shape == (batch, n_channel, 64, 64), out.shape
    assert bool(jnp.all(jnp.isfinite(out)))

    # numerical check vs pure-JAX reference (bf16 MXU operands -> loose tol)
    ref = jax.block_until_ready(decoder_forward_ref(z, params))
    err = float(jnp.max(jnp.abs(out - ref)))
    assert err < 6e-2, err

    print("KERNEL_OK")
</pallas_src>

<mosaic_0001>
module attributes {stable_mosaic.version = 11 : i64} {
  func.func @_decoder_kernel(%arg0: i32, %arg1: memref<1x64x128xf32, #tpu.memory_space<vmem>>, %arg2: memref<512x256xbf16, #tpu.memory_space<vmem>>, %arg3: memref<1x256xf32, #tpu.memory_space<vmem>>, %arg4: memref<1024x512xbf16, #tpu.memory_space<vmem>>, %arg5: memref<1x512xf32, #tpu.memory_space<vmem>>, %arg6: memref<2048x256xbf16, #tpu.memory_space<vmem>>, %arg7: memref<1x256xf32, #tpu.memory_space<vmem>>, %arg8: memref<1x64x256xf32, #tpu.memory_space<vmem>>, %arg9: memref<80x128xf32, #tpu.memory_space<vmem>>, %arg10: memref<80x256xf32, #tpu.memory_space<vmem>>, %arg11: memref<80x512xf32, #tpu.memory_space<vmem>>) attributes {dimension_semantics = [#tpu.dimension_semantics<parallel>], iteration_bounds = array<i64: 2>, scalar_prefetch = 0 : i64, scratch_operands = 3 : i64, tpu.core_type = #tpu.core_type<tc>, window_params = [{transform_indices = @transform_0, window_bounds = array<i64: 1, 64, 128>}, {pipeline_mode = #tpu.pipeline_mode<synchronous>, transform_indices = @transform_1, window_bounds = array<i64: 512, 256>}, {pipeline_mode = #tpu.pipeline_mode<synchronous>, transform_indices = @transform_2, window_bounds = array<i64: 1, 256>}, {pipeline_mode = #tpu.pipeline_mode<synchronous>, transform_indices = @transform_3, window_bounds = array<i64: 1024, 512>}, {pipeline_mode = #tpu.pipeline_mode<synchronous>, transform_indices = @transform_4, window_bounds = array<i64: 1, 512>}, {pipeline_mode = #tpu.pipeline_mode<synchronous>, transform_indices = @transform_5, window_bounds = array<i64: 2048, 256>}, {pipeline_mode = #tpu.pipeline_mode<synchronous>, transform_indices = @transform_6, window_bounds = array<i64: 1, 256>}, {transform_indices = @transform_7, window_bounds = array<i64: 1, 64, 256>}]} {
    %c0 = arith.constant 0 : index
    %c0_0 = arith.constant 0 : index
    %c0_1 = arith.constant 0 : index
    %0 = vector.load %arg1[%c0, %c0_0, %c0_1] : memref<1x64x128xf32, #tpu.memory_space<vmem>>, vector<1x64x128xf32>
    %1 = vector.shape_cast %0 : vector<1x64x128xf32> to vector<64x128xf32>
    %cst = arith.constant 0.000000e+00 : f32
    %2 = vector.broadcast %cst : f32 to vector<16x128xf32>
    %c64 = arith.constant 64 : index
    %c0_2 = arith.constant 0 : index
    %3 = vector.load %arg9[%c64, %c0_2] : memref<80x128xf32, #tpu.memory_space<vmem>>, vector<16x128xf32>
    tpu.vector_store %arg9[%c64, %c0_2], %2 {strides = array<i32>} : memref<80x128xf32, #tpu.memory_space<vmem>>, vector<16x128xf32>,
    %c0_3 = arith.constant 0 : index
    %c0_4 = arith.constant 0 : index
    %4 = vector.load %arg9[%c0_3, %c0_4] : memref<80x128xf32, #tpu.memory_space<vmem>>, vector<64x128xf32>
    tpu.vector_store %arg9[%c0_3, %c0_4], %1 {strides = array<i32>} : memref<80x128xf32, #tpu.memory_space<vmem>>, vector<64x128xf32>,
    %5 = tpu.iota {dimensions = array<i32: 0>} : vector<64x1xi32>
    %c8_i32 = arith.constant 8 : i32
    %c0_i32 = arith.constant 0 : i32
    %6 = arith.cmpi eq, %c8_i32, %c0_i32 : i32
    %c1_i32 = arith.constant 1 : i32
    %7 = arith.select %6, %c1_i32, %c8_i32 : i32
    %8 = vector.broadcast %7 : i32 to vector<64x1xi32>
    %9 = arith.remsi %5, %8 : vector<64x1xi32>
    %c0_i32_5 = arith.constant 0 : i32
    %10 = vector.broadcast %c0_i32_5 : i32 to vector<64x1xi32>
    %11 = arith.cmpi ne, %9, %10 : vector<64x1xi32>
    %c0_i32_6 = arith.constant 0 : i32
    %12 = vector.broadcast %c0_i32_6 : i32 to vector<64x1xi32>
    %13 = arith.cmpi slt, %9, %12 : vector<64x1xi32>
    %c0_i32_7 = arith.constant 0 : i32
    %14 = arith.cmpi slt, %7, %c0_i32_7 : i32
    %15 = vector.broadcast %14 : i1 to vector<64x1xi1>
    %16 = vector.broadcast %15 : vector<64x1xi1> to vector<64x1xi1>
    %17 = arith.xori %13, %16 : vector<64x1xi1>
    %18 = arith.andi %17, %11 : vector<64x1xi1>
    %19 = vector.broadcast %7 : i32 to vector<64x1xi32>
    %20 = arith.addi %9, %19 : vector<64x1xi32>
    %21 = arith.select %18, %20, %9 : vector<64x1xi1>, vector<64x1xi32>
    %c7_i32 = arith.constant 7 : i32
    %22 = vector.broadcast %c7_i32 : i32 to vector<64x1xi32>
    %23 = arith.cmpi ne, %21, %22 : vector<64x1xi32>
    %c1 = arith.constant 1 : index
    %c0_8 = arith.constant 0 : index
    %24 = vector.load %arg9[%c1, %c0_8] : memref<80x128xf32, #tpu.memory_space<vmem>>, vector<64x128xf32>
    %cst_9 = arith.constant 0.000000e+00 : f32
    %25 = vector.shape_cast %23 : vector<64x1xi1> to vector<64x1xi1>
    %26 = vector.broadcast %25 : vector<64x1xi1> to vector<64x128xi1>
    %27 = vector.broadcast %cst_9 : f32 to vector<64x128xf32>
    %28 = arith.select %26, %24, %27 : vector<64x128xi1>, vector<64x128xf32>
    %29 = arith.truncf %28 : vector<64x128xf32> to vector<64x128xbf16>
    %c8 = arith.constant 8 : index
    %c0_10 = arith.constant 0 : index
    %30 = vector.load %arg9[%c8, %c0_10] : memref<80x128xf32, #tpu.memory_space<vmem>>, vector<64x128xf32>
    %31 = arith.truncf %30 : vector<64x128xf32> to vector<64x128xbf16>
    %c9 = arith.constant 9 : index
    %c0_11 = arith.constant 0 : index
    %32 = vector.load %arg9[%c9, %c0_11] : memref<80x128xf32, #tpu.memory_space<vmem>>, vector<64x128xf32>
    %cst_12 = arith.constant 0.000000e+00 : f32
    %33 = vector.shape_cast %23 : vector<64x1xi1> to vector<64x1xi1>
    %34 = vector.broadcast %33 : vector<64x1xi1> to vector<64x128xi1>
    %35 = vector.broadcast %cst_12 : f32 to vector<64x128xf32>
    %36 = arith.select %34, %32, %35 : vector<64x128xi1>, vector<64x128xf32>
    %37 = arith.truncf %36 : vector<64x128xf32> to vector<64x128xbf16>
    %38 = arith.truncf %1 : vector<64x128xf32> to vector<64x128xbf16>
    %39 = tpu.concatenate %38, %29, %31, %37 in 1 : vector<64x128xbf16>, vector<64x128xbf16>, vector<64x128xbf16>, vector<64x128xbf16> -> vector<64x512xbf16>
    %c0_13 = arith.constant 0 : index
    %c0_14 = arith.constant 0 : index
    %40 = vector.load %arg2[%c0_13, %c0_14] : memref<512x256xbf16, #tpu.memory_space<vmem>>, vector<512x256xbf16>
    %cst_15 = arith.constant dense<0.000000e+00> : vector<64x256xf32>
    %41 = tpu.matmul %39, %40, %cst_15 {dimension_numbers = #tpu.dot_dimension_numbers<[1], [0], [0], [1], [0, 0, 1, 1], [], []>} : vector<64x512xbf16>, vector<512x256xbf16>, vector<64x256xf32> -> vector<64x256xf32>
    %c0_16 = arith.constant 0 : index
    %c0_17 = arith.constant 0 : index
    %42 = vector.load %arg3[%c0_16, %c0_17] : memref<1x256xf32, #tpu.memory_space<vmem>>, vector<1x256xf32>
    %43 = vector.broadcast %42 : vector<1x256xf32> to vector<64x256xf32>
    %44 = arith.addf %41, %43 : vector<64x256xf32>
    %cst_18 = arith.constant 0.000000e+00 : f32
    %45 = vector.broadcast %cst_18 : f32 to vector<64x256xf32>
    %46 = arith.maximumf %44, %45 : vector<64x256xf32>
    %cst_19 = arith.constant 0.000000e+00 : f32
    %47 = vector.broadcast %cst_19 : f32 to vector<16x256xf32>
    %c64_20 = arith.constant 64 : index
    %c0_21 = arith.constant 0 : index
    %48 = vector.load %arg10[%c64_20, %c0_21] : memref<80x256xf32, #tpu.memory_space<vmem>>, vector<16x256xf32>
    tpu.vector_store %arg10[%c64_20, %c0_21], %47 {strides = array<i32>} : memref<80x256xf32, #tpu.memory_space<vmem>>, vector<16x256xf32>,
    %c0_22 = arith.constant 0 : index
    %c0_23 = arith.constant 0 : index
    %49 = vector.load %arg10[%c0_22, %c0_23] : memref<80x256xf32, #tpu.memory_space<vmem>>, vector<64x256xf32>
    tpu.vector_store %arg10[%c0_22, %c0_23], %46 {strides = array<i32>} : memref<80x256xf32, #tpu.memory_space<vmem>>, vector<64x256xf32>,
    %50 = tpu.iota {dimensions = array<i32: 0>} : vector<64x1xi32>
    %c8_i32_24 = arith.constant 8 : i32
    %c0_i32_25 = arith.constant 0 : i32
    %51 = arith.cmpi eq, %c8_i32_24, %c0_i32_25 : i32
    %c1_i32_26 = arith.constant 1 : i32
    %52 = arith.select %51, %c1_i32_26, %c8_i32_24 : i32
    %53 = vector.broadcast %52 : i32 to vector<64x1xi32>
    %54 = arith.remsi %50, %53 : vector<64x1xi32>
    %c0_i32_27 = arith.constant 0 : i32
    %55 = vector.broadcast %c0_i32_27 : i32 to vector<64x1xi32>
    %56 = arith.cmpi ne, %54, %55 : vector<64x1xi32>
    %c0_i32_28 = arith.constant 0 : i32
    %57 = vector.broadcast %c0_i32_28 : i32 to vector<64x1xi32>
    %58 = arith.cmpi slt, %54, %57 : vector<64x1xi32>
    %c0_i32_29 = arith.constant 0 : i32
    %59 = arith.cmpi slt, %52, %c0_i32_29 : i32
    %60 = vector.broadcast %59 : i1 to vector<64x1xi1>
    %61 = vector.broadcast %60 : vector<64x1xi1> to vector<64x1xi1>
    %62 = arith.xori %58, %61 : vector<64x1xi1>
    %63 = arith.andi %62, %56 : vector<64x1xi1>
    %64 = vector.broadcast %52 : i32 to vector<64x1xi32>
    %65 = arith.addi %54, %64 : vector<64x1xi32>
    %66 = arith.select %63, %65, %54 : vector<64x1xi1>, vector<64x1xi32>
    %c7_i32_30 = arith.constant 7 : i32
    %67 = vector.broadcast %c7_i32_30 : i32 to vector<64x1xi32>
    %68 = arith.cmpi ne, %66, %67 : vector<64x1xi32>
    %c1_31 = arith.constant 1 : index
    %c0_32 = arith.constant 0 : index
    %69 = vector.load %arg10[%c1_31, %c0_32] : memref<80x256xf32, #tpu.memory_space<vmem>>, vector<64x256xf32>
    %cst_33 = arith.constant 0.000000e+00 : f32
    %70 = vector.shape_cast %68 : vector<64x1xi1> to vector<64x1xi1>
    %71 = vector.broadcast %70 : vector<64x1xi1> to vector<64x256xi1>
    %72 = vector.broadcast %cst_33 : f32 to vector<64x256xf32>
    %73 = arith.select %71, %69, %72 : vector<64x256xi1>, vector<64x256xf32>
    %74 = arith.truncf %73 : vector<64x256xf32> to vector<64x256xbf16>
    %c8_34 = arith.constant 8 : index
    %c0_35 = arith.constant 0 : index
    %75 = vector.load %arg10[%c8_34, %c0_35] : memref<80x256xf32, #tpu.memory_space<vmem>>, vector<64x256xf32>
    %76 = arith.truncf %75 : vector<64x256xf32> to vector<64x256xbf16>
    %c9_36 = arith.constant 9 : index
    %c0_37 = arith.constant 0 : index
    %77 = vector.load %arg10[%c9_36, %c0_37] : memref<80x256xf32, #tpu.memory_space<vmem>>, vector<64x256xf32>
    %cst_38 = arith.constant 0.000000e+00 : f32
    %78 = vector.shape_cast %68 : vector<64x1xi1> to vector<64x1xi1>
    %79 = vector.broadcast %78 : vector<64x1xi1> to vector<64x256xi1>
    %80 = vector.broadcast %cst_38 : f32 to vector<64x256xf32>
    %81 = arith.select %79, %77, %80 : vector<64x256xi1>, vector<64x256xf32>
    %82 = arith.truncf %81 : vector<64x256xf32> to vector<64x256xbf16>
    %83 = arith.truncf %46 : vector<64x256xf32> to vector<64x256xbf16>
    %84 = tpu.concatenate %83, %74, %76, %82 in 1 : vector<64x256xbf16>, vector<64x256xbf16>, vector<64x256xbf16>, vector<64x256xbf16> -> vector<64x1024xbf16>
    %c0_39 = arith.constant 0 : index
    %c0_40 = arith.constant 0 : index
    %85 = vector.load %arg4[%c0_39, %c0_40] : memref<1024x512xbf16, #tpu.memory_space<vmem>>, vector<1024x512xbf16>
    %cst_41 = arith.constant dense<0.000000e+00> : vector<64x512xf32>
    %86 = tpu.matmul %84, %85, %cst_41 {dimension_numbers = #tpu.dot_dimension_numbers<[1], [0], [0], [1], [0, 0, 1, 1], [], []>} : vector<64x1024xbf16>, vector<1024x512xbf16>, vector<64x512xf32> -> vector<64x512xf32>
    %c0_42 = arith.constant 0 : index
    %c0_43 = arith.constant 0 : index
    %87 = vector.load %arg5[%c0_42, %c0_43] : memref<1x512xf32, #tpu.memory_space<vmem>>, vector<1x512xf32>
    %88 = vector.broadcast %87 : vector<1x512xf32> to vector<64x512xf32>
    %89 = arith.addf %86, %88 : vector<64x512xf32>
    %cst_44 = arith.constant 0.000000e+00 : f32
    %90 = vector.broadcast %cst_44 : f32 to vector<64x512xf32>
    %91 = arith.maximumf %89, %90 : vector<64x512xf32>
    %cst_45 = arith.constant 0.000000e+00 : f32
    %92 = vector.broadcast %cst_45 : f32 to vector<16x512xf32>
    %c64_46 = arith.constant 64 : index
    %c0_47 = arith.constant 0 : index
    %93 = vector.load %arg11[%c64_46, %c0_47] : memref<80x512xf32, #tpu.memory_space<vmem>>, vector<16x512xf32>
    tpu.vector_store %arg11[%c64_46, %c0_47], %92 {strides = array<i32>} : memref<80x512xf32, #tpu.memory_space<vmem>>, vector<16x512xf32>,
    %c0_48 = arith.constant 0 : index
    %c0_49 = arith.constant 0 : index
    %94 = vector.load %arg11[%c0_48, %c0_49] : memref<80x512xf32, #tpu.memory_space<vmem>>, vector<64x512xf32>
    tpu.vector_store %arg11[%c0_48, %c0_49], %91 {strides = array<i32>} : memref<80x512xf32, #tpu.memory_space<vmem>>, vector<64x512xf32>,
    %95 = tpu.iota {dimensions = array<i32: 0>} : vector<64x1xi32>
    %c8_i32_50 = arith.constant 8 : i32
    %c0_i32_51 = arith.constant 0 : i32
    %96 = arith.cmpi eq, %c8_i32_50, %c0_i32_51 : i32
    %c1_i32_52 = arith.constant 1 : i32
    %97 = arith.select %96, %c1_i32_52, %c8_i32_50 : i32
    %98 = vector.broadcast %97 : i32 to vector<64x1xi32>
    %99 = arith.remsi %95, %98 : vector<64x1xi32>
    %c0_i32_53 = arith.constant 0 : i32
    %100 = vector.broadcast %c0_i32_53 : i32 to vector<64x1xi32>
    %101 = arith.cmpi ne, %99, %100 : vector<64x1xi32>
    %c0_i32_54 = arith.constant 0 : i32
    %102 = vector.broadcast %c0_i32_54 : i32 to vector<64x1xi32>
    %103 = arith.cmpi slt, %99, %102 : vector<64x1xi32>
    %c0_i32_55 = arith.constant 0 : i32
    %104 = arith.cmpi slt, %97, %c0_i32_55 : i32
    %105 = vector.broadcast %104 : i1 to vector<64x1xi1>
    %106 = vector.broadcast %105 : vector<64x1xi1> to vector<64x1xi1>
    %107 = arith.xori %103, %106 : vector<64x1xi1>
    %108 = arith.andi %107, %101 : vector<64x1xi1>
    %109 = vector.broadcast %97 : i32 to vector<64x1xi32>
    %110 = arith.addi %99, %109 : vector<64x1xi32>
    %111 = arith.select %108, %110, %99 : vector<64x1xi1>, vector<64x1xi32>
    %c7_i32_56 = arith.constant 7 : i32
    %112 = vector.broadcast %c7_i32_56 : i32 to vector<64x1xi32>
    %113 = arith.cmpi ne, %111, %112 : vector<64x1xi32>
    %c1_57 = arith.constant 1 : index
    %c0_58 = arith.constant 0 : index
    %114 = vector.load %arg11[%c1_57, %c0_58] : memref<80x512xf32, #tpu.memory_space<vmem>>, vector<64x512xf32>
    %cst_59 = arith.constant 0.000000e+00 : f32
    %115 = vector.shape_cast %113 : vector<64x1xi1> to vector<64x1xi1>
    %116 = vector.broadcast %115 : vector<64x1xi1> to vector<64x512xi1>
    %117 = vector.broadcast %cst_59 : f32 to vector<64x512xf32>
    %118 = arith.select %116, %114, %117 : vector<64x512xi1>, vector<64x512xf32>
    %119 = arith.truncf %118 : vector<64x512xf32> to vector<64x512xbf16>
    %c8_60 = arith.constant 8 : index
    %c0_61 = arith.constant 0 : index
    %120 = vector.load %arg11[%c8_60, %c0_61] : memref<80x512xf32, #tpu.memory_space<vmem>>, vector<64x512xf32>
    %121 = arith.truncf %120 : vector<64x512xf32> to vector<64x512xbf16>
    %c9_62 = arith.constant 9 : index
    %c0_63 = arith.constant 0 : index
    %122 = vector.load %arg11[%c9_62, %c0_63] : memref<80x512xf32, #tpu.memory_space<vmem>>, vector<64x512xf32>
    %cst_64 = arith.constant 0.000000e+00 : f32
    %123 = vector.shape_cast %113 : vector<64x1xi1> to vector<64x1xi1>
    %124 = vector.broadcast %123 : vector<64x1xi1> to vector<64x512xi1>
    %125 = vector.broadcast %cst_64 : f32 to vector<64x512xf32>
    %126 = arith.select %124, %122, %125 : vector<64x512xi1>, vector<64x512xf32>
    %127 = arith.truncf %126 : vector<64x512xf32> to vector<64x512xbf16>
    %128 = arith.truncf %91 : vector<64x512xf32> to vector<64x512xbf16>
    %129 = tpu.concatenate %128, %119, %121, %127 in 1 : vector<64x512xbf16>, vector<64x512xbf16>, vector<64x512xbf16>, vector<64x512xbf16> -> vector<64x2048xbf16>
    %c0_65 = arith.constant 0 : index
    %c0_66 = arith.constant 0 : index
    %130 = vector.load %arg6[%c0_65, %c0_66] : memref<2048x256xbf16, #tpu.memory_space<vmem>>, vector<2048x256xbf16>
    %cst_67 = arith.constant dense<0.000000e+00> : vector<64x256xf32>
    %131 = tpu.matmul %129, %130, %cst_67 {dimension_numbers = #tpu.dot_dimension_numbers<[1], [0], [0], [1], [0, 0, 1, 1], [], []>} : vector<64x2048xbf16>, vector<2048x256xbf16>, vector<64x256xf32> -> vector<64x256xf32>
    %c0_68 = arith.constant 0 : index
    %c0_69 = arith.constant 0 : index
    %132 = vector.load %arg7[%c0_68, %c0_69] : memref<1x256xf32, #tpu.memory_space<vmem>>, vector<1x256xf32>
    %133 = vector.broadcast %132 : vector<1x256xf32> to vector<64x256xf32>
    %134 = arith.addf %131, %133 : vector<64x256xf32>
    %135 = math.tanh %134 : vector<64x256xf32>
    %c0_70 = arith.constant 0 : index
    %c0_71 = arith.constant 0 : index
    %c0_72 = arith.constant 0 : index
    %136 = vector.load %arg8[%c0_70, %c0_71, %c0_72] : memref<1x64x256xf32, #tpu.memory_space<vmem>>, vector<1x64x256xf32>
    %137 = vector.shape_cast %136 : vector<1x64x256xf32> to vector<64x256xf32>
    %138 = vector.shape_cast %135 : vector<64x256xf32> to vector<1x64x256xf32>
    tpu.vector_store %arg8[%c0_70, %c0_71, %c0_72], %138 {strides = array<i32>} : memref<1x64x256xf32, #tpu.memory_space<vmem>>, vector<1x64x256xf32>,
    return
  }
  func.func @transform_0(%arg0: i32) -> (i32, i32, i32) {
    %c0_i32 = arith.constant 0 : i32
    %c0_i32_0 = arith.constant 0 : i32
    %c0_i32_1 = arith.constant 0 : i32
    return %arg0, %c0_i32, %c0_i32_0 : i32, i32, i32
  }
  func.func @transform_1(%arg0: i32) -> (i32, i32) {
    %c0_i32 = arith.constant 0 : i32
    %c0_i32_0 = arith.constant 0 : i32
    %c0_i32_1 = arith.constant 0 : i32
    return %c0_i32, %c0_i32_0 : i32, i32
  }
  func.func @transform_2(%arg0: i32) -> (i32, i32) {
    %c0_i32 = arith.constant 0 : i32
    %c0_i32_0 = arith.constant 0 : i32
    %c0_i32_1 = arith.constant 0 : i32
    return %c0_i32, %c0_i32_0 : i32, i32
  }
  func.func @transform_3(%arg0: i32) -> (i32, i32) {
    %c0_i32 = arith.constant 0 : i32
    %c0_i32_0 = arith.constant 0 : i32
    %c0_i32_1 = arith.constant 0 : i32
    return %c0_i32, %c0_i32_0 : i32, i32
  }
  func.func @transform_4(%arg0: i32) -> (i32, i32) {
    %c0_i32 = arith.constant 0 : i32
    %c0_i32_0 = arith.constant 0 : i32
    %c0_i32_1 = arith.constant 0 : i32
    return %c0_i32, %c0_i32_0 : i32, i32
  }
  func.func @transform_5(%arg0: i32) -> (i32, i32) {
    %c0_i32 = arith.constant 0 : i32
    %c0_i32_0 = arith.constant 0 : i32
    %c0_i32_1 = arith.constant 0 : i32
    return %c0_i32, %c0_i32_0 : i32, i32
  }
  func.func @transform_6(%arg0: i32) -> (i32, i32) {
    %c0_i32 = arith.constant 0 : i32
    %c0_i32_0 = arith.constant 0 : i32
    %c0_i32_1 = arith.constant 0 : i32
    return %c0_i32, %c0_i32_0 : i32, i32
  }
  func.func @transform_7(%arg0: i32) -> (i32, i32, i32) {
    %c0_i32 = arith.constant 0 : i32
    %c0_i32_0 = arith.constant 0 : i32
    %c0_i32_1 = arith.constant 0 : i32
    return %arg0, %c0_i32, %c0_i32_0 : i32, i32, i32
  }
}

</mosaic_0001>

<bundles_post_ra>
// kernel: decoder_forward.1
= control target key start
LH: loop header
LB: loop body
LE: loop exit
PB: predicated region body
PF: predicated region fallthrough
CT: control target
= control target key end

     0   :  { %12 = vsyncpa [#allocation6], 0  ;;  %s9895_s0 = inlined_call_operand.vmem [shape: f32[2,64,128], index: 0, kind: input, shape index: {}]   ;;  %s9896_s1 = inlined_call_operand.hbm [shape: bf16[512,256], index: 1, kind: input, shape index: {}]   ;;  %s9897_s2 = inlined_call_operand.hbm [shape: f32[1,256], index: 2, kind: input, shape index: {}]   ;;  %s9898_s3 = inlined_call_operand.hbm [shape: bf16[1024,512], index: 3, kind: input, shape index: {}]   ;;  %s9899_s4 = inlined_call_operand.hbm [shape: f32[1,512], index: 4, kind: input, shape index: {}]   ;;  %s9900_s5 = inlined_call_operand.hbm [shape: bf16[2048,256], index: 5, kind: input, shape index: {}]   ;;  %s9901_s6 = inlined_call_operand.hbm [shape: f32[1,256], index: 6, kind: input, shape index: {}]   ;;  %s9902_s7 = inlined_call_operand.vmem [shape: f32[2,64,256], index: 7, kind: output, shape index: {}]  }
   0x1   :  { %13 = vsyncpa [#allocation8], 0 }
   0x2   :  { %14 = vsyncpa [#allocation11], 0 }
   0x3   :  { %15 = vsyncpa [#allocation14], 0  ;;  %s8664_s24 = smov 0  }
   0x4 LB: > { %s8613_s25 = smov [#allocation7]   ;;  %s8670_s27 = sadd.s32 4294967295, %s8611_s24   ;;  %s8611_s24 = sphi %s8664_s24, %s21_s24  }
   0x5   : > { %s230_s26 = sshll.u32 %s8613_s25, 4  ;;  %p6345_p0 = scmp.ge.s32.totalorder %s8611_s24, 1  ;;  %s8675_s26 = int_to_ptr.vmem [resolvable:$true] %s230_s26 }
   0x6   : > { %p204_p1 = scmp.lt.s32.totalorder %s8611_s24, 3  ;;  %p9903_p2 = scmp.eq.s32.totalorder %s8670_s27, 0 }
   0x7   : > { %s8614_s29 = smov [#allocation10]   ;;  %s8615_s8 = smov [#allocation5]  }
   0x8   : > { %p8677_p3 = pnand %p6345_p0, %p204_p1  ;;  %s254_s30 = sshll.u32 %s8614_s29, 4  ;;  %s8683_s30 = int_to_ptr.vmem [resolvable:$true] %s254_s30 }
   0x9   : > { %s216_s9 = sshll.u32 %s8615_s8, 4  ;;  %s8616_s11 = smov [#allocation9]   ;;  %s8691_s9 = int_to_ptr.vmem [resolvable:$true] %s216_s9 }
   0xa   : > { %s9920_s28 = scalar_select %p8677_p3, 1, 0 }
   0xb   : > { %p7472_p4 = pneg %p8677_p3  ;;  %s8693_s12 = sshll.u32 %s8616_s11, 4  ;;  %s241_s12 = int_to_ptr.vmem [resolvable:$true] %s8693_s12 }
   0xc   : > { %s8421_s15 = scalar_lea.hbm %s9897_s2, 32 }
   0xd   : > { %p8687_p5 = pnand %p9903_p2, %p7472_p4  ;;  %p8422_p6 = scmp.ne.s32.totalorder %s9897_s2, %s8421_s15 }
   0xe   : > { %p8428_p10 = scmp.lt.u32.totalorder %s8421_s15, %s9897_s2 }
   0xf   : > { %p8703_p7 = pneg %p8687_p5 }
  0x11   : > { %p8424_p8 = pnand %p8703_p7, %p8422_p6 }
  0x13   : > { %p8425_p9 = pneg %p8424_p8 }
  0x15   : > { %p8430_p11 = pnand %p8428_p10, %p8425_p9 }
  0x17   : > { %8433 = shalt.err (!%p8430_p11)
}
  0x18   : > { %s8434_s21 = scalar_lea.vmem %s8675_s26, 32  ;;  %p8442_p1 = scmp.lt.s32.totalorder %s8675_s26, %s8675_s26 }
  0x19   : > { %p8435_p12 = scmp.ne.s32.totalorder %s8675_s26, %s8434_s21  ;;  %p8443_p4 = scmp.lt.s32.totalorder %s8434_s21, %s8434_s21 }
  0x1b   : > { %p8437_p13 = pnand %p8435_p12, %p8703_p7  ;;  %p8444_p6 = por %p8443_p4, %p8442_p1 }
  0x1d   : > { %p8438_p0 = pneg %p8437_p13 }
  0x1f   : > { %p8445_p8 = pnand %p8444_p6, %p8438_p0 }
  0x21   : > { %8448 = shalt.err (!%p8445_p8)
}
  0x22   : > { %7478 = dma.hbm_to_vmem [thread:$0]  (!%p8687_p5), %s9897_s2, 32, %s8675_s26, [#allocation8]  }
  0x23   : > { %s8449_s8 = scalar_lea.hbm %s9899_s4, 64 }
  0x24   : > { %p8450_p9 = scmp.ne.s32.totalorder %s9899_s4, %s8449_s8  ;;  %p8456_p12 = scmp.lt.u32.totalorder %s8449_s8, %s9899_s4 }
  0x26   : > { %p8452_p10 = pnand %p8450_p9, %p8703_p7 }
  0x28   : > { %p8453_p11 = pneg %p8452_p10 }
  0x2a   : > { %p8458_p13 = pnand %p8456_p12, %p8453_p11 }
  0x2c   : > { %8461 = shalt.err (!%p8458_p13)
}
  0x2d   : > { %s8462_s26 = scalar_lea.vmem %s8683_s30, 64  ;;  %p8470_p6 = scmp.lt.s32.totalorder %s8683_s30, %s8683_s30 }
  0x2e   : > { %p8463_p0 = scmp.ne.s32.totalorder %s8683_s30, %s8462_s26  ;;  %p8471_p8 = scmp.lt.s32.totalorder %s8462_s26, %s8462_s26 }
  0x30   : > { %p8465_p1 = pnand %p8463_p0, %p8703_p7  ;;  %p8472_p9 = por %p8471_p8, %p8470_p6 }
  0x32   : > { %p8466_p4 = pneg %p8465_p1 }
  0x34   : > { %p8473_p10 = pnand %p8472_p9, %p8466_p4 }
  0x36   : > { %8476 = shalt.err (!%p8473_p10)
}
  0x37   : > { %7484 = dma.hbm_to_vmem [thread:$0]  (!%p8687_p5), %s9899_s4, 64, %s8683_s30, [#allocation11]  }
  0x38   : > { %s8477_s21 = scalar_lea.hbm %s9896_s1, 8192 }
  0x39   : > { %p8478_p11 = scmp.ne.s32.totalorder %s9896_s1, %s8477_s21  ;;  %p8484_p0 = scmp.lt.u32.totalorder %s8477_s21, %s9896_s1 }
  0x3b   : > { %p8480_p12 = pnand %p8478_p11, %p8703_p7 }
  0x3d   : > { %p8481_p13 = pneg %p8480_p12 }
  0x3f   : > { %p8486_p1 = pnand %p8484_p0, %p8481_p13 }
  0x41   : > { %8489 = shalt.err (!%p8486_p1)
}
  0x42   : > { %s8490_s30 = scalar_lea.vmem %s8691_s9, 8192  ;;  %p8498_p9 = scmp.lt.s32.totalorder %s8691_s9, %s8691_s9 }
  0x43   : > { %p8491_p4 = scmp.ne.s32.totalorder %s8691_s9, %s8490_s30  ;;  %p8499_p10 = scmp.lt.s32.totalorder %s8490_s30, %s8490_s30 }
  0x45   : > { %p8493_p6 = pnand %p8491_p4, %p8703_p7  ;;  %p8500_p11 = por %p8499_p10, %p8498_p9 }
  0x47   : > { %p8494_p8 = pneg %p8493_p6 }
  0x49   : > { %p8501_p12 = pnand %p8500_p11, %p8494_p8 }
  0x4b   : > { %8504 = shalt.err (!%p8501_p12)
}
  0x4c   : > { %s8617_s8 = smov 128   ;;  %s8618_s11 = smov 8  }
  0x4d   : > { %7475 = dma.hbm_to_vmem [thread:$0]  (!%p8687_p5), %s9896_s1, 8192, %s8691_s9, [#allocation6], %s8617_s8, %s8617_s8, %s8618_s11  }
  0x4e   : > { %s8505_s16 = scalar_lea.hbm %s9898_s3, 32768 }
  0x4f   : > { %p8506_p13 = scmp.ne.s32.totalorder %s9898_s3, %s8505_s16  ;;  %p8512_p4 = scmp.lt.u32.totalorder %s8505_s16, %s9898_s3 }
  0x51   : > { %p8508_p0 = pnand %p8506_p13, %p8703_p7 }
  0x53   : > { %p8509_p1 = pneg %p8508_p0 }
  0x55   : > { %p8514_p6 = pnand %p8512_p4, %p8509_p1 }
  0x57   : > { %8517 = shalt.err (!%p8514_p6)
}
  0x58   : > { %s8518_s22 = scalar_lea.vmem %s241_s12, 32768  ;;  %p8526_p11 = scmp.lt.s32.totalorder %s241_s12, %s241_s12 }
  0x59   : > { %p8519_p8 = scmp.ne.s32.totalorder %s241_s12, %s8518_s22  ;;  %p8527_p12 = scmp.lt.s32.totalorder %s8518_s22, %s8518_s22 }
  0x5b   : > { %p8521_p9 = pnand %p8519_p8, %p8703_p7  ;;  %p8528_p2 = por %p8527_p12, %p8526_p11 }
  0x5d   : > { %p8522_p10 = pneg %p8521_p9 }
  0x5f   : > { %p8529_p3 = pnand %p8528_p2, %p8522_p10 }
  0x61   : > { %8532 = shalt.err (!%p8529_p3)
}
  0x62   : > { %s8619_s9 = smov 256   ;;  %s8620_s23 = smov 16  }
  0x63   : > { %7481 = dma.hbm_to_vmem [thread:$0]  (!%p8687_p5), %s9898_s3, 32768, %s241_s12, [#allocation8], %s8619_s9, %s8619_s9, %s8620_s23  }
  0x64   : > { %s8621_s30 = smov [#allocation12]   ;;  %s8622_s14 = smov [#allocation13]  }
  0x65   : > { %s264_s13 = sshll.u32 %s8621_s30, 4  ;;  %s278_s15 = sshll.u32 %s8622_s14, 4  ;;  %s265_s13 = int_to_ptr.vmem [resolvable:$true] %s264_s13  ;;  %s279_s15 = int_to_ptr.vmem [resolvable:$true] %s278_s15 }
  0x66   : > { %s8533_s17 = scalar_lea.hbm %s9900_s5, 32768 }
  0x67   : > { %p8534_p2 = scmp.ne.s32.totalorder %s9900_s5, %s8533_s17  ;;  %p8540_p0 = scmp.lt.u32.totalorder %s8533_s17, %s9900_s5 }
  0x69   : > { %p8536_p3 = pnand %p8534_p2, %p8703_p7 }
  0x6b   : > { %p8537_p13 = pneg %p8536_p3 }
  0x6d   : > { %p8542_p1 = pnand %p8540_p0, %p8537_p13 }
  0x6f   : > { %8545 = shalt.err (!%p8542_p1)
}
  0x70   : > { %s8546_s12 = scalar_lea.vmem %s265_s13, 32768  ;;  %p8554_p9 = scmp.lt.s32.totalorder %s265_s13, %s265_s13 }
  0x71   : > { %p8547_p4 = scmp.ne.s32.totalorder %s265_s13, %s8546_s12  ;;  %p8555_p10 = scmp.lt.s32.totalorder %s8546_s12, %s8546_s12 }
  0x73   : > { %p8549_p6 = pnand %p8547_p4, %p8703_p7  ;;  %p8556_p11 = por %p8555_p10, %p8554_p9 }
  0x75   : > { %p8550_p8 = pneg %p8549_p6 }
  0x77   : > { %p8557_p12 = pnand %p8556_p11, %p8550_p8 }
  0x79   : > { %8560 = shalt.err (!%p8557_p12)
}
  0x7a   : > { %7487 = dma.hbm_to_vmem [thread:$0]  (!%p8687_p5), %s9900_s5, 32768, %s265_s13, [#allocation11], %s8617_s8, %s8617_s8, %s8618_s11  }
  0x7b   : > { %s8561_s30 = scalar_lea.hbm %s9901_s6, 32 }
  0x7c   : > { %p8562_p2 = scmp.ne.s32.totalorder %s9901_s6, %s8561_s30  ;;  %p8568_p0 = scmp.lt.u32.totalorder %s8561_s30, %s9901_s6 }
  0x7e   : > { %p8564_p3 = pnand %p8562_p2, %p8703_p7 }
  0x80   : > { %p8565_p13 = pneg %p8564_p3 }
  0x82   : > { %p8570_p1 = pnand %p8568_p0, %p8565_p13 }
  0x84   : > { %8573 = shalt.err (!%p8570_p1)
}
  0x85   : > { %s8574_s19 = scalar_lea.vmem %s279_s15, 32  ;;  %p8582_p9 = scmp.lt.s32.totalorder %s279_s15, %s279_s15 }
  0x86   : > { %p8575_p4 = scmp.ne.s32.totalorder %s279_s15, %s8574_s19  ;;  %p8583_p10 = scmp.lt.s32.totalorder %s8574_s19, %s8574_s19 }
  0x88   : > { %p8577_p6 = pnand %p8575_p4, %p8703_p7  ;;  %p8584_p11 = por %p8583_p10, %p8582_p9 }
  0x8a   : > { %p8578_p8 = pneg %p8577_p6 }
  0x8c   : > { %p8585_p12 = pnand %p8584_p11, %p8578_p8 }
  0x8e   : > { %8588 = shalt.err (!%p8585_p12)
}
  0x8f   : > { %7490 = dma.hbm_to_vmem [thread:$0]  (!%p8687_p5), %s9901_s6, 32, %s279_s15, [#allocation14]  }
  0x90   : > { %p9923_p2 = scmp.ne.s32.totalorder %s9920_s28, 0 }
  0x92   : > { %299 = sbr.rel (%p9923_p2) target bundleno = 1760 (0x6e0), region = 48 }
  0x99   : > { %p9924_p3 = scmp.eq.s32.totalorder %s8670_s27, 0 }
  0x9b   : > { %8594 = dma.done.wait (%p9924_p3), [#allocation6], 8192   ;;  %p9925_p7 = pmov %p9924_p3 }
  0x9c   : > { %p9926_p13 = pmov %p9924_p3 }
  0x9d   : > { %8596 = vsyncadd (%p9925_p7), [#allocation6], 4294959104 }
  0x9e   : > { %8598 = dma.done.wait (%p9926_p13), [#allocation8], 32800   ;;  %p9927_p0 = pmov %p9924_p3 }
  0xa0   : > { %8600 = vsyncadd (%p9927_p0), [#allocation8], 4294934496  ;;  %p9928_p1 = pmov %p9927_p0 }
  0xa1   : > { %p9929_p5 = pmov %p9927_p0 }
  0xa2   : > { %8602 = dma.done.wait (%p9928_p1), [#allocation11], 32832  }
  0xa3   : > { %8604 = vsyncadd (%p9929_p5), [#allocation11], 4294934464  ;;  %p9930_p4 = pmov %p9927_p0 }
  0xa4   : > { %p9931_p6 = pmov %p9927_p0 }
  0xa5   : > { %8606 = dma.done.wait (%p9930_p4), [#allocation14], 32  }
  0xa6   : > { %8608 = vsyncadd (%p9931_p6), [#allocation14], 4294967264  ;;  %v8623_v0 = vmov 0.0   ;;  %v7522_v1 = vld [vmem:[#allocation5 + $0x4] ss:$8 sps:$4 sm:$0xff]   ;;  %p351_p8 = scmp.lt.s32.totalorder %s8670_s27, 1  ;;  %v379_v9 = vlaneseq }
  0xa7   : > { %369 = vst [vmem:[#allocation2 + $0x40] sm:$0xff] %v8623_v0  ;;  %370 = vst [vmem:[#allocation2 + $0x48] sm:$0xff] %v8623_v0  ;;  %v7524_v2 = vld [vmem:[#allocation5] ss:$8 sps:$4 sm:$0xff]   ;;  %953 = vmatprep.subr.bf16.mxu0 %v7522_v1  ;;  %v7525_v3 = vld [vmem:[#allocation5 + $0x14] ss:$8 sps:$4 sm:$0xff]  }
  0xa8   : > { %1115 = vst [vmem:[#allocation3 + $0x80] sm:$0xff] %v8623_v0  ;;  %1116 = vst [vmem:[#allocation3 + $0x88] sm:$0xff] %v8623_v0  ;;  %954 = vmatpush1.bf16.msra.mxu0 %v7524_v2  ;;  %v7527_v4 = vld [vmem:[#allocation5 + $0x10] ss:$8 sps:$4 sm:$0xff]   ;;  %v7528_v5 = vld [vmem:[#allocation5 + $0x24] ss:$8 sps:$4 sm:$0xff]  }
  0xa9   : > { %1117 = vst [vmem:[#allocation3 + $0x90] sm:$0xff] %v8623_v0  ;;  %1118 = vst [vmem:[#allocation3 + $0x98] sm:$0xff] %v8623_v0  ;;  %955 = vmatprep.subr.bf16.mxu0 %v7525_v3  ;;  %v7530_v6 = vld [vmem:[#allocation5 + $0x20] ss:$8 sps:$4 sm:$0xff]   ;;  %v7531_v7 = vld [vmem:[#allocation5 + $0x34] ss:$8 sps:$4 sm:$0xff]  }
  0xaa   : > { %3548 = vst [vmem:[#allocation4 + $0x100] sm:$0xff] %v8623_v0  ;;  %3549 = vst [vmem:[#allocation4 + $0x108] sm:$0xff] %v8623_v0  ;;  %v7533_v8 = vld [vmem:[#allocation5 + $0x30] ss:$8 sps:$4 sm:$0xff]   ;;  %s9998_s27 = smov (!%p351_p8, %s8670_s27), 1  ;;  %v8854_v12 = vshrl.u32 %v379_v9, 7 }
  0xab   : > { %3550 = vst [vmem:[#allocation4 + $0x110] sm:$0xff] %v8623_v0  ;;  %3551 = vst [vmem:[#allocation4 + $0x118] sm:$0xff] %v8623_v0  ;;  %v7534_v10 = vld [vmem:[#allocation5 + $0x44] ss:$8 sps:$4 sm:$0xff]   ;;  %v7536_v11 = vld [vmem:[#allocation5 + $0x40] ss:$8 sps:$4 sm:$0xff]  }
  0xac   : > { %3552 = vst [vmem:[#allocation4 + $0x120] sm:$0xff] %v8623_v0  ;;  %3553 = vst [vmem:[#allocation4 + $0x128] sm:$0xff] %v8623_v0  ;;  %956 = vmatpush1.bf16.msra.mxu0 %v7527_v4  ;;  %s7158_s28 = sshll.u32 %s9998_s27, 6  ;;  %v7537_v13 = vld [vmem:[#allocation5 + $0x54] ss:$8 sps:$4 sm:$0xff]   ;;  %v381_v15 = vadd.s32 8, %v8854_v12 }
  0xad   : > { %3554 = vst [vmem:[#allocation4 + $0x130] sm:$0xff] %v8623_v0  ;;  %3555 = vst [vmem:[#allocation4 + $0x138] sm:$0xff] %v8623_v0  ;;  %957 = vmatprep.subr.bf16.mxu0 %v7528_v5  ;;  %s8859_s13 = scalar_lea.vmem %s9895_s0, %s7158_s28  ;;  %v7539_v14 = vld [vmem:[#allocation5 + $0x50] ss:$8 sps:$4 sm:$0xff]   ;;  %v7540_v16 = vld [vmem:[#allocation5 + $0x64] ss:$8 sps:$4 sm:$0xff]  }
  0xae   : > { %v8863_v17 = vld [vmem:[%s8859_s13] sm:$0xff]  ;;  %v8866_v18 = vld [vmem:[%s8859_s13 + $0x8] sm:$0xff]  ;;  %v8869_v19 = vld [vmem:[%s8859_s13 + $0x10] sm:$0xff]  ;;  %v392_v23 = vand.u32 7, %v8854_v12  ;;  %v399_v24 = vand.u32 7, %v381_v15  ;;  %v382_v50 = vadd.s32 16, %v8854_v12 }
  0xaf   : > { %v8872_v20 = vld [vmem:[%s8859_s13 + $0x18] sm:$0xff]  ;;  %v8875_v21 = vld [vmem:[%s8859_s13 + $0x20] sm:$0xff]  ;;  %371 = vst [vmem:[#allocation2] sm:$0xff] %v8863_v17  ;;  %372 = vst [vmem:[#allocation2 + $0x8] sm:$0xff] %v8866_v18  ;;  %v536_v25 = vpack.c.bf16 %v8869_v19, %v8866_v18  ;;  %v383_v51 = vadd.s32 24, %v8854_v12  ;;  %v384_v63 = vadd.s32 32, %v8854_v12  ;;  %v553_v4 = vpack.c.bf16 %v8866_v18, %v8863_v17 }
  0xb0   : > { %958 = vmatpush1.bf16.msra.mxu0 %v7530_v6  ;;  %v7542_v22 = vld [vmem:[#allocation5 + $0x60] ss:$8 sps:$4 sm:$0xff]   ;;  %373 = vst [vmem:[#allocation2 + $0x10] sm:$0xff] %v8869_v19  ;;  %374 = vst [vmem:[#allocation2 + $0x18] sm:$0xff] %v8872_v20  ;;  %v537_v26 = vpack.c.bf16 %v8875_v21, %v8872_v20  ;;  %v7543_v27 = vld [vmem:[#allocation5 + $0x74] ss:$8 sps:$4 sm:$0xff]  }
  0xb1   : > { %959 = vmatprep.subr.bf16.mxu0 %v7531_v7  ;;  %375 = vst [vmem:[#allocation2 + $0x20] sm:$0xff] %v8875_v21  ;;  %v7545_v28 = vld [vmem:[#allocation5 + $0x70] ss:$8 sps:$4 sm:$0xff]   ;;  %vm484_vm0 = vcmp.ne.s32.totalorder %v392_v23, 7  ;;  %vm485_vm1 = vcmp.ne.s32.totalorder %v399_v24, 7  ;;  %v8900_v41 = vld [vmem:[%s8859_s13 + $0x30] sm:$0xff] }
  0xb2   : > { %v7546_v29 = vld [vmem:[#allocation5 + $0x84] ss:$8 sps:$4 sm:$0xff]   ;;  %vm8889_vm2 = vmpackc.low %vm485_vm1, %vm484_vm0  ;;  %v7548_v33 = vld [vmem:[#allocation5 + $0x80] ss:$8 sps:$4 sm:$0xff]   ;;  %377 = vst [vmem:[#allocation2 + $0x30] sm:$0xff] %v8900_v41  ;;  %v406_v54 = vand.u32 7, %v382_v50 }
  0xb3   : > { %v7549_v35 = vld [vmem:[#allocation5 + $0x94] ss:$8 sps:$4 sm:$0xff]   ;;  %v7551_v36 = vld [vmem:[#allocation5 + $0x90] ss:$8 sps:$4 sm:$0xff]   ;;  %v7552_v37 = vld [vmem:[#allocation5 + $0xa4] ss:$8 sps:$4 sm:$0xff]  }
  0xb4   : > { %960 = vmatpush1.bf16.msra.mxu0 %v7533_v8  ;;  %v7554_v38 = vld [vmem:[#allocation5 + $0xa0] ss:$8 sps:$4 sm:$0xff]   ;;  %v7555_v39 = vld [vmem:[#allocation5 + $0xb4] ss:$8 sps:$4 sm:$0xff]   ;;  %v7557_v43 = vld [vmem:[#allocation5 + $0xb0] ss:$8 sps:$4 sm:$0xff]  }
  0xb5   : > { %961 = vmatprep.subr.bf16.mxu0 %v7534_v10  ;;  %v8897_v40 = vld [vmem:[%s8859_s13 + $0x28] sm:$0xff]  ;;  %v7558_v44 = vld [vmem:[#allocation5 + $0xc4] ss:$8 sps:$4 sm:$0xff]   ;;  %v7560_v46 = vld [vmem:[#allocation5 + $0xc0] ss:$8 sps:$4 sm:$0xff]   ;;  %v413_v56 = vand.u32 7, %v383_v51 }
  0xb6   : > { %v492_v30 = vld [vmem:[#allocation2 + $0x1] sm:$0xff]  ;;  %376 = vst [vmem:[#allocation2 + $0x28] sm:$0xff] %v8897_v40  ;;  %v538_v42 = vpack.c.bf16 %v8900_v41, %v8897_v40  ;;  %v8907_v45 = vld [vmem:[%s8859_s13 + $0x38] sm:$0xff]  ;;  %vm8916_vm3 = vcmp.ne.s32.totalorder %v406_v54, 7  ;;  %v385_v0 = vadd.s32 40, %v8854_v12  ;;  %v420_v9 = vand.u32 7, %v384_v63 }
  0xb7   : > { %v8887_v31 = vld [vmem:[#allocation2 + $0x9] sm:$0xff]  ;;  %378 = vst [vmem:[#allocation2 + $0x38] sm:$0xff] %v8907_v45  ;;  %v7564_v49 = vld [vmem:[#allocation5 + $0xe4] ss:$8 sps:$4 sm:$0xff]   ;;  %vm487_vm4 = vcmp.ne.s32.totalorder %v413_v56, 7  ;;  %v387_v23 = vadd.s32 56, %v8854_v12  ;;  %v555_v50 = vpack.c.bf16 %v8897_v40, %v8875_v21 }
  0xb8   : > { %962 = vmatpush1.bf16.msra.mxu0 %v7536_v11  ;;  %v6429_v34 = vpack.c.bf16 %v8887_v31, %v492_v30  ;;  %v7561_v47 = vld [vmem:[#allocation5 + $0xd4] ss:$8 sps:$4 sm:$0xff]   ;;  %v7563_v48 = vld [vmem:[#allocation5 + $0xd0] ss:$8 sps:$4 sm:$0xff]   ;;  %v7566_v52 = vld [vmem:[#allocation5 + $0xe0] ss:$8 sps:$4 sm:$0xff]  }
  0xb9   : > { %963 = vmatprep.subr.bf16.mxu0 %v7537_v13  ;;  %v7567_v53 = vld [vmem:[#allocation5 + $0xf4] ss:$8 sps:$4 sm:$0xff]   ;;  %v7569_v55 = vld [vmem:[#allocation5 + $0xf0] ss:$8 sps:$4 sm:$0xff]   ;;  %v7572_v57 = vld [vmem:[#allocation5 + $0x104] ss:$8 sps:$4 sm:$0xff]  }
  0xba   : > { %6430 = vmatprep.mubr.msk.bf16.mxu0 %vm8889_vm2, %v6429_v34  ;;  %v7636_v58 = vld [vmem:[#allocation9 + $0x604] ss:$16 sps:$4 sm:$0xff]   ;;  %v7638_v59 = vld [vmem:[#allocation9 + $0x600] ss:$16 sps:$4 sm:$0xff]   ;;  %vm8928_vm5 = vmpackc.low %vm487_vm4, %vm8916_vm3  ;;  %v427_v11 = vand.u32 7, %v385_v0  ;;  %vm488_vm6 = vcmp.ne.s32.totalorder %v420_v9, 7  ;;  %v556_v0 = vpack.c.bf16 %v8907_v45, %v8900_v41 }
  0xbb   : > { %v8912_v60 = vld [vmem:[#allocation2 + $0x11] sm:$0xff]  ;;  %v8914_v61 = vld [vmem:[#allocation2 + $0x19] sm:$0xff]  ;;  %3151 = vmatprep.subr.bf16.mxu1 %v7636_v58  ;;  %v7575_v5 = vld [vmem:[#allocation5 + $0x114] ss:$8 sps:$4 sm:$0xff]   ;;  %vm1171_vm12 = vcmask 1046528   ;;  %s7159_s15 = sshll.u32 %s9998_s27, 7 }
  0xbc   : > { %964 = vmatpush1.bf16.msra.mxu0 %v7539_v14  ;;  %3152 = vmatpush1.bf16.msra.mxu1 %v7638_v59  ;;  %v7642_v1 = vld [vmem:[#allocation9 + $0x624] ss:$16 sps:$4 sm:$0xff]   ;;  %v7644_v2 = vld [vmem:[#allocation9 + $0x620] ss:$16 sps:$4 sm:$0xff]   ;;  %v6432_v6 = vpack.c.bf16 %v8914_v61, %v8912_v60  ;;  %vm489_vm7 = vcmp.ne.s32.totalorder %v427_v11, 7  ;;  %s9869_s22 = scalar_lea.vmem %s9902_s7, %s7159_s15 }
  0xbd   : > { %965 = vmatprep.subr.bf16.mxu0 %v7540_v16  ;;  %v7570_v3 = vld [vmem:[#allocation5 + $0x100] ss:$8 sps:$4 sm:$0xff]   ;;  %3153 = vmatprep.subr.bf16.mxu1 %v7642_v1  ;;  %v7573_v10 = vld [vmem:[#allocation5 + $0x110] ss:$8 sps:$4 sm:$0xff]   ;;  %v7578_v14 = vld [vmem:[#allocation5 + $0x124] ss:$8 sps:$4 sm:$0xff]   ;;  %v6441_v1 = vpack.c.bf16 %v8912_v60, %v8887_v31 }
  0xbe   : > { %v7648_v7 = vld [vmem:[#allocation9 + $0x644] ss:$16 sps:$4 sm:$0xff]   ;;  %v7650_v13 = vld [vmem:[#allocation9 + $0x640] ss:$16 sps:$4 sm:$0xff]   ;;  %vm8944_vm8 = vmpackc.low %vm489_vm7, %vm488_vm6 }
  0xbf   : > { %v7654_v15 = vld [vmem:[#allocation9 + $0x664] ss:$16 sps:$4 sm:$0xff]   ;;  %v7656_v24 = vld [vmem:[#allocation9 + $0x660] ss:$16 sps:$4 sm:$0xff]  }
  0xc0   : > { %966 = vmatpush1.bf16.msra.mxu0 %v7542_v22  ;;  %3154 = vmatpush1.bf16.msra.mxu1 %v7644_v2  ;;  %v8934_v16 = vld [vmem:[#allocation2 + $0x21] sm:$0xff]  ;;  %v8936_v17 = vld [vmem:[#allocation2 + $0x29] sm:$0xff]  ;;  %v386_v22 = vadd.s32 48, %v8854_v12  ;;  %v7602_v31 = vld [vmem:[#allocation5 + $0x1a4] ss:$8 sps:$4 sm:$0xff]  }
  0xc1   : > { %967 = vmatprep.subr.bf16.mxu0 %v7543_v27  ;;  %3155 = vmatprep.subr.bf16.mxu1 %v7648_v7  ;;  %v7576_v27 = vld [vmem:[#allocation5 + $0x120] ss:$8 sps:$4 sm:$0xff]   ;;  %v7581_v30 = vld [vmem:[#allocation5 + $0x134] ss:$8 sps:$4 sm:$0xff]   ;;  %v7585_v56 = vld [vmem:[#allocation5 + $0x150] ss:$8 sps:$4 sm:$0xff]  }
  0xc2   : > { %v7672_v51 = vld [vmem:[#allocation9 + $0x6c4] ss:$16 sps:$4 sm:$0xff]   ;;  %v7674_v54 = vld [vmem:[#allocation9 + $0x6c0] ss:$16 sps:$4 sm:$0xff]  }
  0xc3   : > { %v7680_v58 = vld [vmem:[#allocation9 + $0x6e0] ss:$16 sps:$4 sm:$0xff]   ;;  %v7684_v59 = vld [vmem:[#allocation9 + $0x704] ss:$16 sps:$4 sm:$0xff]  }
  0xc4   : > { %968 = vmatpush1.bf16.msra.mxu0 %v7545_v28  ;;  %3156 = vmatpush1.bf16.msra.mxu1 %v7650_v13  ;;  %v554_v28 = vpack.c.bf16 %v8872_v20, %v8869_v19  ;;  %v7588_v62 = vld [vmem:[#allocation5 + $0x160] ss:$8 sps:$4 sm:$0xff]   ;;  %v7593_v63 = vld [vmem:[#allocation5 + $0x174] ss:$8 sps:$4 sm:$0xff]   ;;  %v7597_v7 = vld [vmem:[#allocation5 + $0x190] ss:$8 sps:$4 sm:$0xff]  }
  0xc5   : > { %969 = vmatprep.subr.bf16.mxu0 %v7546_v29  ;;  %3157 = vmatprep.subr.bf16.mxu1 %v7654_v15  ;;  %v7660_v29 = vld [vmem:[#allocation9 + $0x684] ss:$16 sps:$4 sm:$0xff]   ;;  %v7686_v2 = vld [vmem:[#allocation9 + $0x700] ss:$16 sps:$4 sm:$0xff]  }
  0xc6   : > { %v7600_v60 = vld [vmem:[#allocation5 + $0x1a0] ss:$8 sps:$4 sm:$0xff]   ;;  %v7605_v9 = vld [vmem:[#allocation5 + $0x1b4] ss:$8 sps:$4 sm:$0xff]   ;;  %v7608_v11 = vld [vmem:[#allocation5 + $0x1c4] ss:$8 sps:$4 sm:$0xff]  }
  0xc7   : > { %v7606_v13 = vld [vmem:[#allocation5 + $0x1c0] ss:$8 sps:$4 sm:$0xff]   ;;  %v7609_v15 = vld [vmem:[#allocation5 + $0x1d0] ss:$8 sps:$4 sm:$0xff]  }
  0xc8   : > { %970 = vmatpush1.bf16.msra.mxu0 %v7548_v33  ;;  %v6435_v33 = vpack.c.bf16 %v8936_v17, %v8934_v16  ;;  %3158 = vmatpush1.bf16.msra.mxu1 %v7656_v24  ;;  %v7617_v24 = vld [vmem:[#allocation5 + $0x1f4] ss:$8 sps:$4 sm:$0xff]  }
  0xc9   : > { %971 = vmatprep.subr.bf16.mxu0 %v7549_v35  ;;  %v434_v35 = vand.u32 7, %v386_v22  ;;  %3159 = vmatprep.subr.bf16.mxu1 %v7660_v29  ;;  %v7614_v22 = vld [vmem:[#allocation5 + $0x1e4] ss:$8 sps:$4 sm:$0xff]   ;;  %v540_v18 = vld [vmem:[#allocation2 + $0x41] sm:$0xff] }
  0xca   : > { %v7618_v29 = vld [vmem:[#allocation9] ss:$16 sps:$4 sm:$0xff]   ;;  %v7632_v19 = vld [vmem:[#allocation9 + $0x84] ss:$16 sps:$4 sm:$0xff]  }
  0xcb   : > { %vm490_vm9 = vcmp.ne.s32.totalorder %v434_v35, 7  ;;  %v7621_v35 = vld [vmem:[#allocation9 + $0x20] ss:$16 sps:$4 sm:$0xff]   ;;  %v7641_v20 = vld [vmem:[#allocation9 + $0xc4] ss:$16 sps:$4 sm:$0xff]  }
  0xcc   : > { %972 = vmatpush1.bf16.msra.mxu0 %v7551_v36  ;;  %v441_v36 = vand.u32 7, %v387_v23  ;;  %v7612_v23 = vld [vmem:[#allocation5 + $0x1e0] ss:$8 sps:$4 sm:$0xff]  }
  0xcd   : > { %973 = vmatprep.subr.bf16.mxu0 %v7552_v37  ;;  %v7579_v37 = vld [vmem:[#allocation5 + $0x130] ss:$8 sps:$4 sm:$0xff]  }
  0xce   : > { %vm491_vm10 = vcmp.ne.s32.totalorder %v441_v36, 7  ;;  %v7626_v36 = vld [vmem:[#allocation9 + $0x44] ss:$16 sps:$4 sm:$0xff]   ;;  %v7639_v21 = vld [vmem:[#allocation9 + $0xc0] ss:$16 sps:$4 sm:$0xff]  }
  0xcf   : > { %vm8956_vm11 = vmpackc.low %vm491_vm10, %vm490_vm9  ;;  %v7651_v40 = vld [vmem:[#allocation9 + $0x100] ss:$16 sps:$4 sm:$0xff]   ;;  %v7659_v41 = vld [vmem:[#allocation9 + $0x124] ss:$16 sps:$4 sm:$0xff]  }
  0xd0   : > { %974 = vmatpush1.bf16.msra.mxu0 %v7554_v38  ;;  %v7662_v38 = vld [vmem:[#allocation9 + $0x680] ss:$16 sps:$4 sm:$0xff]  }
  0xd1   : > { %975 = vmatprep.subr.bf16.mxu0 %v7555_v39  ;;  %v7584_v39 = vld [vmem:[#allocation5 + $0x144] ss:$8 sps:$4 sm:$0xff]   ;;  %3160 = vmatpush1.bf16.msra.mxu1 %v7662_v38 }
  0xd2   : > { %v7629_v38 = vld [vmem:[#allocation9 + $0x64] ss:$16 sps:$4 sm:$0xff]  }
  0xd4   : > { %976 = vmatpush1.bf16.msra.mxu0 %v7557_v43  ;;  %v7666_v43 = vld [vmem:[#allocation9 + $0x6a4] ss:$16 sps:$4 sm:$0xff]  }
  0xd5   : > { %977 = vmatprep.subr.bf16.mxu0 %v7558_v44  ;;  %v8950_v44 = vld [vmem:[#allocation2 + $0x31] sm:$0xff]  ;;  %3161 = vmatprep.subr.bf16.mxu1 %v7666_v43 }
  0xd8   : > { %978 = vmatpush1.bf16.msra.mxu0 %v7560_v46  ;;  %v8952_v46 = vld [vmem:[#allocation2 + $0x39] sm:$0xff] }
  0xd9   : > { %979 = vmatprep.subr.bf16.mxu0 %v7561_v47  ;;  %v7582_v47 = vld [vmem:[#allocation5 + $0x140] ss:$8 sps:$4 sm:$0xff]   ;;  %v6450_v43 = vpack.c.bf16 %v540_v18, %v8952_v46 }
  0xdc   : > { %980 = vmatpush1.bf16.msra.mxu0 %v7563_v48  ;;  %v7668_v48 = vld [vmem:[#allocation9 + $0x6a0] ss:$16 sps:$4 sm:$0xff]  }
  0xdd   : > { %981 = vmatprep.subr.bf16.mxu0 %v7564_v49  ;;  %v7587_v49 = vld [vmem:[#allocation5 + $0x154] ss:$8 sps:$4 sm:$0xff]   ;;  %3162 = vmatpush1.bf16.msra.mxu1 %v7668_v48 }
  0xde   : > { %3163 = vmatprep.subr.bf16.mxu1 %v7672_v51  ;;  %v7653_v48 = vld [vmem:[#allocation9 + $0x104] ss:$16 sps:$4 sm:$0xff]  }
  0xdf   : > { %v7671_v51 = vld [vmem:[#allocation9 + $0x164] ss:$16 sps:$4 sm:$0xff]  }
  0xe0   : > { %982 = vmatpush1.bf16.msra.mxu0 %v7566_v52 }
  0xe1   : > { %983 = vmatprep.subr.bf16.mxu0 %v7567_v53  ;;  %v6438_v53 = vpack.c.bf16 %v8952_v46, %v8950_v44  ;;  %3164 = vmatpush1.bf16.msra.mxu1 %v7674_v54  ;;  %v7647_v46 = vld [vmem:[#allocation9 + $0xe4] ss:$16 sps:$4 sm:$0xff]   ;;  %v7675_v54 = vld [vmem:[#allocation9 + $0x180] ss:$16 sps:$4 sm:$0xff]  }
  0xe4   : > { %984 = vmatpush1.bf16.msra.mxu0 %v7569_v55  ;;  %v7678_v55 = vld [vmem:[#allocation9 + $0x6e4] ss:$16 sps:$4 sm:$0xff]  }
  0xe5   : > { %1026 = vmatprep.subr.bf16.mxu0 %v7572_v57  ;;  %v7590_v57 = vld [vmem:[#allocation5 + $0x164] ss:$8 sps:$4 sm:$0xff]   ;;  %3165 = vmatprep.subr.bf16.mxu1 %v7678_v55 }
  0xe6   : > { %3166 = vmatpush1.bf16.msra.mxu1 %v7680_v58  ;;  %v7683_v55 = vld [vmem:[#allocation9 + $0x1a4] ss:$16 sps:$4 sm:$0xff]   ;;  %v7692_v58 = vld [vmem:[#allocation9 + $0x720] ss:$16 sps:$4 sm:$0xff]  }
  0xe7   : > { %986 = vmatmul.mubr.bf16.vlgmr.msra.gmra.mrb[0].mxu0 %v553_v4  ;;  %v7596_v4 = vld [vmem:[#allocation5 + $0x184] ss:$8 sps:$4 sm:$0xff]   ;;  %3167 = vmatprep.subr.bf16.mxu1 %v7684_v59 }
  0xe8   : > { %1027 = vmatpush1.bf16.msra.mxu0 %v7570_v3  ;;  %6433 = vmatprep.mubr.msk.bf16.mxu0 %vm8928_vm5, %v6432_v6  ;;  %v7591_v3 = vld [vmem:[#allocation5 + $0x170] ss:$8 sps:$4 sm:$0xff]   ;;  %v7599_v6 = vld [vmem:[#allocation5 + $0x194] ss:$8 sps:$4 sm:$0xff]  }
  0xe9   : > { %1028 = vmatprep.subr.bf16.mxu0 %v7575_v5  ;;  %v7594_v5 = vld [vmem:[#allocation5 + $0x180] ss:$8 sps:$4 sm:$0xff]  }
  0xea   : > { %3168 = vmatpush1.bf16.msra.mxu1 %v7686_v2  ;;  %v7696_v59 = vld [vmem:[#allocation9 + $0x744] ss:$16 sps:$4 sm:$0xff]   ;;  %v7704_v2 = vld [vmem:[#allocation9 + $0x760] ss:$16 sps:$4 sm:$0xff]  }
  0xec   : > { %1029 = vmatpush1.bf16.msra.mxu0 %v7573_v10  ;;  %v7603_v10 = vld [vmem:[#allocation5 + $0x1b0] ss:$8 sps:$4 sm:$0xff]  }
  0xed   : > { %1030 = vmatprep.subr.bf16.mxu0 %v7578_v14  ;;  %v7611_v14 = vld [vmem:[#allocation5 + $0x1d4] ss:$8 sps:$4 sm:$0xff]  }
  0xef   : > { %996 = vmatmul.mubr.bf16.gmra.mrb[4].mxu0 %v554_v28  ;;  %v7620_v28 = vld [vmem:[#allocation9 + $0x4] ss:$16 sps:$4 sm:$0xff]  }
  0xf0   : > { %1031 = vmatpush1.bf16.msra.mxu0 %v7576_v27  ;;  %6436 = vmatprep.mubr.msk.bf16.mxu0 %vm8944_vm8, %v6435_v33  ;;  %v7615_v27 = vld [vmem:[#allocation5 + $0x1f0] ss:$8 sps:$4 sm:$0xff]   ;;  %v6444_v33 = vpack.c.bf16 %v8934_v16, %v8914_v61 }
  0xf1   : > { %1032 = vmatprep.subr.bf16.mxu0 %v7581_v30  ;;  %v7623_v30 = vld [vmem:[#allocation9 + $0x24] ss:$16 sps:$4 sm:$0xff]   ;;  %v7627_v61 = vld [vmem:[#allocation9 + $0x60] ss:$16 sps:$4 sm:$0xff]  }
  0xf2   : > { %v7635_v16 = vld [vmem:[#allocation9 + $0xa4] ss:$16 sps:$4 sm:$0xff]  }
  0xf4   : > { %1033 = vmatpush1.bf16.msra.mxu0 %v7579_v37  ;;  %v7624_v37 = vld [vmem:[#allocation9 + $0x40] ss:$16 sps:$4 sm:$0xff]  }
  0xf5   : > { %1034 = vmatprep.subr.bf16.mxu0 %v7584_v39  ;;  %v6447_v39 = vpack.c.bf16 %v8950_v44, %v8936_v17  ;;  %v7633_v17 = vld [vmem:[#allocation9 + $0xa0] ss:$16 sps:$4 sm:$0xff]  }
  0xf7   : > { %1006 = vmatmul.mubr.bf16.gmra.mrb[8].mxu0 %v555_v50  ;;  %v7663_v50 = vld [vmem:[#allocation9 + $0x140] ss:$16 sps:$4 sm:$0xff]  }
  0xf8   : > { %1035 = vmatpush1.bf16.msra.mxu0 %v7582_v47  ;;  %6439 = vmatprep.mubr.msk.bf16.mxu0 %vm8956_vm11, %v6438_v53  ;;  %v7645_v47 = vld [vmem:[#allocation9 + $0xe0] ss:$16 sps:$4 sm:$0xff]   ;;  %v7677_v53 = vld [vmem:[#allocation9 + $0x184] ss:$16 sps:$4 sm:$0xff]  }
  0xf9   : > { %1036 = vmatprep.subr.bf16.mxu0 %v7587_v49  ;;  %v7665_v49 = vld [vmem:[#allocation9 + $0x144] ss:$16 sps:$4 sm:$0xff]  }
  0xfc   : > { %1037 = vmatpush1.bf16.msra.mxu0 %v7585_v56  ;;  %v7681_v56 = vld [vmem:[#allocation9 + $0x1a0] ss:$16 sps:$4 sm:$0xff]  }
  0xfd   : > { %1038 = vmatprep.subr.bf16.mxu0 %v7590_v57  ;;  %v7690_v57 = vld [vmem:[#allocation9 + $0x724] ss:$16 sps:$4 sm:$0xff]  }
  0xfe   : > { %3169 = vmatprep.subr.bf16.mxu1 %v7690_v57 }
  0xff   : > { %1016 = vmatmul.mubr.bf16.gmra.mrb[12].mxu0 %v556_v0  ;;  %3170 = vmatpush1.bf16.msra.mxu1 %v7692_v58  ;;  %v7702_v0 = vld [vmem:[#allocation9 + $0x764] ss:$16 sps:$4 sm:$0xff]  }
 0x100   : > { %1039 = vmatpush1.bf16.msra.mxu0 %v7588_v62  ;;  %6442 = vmatprep.mubr.msk.bf16.mxu0 %vm8889_vm2, %v6441_v1  ;;  %v7698_v62 = vld [vmem:[#allocation9 + $0x740] ss:$16 sps:$4 sm:$0xff]  }
 0x101   : > { %1040 = vmatprep.subr.bf16.mxu0 %v7593_v63  ;;  %3171 = vmatprep.subr.bf16.mxu1 %v7696_v59  ;;  %v7689_v63 = vld [vmem:[#allocation9 + $0x1c4] ss:$16 sps:$4 sm:$0xff]   ;;  %v7687_v1 = vld [vmem:[#allocation9 + $0x1c0] ss:$16 sps:$4 sm:$0xff]  }
 0x103   : > { %3172 = vmatpush1.bf16.msra.mxu1 %v7698_v62 }
 0x104   : > { %1041 = vmatpush1.bf16.msra.mxu0 %v7591_v3  ;;  %3173 = vmatprep.subr.bf16.mxu1 %v7702_v0  ;;  %v7695_v3 = vld [vmem:[#allocation9 + $0x1e4] ss:$16 sps:$4 sm:$0xff]  }
 0x105   : > { %1042 = vmatprep.subr.bf16.mxu0 %v7596_v4  ;;  %v7693_v4 = vld [vmem:[#allocation9 + $0x1e0] ss:$16 sps:$4 sm:$0xff]  }
 0x107   : > { %3174 = vmatpush1.bf16.msra.mxu1 %v7704_v2 }
 0x108   : > { %1043 = vmatpush1.bf16.msra.mxu0 %v7594_v5  ;;  %v7708_v5 = vld [vmem:[#allocation9 + $0x784] ss:$16 sps:$4 sm:$0xff]  }
 0x109   : > { %1044 = vmatprep.subr.bf16.mxu0 %v7599_v6  ;;  %v7710_v6 = vld [vmem:[#allocation9 + $0x780] ss:$16 sps:$4 sm:$0xff]   ;;  %3175 = vmatprep.subr.bf16.mxu1 %v7708_v5 }
 0x10b   : > { %3176 = vmatpush1.bf16.msra.mxu1 %v7710_v6 }
 0x10c   : > { %1045 = vmatpush1.bf16.msra.mxu0 %v7597_v7  ;;  %v7701_v7 = vld [vmem:[#allocation9 + $0x204] ss:$16 sps:$4 sm:$0xff]  }
 0x10d   : > { %1046 = vmatprep.subr.bf16.mxu0 %v7602_v31  ;;  %v7714_v31 = vld [vmem:[#allocation9 + $0x7a4] ss:$16 sps:$4 sm:$0xff]  }
 0x10e   : > { %3177 = vmatprep.subr.bf16.mxu1 %v7714_v31 }
 0x110   : > { %1047 = vmatpush1.bf16.msra.mxu0 %v7600_v60  ;;  %v7716_v60 = vld [vmem:[#allocation9 + $0x7a0] ss:$16 sps:$4 sm:$0xff]  }
 0x111   : > { %1048 = vmatprep.subr.bf16.mxu0 %v7605_v9  ;;  %3178 = vmatpush1.bf16.msra.mxu1 %v7716_v60  ;;  %v7720_v9 = vld [vmem:[#allocation9 + $0x7c4] ss:$16 sps:$4 sm:$0xff]   ;;  %v7711_v60 = vld [vmem:[#allocation9 + $0x240] ss:$16 sps:$4 sm:$0xff]  }
 0x112   : > { %3179 = vmatprep.subr.bf16.mxu1 %v7720_v9 }
 0x114   : > { %1049 = vmatpush1.bf16.msra.mxu0 %v7603_v10  ;;  %v7722_v10 = vld [vmem:[#allocation9 + $0x7c0] ss:$16 sps:$4 sm:$0xff]  }
 0x115   : > { %1050 = vmatprep.subr.bf16.mxu0 %v7608_v11  ;;  %3180 = vmatpush1.bf16.msra.mxu1 %v7722_v10  ;;  %v7726_v11 = vld [vmem:[#allocation9 + $0x7e4] ss:$16 sps:$4 sm:$0xff]  }
 0x116   : > { %3181 = vmatprep.subr.bf16.mxu1 %v7726_v11 }
 0x118   : > { %1051 = vmatpush1.bf16.msra.mxu0 %v7606_v13  ;;  %v7728_v13 = vld [vmem:[#allocation9 + $0x7e0] ss:$16 sps:$4 sm:$0xff]  }
 0x119   : > { %1052 = vmatprep.subr.bf16.mxu0 %v7611_v14  ;;  %3182 = vmatpush1.bf16.msra.mxu1 %v7728_v13  ;;  %v8995_v14 = vsub.s32 0, %v8854_v12 }
 0x11b   : > { %9942 = vst [vmem:[#allocation19_spill] sm:$0xff] %v8995_v14 }
 0x11c   : > { %1053 = vmatpush1.bf16.msra.mxu0 %v7609_v15  ;;  %v621_v15 = vld [vmem:[#allocation7] sm:$0x3] }
 0x11d   : > { %1054 = vmatprep.subr.bf16.mxu0 %v7614_v22  ;;  %v8998_v22 = vsub.s32 1, %v8854_v12 }
 0x11f   : > { %9943 = vst [vmem:[#allocation20_spill] sm:$0xff] %v8998_v22 }
 0x120   : > { %1055 = vmatpush1.bf16.msra.mxu0 %v7612_v23  ;;  %v9001_v23 = vrot.slane %v621_v15, %v8995_v14 }
 0x121   : > { %1056 = vmatprep.subr.bf16.mxu0 %v7617_v24  ;;  %v9004_v24 = vrot.slane %v621_v15, %v8998_v22 }
 0x124   : > { %1057 = vmatpush1.bf16.msra.mxu0 %v7615_v27 }
 0x125   : > { %2932 = vmatprep.subr.bf16.mxu0 %v7620_v28 }
 0x127   : > { %1059 = vmatmul.mubr.bf16.vlgmr.msra.gmra.mrb[0].mxu0 %v536_v25  ;;  %v7630_v25 = vld [vmem:[#allocation9 + $0x80] ss:$16 sps:$4 sm:$0xff]  }
 0x128   : > { %6445 = vmatprep.mubr.msk.bf16.mxu0 %vm8928_vm5, %v6444_v33  ;;  %2933 = vmatpush1.bf16.msra.mxu0 %v7618_v29 }
 0x129   : > { %2934 = vmatprep.subr.bf16.mxu0 %v7623_v30 }
 0x12c   : > { %2935 = vmatpush1.bf16.msra.mxu0 %v7621_v35 }
 0x12d   : > { %2936 = vmatprep.subr.bf16.mxu0 %v7626_v36 }
 0x12f   : > { %1069 = vmatmul.mubr.bf16.gmra.mrb[4].mxu0 %v537_v26  ;;  %v8990_v26 = vld [vmem:[#allocation2 + $0x40] sm:$0xff] }
 0x130   : > { %6448 = vmatprep.mubr.msk.bf16.mxu0 %vm8944_vm8, %v6447_v39  ;;  %2937 = vmatpush1.bf16.msra.mxu0 %v7624_v37  ;;  %v539_v44 = vpack.c.bf16 %v8990_v26, %v8907_v45  ;;  %v7669_v45 = vld [vmem:[#allocation9 + $0x160] ss:$16 sps:$4 sm:$0xff]  }
 0x131   : > { %2938 = vmatprep.subr.bf16.mxu0 %v7629_v38 }
 0x134   : > { %2939 = vmatpush1.bf16.msra.mxu0 %v7627_v61 }
 0x135   : > { %2940 = vmatprep.subr.bf16.mxu0 %v7632_v19 }
 0x137   : > { %1079 = vmatmul.mubr.bf16.gmra.mrb[8].mxu0 %v538_v42  ;;  %v7657_v42 = vld [vmem:[#allocation9 + $0x120] ss:$16 sps:$4 sm:$0xff]  }
 0x138   : > { %6451 = vmatprep.mubr.msk.bf16.mxu0 %vm8956_vm11, %v6450_v43  ;;  %2941 = vmatpush1.bf16.msra.mxu0 %v7630_v25  ;;  %v7699_v43 = vld [vmem:[#allocation9 + $0x200] ss:$16 sps:$4 sm:$0xff]  }
 0x139   : > { %2942 = vmatprep.subr.bf16.mxu0 %v7635_v16 }
 0x13c   : > { %2943 = vmatpush1.bf16.msra.mxu0 %v7633_v17 }
 0x13d   : > { %2944 = vmatprep.subr.bf16.mxu0 %v7641_v20 }
 0x13f   : > { %1089 = vmatmul.mubr.bf16.gmra.mrb[12].mxu0 %v539_v44 }
 0x140   : > { %2945 = vmatpush1.bf16.msra.mxu0 %v7639_v21  ;;  %v7707_v21 = vld [vmem:[#allocation9 + $0x224] ss:$16 sps:$4 sm:$0xff]  }
 0x141   : > { %2946 = vmatprep.subr.bf16.mxu0 %v7647_v46 }
 0x144   : > { %2947 = vmatpush1.bf16.msra.mxu0 %v7645_v47  ;;  %v7705_v47 = vld [vmem:[#allocation9 + $0x220] ss:$16 sps:$4 sm:$0xff]  }
 0x145   : > { %2948 = vmatprep.subr.bf16.mxu0 %v7653_v48 }
 0x148   : > { %2949 = vmatpush1.bf16.msra.mxu0 %v7651_v40 }
 0x149   : > { %2950 = vmatprep.subr.bf16.mxu0 %v7659_v41 }
 0x14c   : > { %2951 = vmatpush1.bf16.msra.mxu0 %v7657_v42  ;;  %v7713_v42 = vld [vmem:[#allocation9 + $0x244] ss:$16 sps:$4 sm:$0xff]  }
 0x14d   : > { %2952 = vmatprep.subr.bf16.mxu0 %v7665_v49 }
 0x150   : > { %2953 = vmatpush1.bf16.msra.mxu0 %v7663_v50 }
 0x151   : > { %2954 = vmatprep.subr.bf16.mxu0 %v7671_v51 }
 0x154   : > { %2955 = vmatpush1.bf16.msra.mxu0 %v7669_v45 }
 0x155   : > { %2956 = vmatprep.subr.bf16.mxu0 %v7677_v53 }
 0x158   : > { %2957 = vmatpush1.bf16.msra.mxu0 %v7675_v54 }
 0x159   : > { %2958 = vmatprep.subr.bf16.mxu0 %v7683_v55 }
 0x15c   : > { %2959 = vmatpush1.bf16.msra.mxu0 %v7681_v56 }
 0x15d   : > { %2960 = vmatprep.subr.bf16.mxu0 %v7689_v63 }
 0x160   : > { %2961 = vmatpush1.bf16.msra.mxu0 %v7687_v1 }
 0x161   : > { %2962 = vmatprep.subr.bf16.mxu0 %v7695_v3 }
 0x164   : > { %2963 = vmatpush1.bf16.msra.mxu0 %v7693_v4 }
 0x165   : > { %3005 = vmatprep.subr.bf16.mxu0 %v7701_v7 }
 0x1fa   : > { %v1060_v27 = vpop.f32.mrb[0].mxu0 }
 0x1fb   : > { %v7160_v28 = vadd.f32 %v1060_v27, %v9001_v23  ;;  %v1062_v29 = vpop.f32.mrb[1].mxu0  ;;  %v7719_v27 = vld [vmem:[#allocation9 + $0x264] ss:$16 sps:$4 sm:$0xff]  }
 0x1fc   : > { %v7161_v30 = vadd.f32 %v1062_v29, %v9004_v24  ;;  %v1064_v33 = vpop.f32.mrb[2].mxu0 }
 0x1fd   : > { %v1099_v35 = vmax.f32 %v7160_v28, 0.0  ;;  %v7162_v36 = vadd.f32 %v1064_v33, %v9001_v23  ;;  %v1066_v37 = vpop.f32.mrb[3].mxu0 }
 0x1fe   : > { %v1100_v38 = vmax.f32 %v7161_v30, 0.0  ;;  %v7163_v39 = vadd.f32 %v1066_v37, %v9004_v24 }
 0x1ff   : > { %1119 = vst [vmem:[#allocation3] sm:$0xff] %v1099_v35  ;;  %v9010_v61 = vmax.f32 %v7162_v36, 0.0 }
 0x200   : > { %1120 = vst [vmem:[#allocation3 + $0x8] sm:$0xff] %v1100_v38  ;;  %v1102_v18 = vmax.f32 %v7163_v39, 0.0 }
 0x201   : > { %1121 = vst [vmem:[#allocation3 + $0x10] sm:$0xff] %v9010_v61  ;;  %v9014_v19 = vpack.c.bf16 %v9010_v61, %v1099_v35  ;;  %v1173_v53 = vrot.slane %v9010_v61, 1 }
 0x202   : > { %1122 = vst [vmem:[#allocation3 + $0x18] sm:$0xff] %v1102_v18  ;;  %v9016_v25 = vpack.c.bf16 %v1102_v18, %v1100_v38  ;;  %v1070_v16 = vpop.f32.mrb[4].mxu0  ;;  %v1176_v51 = vrot.slane %v1102_v18, 1 }
 0x203   : > { %v7164_v17 = vadd.f32 %v1070_v16, %v9001_v23  ;;  %v1072_v20 = vpop.f32.mrb[5].mxu0 }
 0x204   : > { %v7165_v44 = vadd.f32 %v1072_v20, %v9004_v24  ;;  %v1074_v46 = vpop.f32.mrb[6].mxu0  ;;  %2964 = vmatprep.mubr.bf16.mxu0 %v9016_v25 }
 0x205   : > { %v1103_v48 = vmax.f32 %v7164_v17, 0.0  ;;  %v7166_v40 = vadd.f32 %v1074_v46, %v9001_v23  ;;  %v1076_v41 = vpop.f32.mrb[7].mxu0  ;;  %2965 = vmatmul.mubr.bf16.vlgmr.msra.gmra.mrb[16].mxu0 %v9014_v19 }
 0x206   : > { %v1104_v49 = vmax.f32 %v7165_v44, 0.0  ;;  %v7167_v50 = vadd.f32 %v1076_v41, %v9004_v24  ;;  %3006 = vmatpush1.bf16.msra.mxu0 %v7699_v43  ;;  %v1135_v45 = vld [vmem:[#allocation3] sm:$0xfe] }
 0x207   : > { %v1105_v54 = vmax.f32 %v7166_v40, 0.0  ;;  %3007 = vmatprep.subr.bf16.mxu0 %v7707_v21  ;;  %v1293_v55 = vrot.slane %v1103_v48, 1  ;;  %v1136_v56 = vld [vmem:[#allocation3 + $0x8] sm:$0xfe]  ;;  %v1172_v57 = vrot.slane %v1135_v45, 1  ;;  %v9026_v58 = vpack.c.bf16 %v1103_v48, %v9010_v61 }
 0x208   : > { %v1106_v59 = vmax.f32 %v7167_v50, 0.0  ;;  %v1296_v62 = vrot.slane %v1104_v49, 1  ;;  %v1256_v63 = vld [vmem:[#allocation3 + $0x10] sm:$0xfe]  ;;  %v1175_v0 = vrot.slane %v1136_v56, 1  ;;  %v9028_v1 = vpack.c.bf16 %v1104_v49, %v1102_v18 }
 0x209   : > { %v9030_v2 = vpack.c.bf16 %v1105_v54, %v1103_v48  ;;  %v1257_v3 = vld [vmem:[#allocation3 + $0x18] sm:$0xfe]  ;;  %v1292_v4 = vrot.slane %v1256_v63, 1  ;;  %v1298_v5 = vrot.slane %v1105_v54, 1  ;;  %v1174_v6 = vsel %vm1171_vm12, %v1172_v57, %v1173_v53  ;;  %v7717_v21 = vld [vmem:[#allocation9 + $0x260] ss:$16 sps:$4 sm:$0xff]  }
 0x20a   : > { %v9033_v7 = vpack.c.bf16 %v1106_v59, %v1104_v49  ;;  %3008 = vmatpush1.bf16.msra.mxu0 %v7705_v47  ;;  %v1080_v31 = vpop.f32.mrb[8].mxu0  ;;  %v1295_v9 = vrot.slane %v1257_v3, 1  ;;  %v1300_v10 = vrot.slane %v1106_v59, 1  ;;  %v1177_v11 = vsel %vm1171_vm12, %v1175_v0, %v1176_v51  ;;  %v7725_v47 = vld [vmem:[#allocation9 + $0x284] ss:$16 sps:$4 sm:$0xff]  }
 0x20b   : > { %v7168_v13 = vadd.f32 %v1080_v31, %v9001_v23  ;;  %v1082_v15 = vpop.f32.mrb[9].mxu0  ;;  %3009 = vmatprep.subr.bf16.mxu0 %v7713_v42  ;;  %v1294_v28 = vsel %vm1171_vm12, %v1292_v4, %v1293_v55  ;;  %v1299_v29 = vsel %vm1171_vm12, %v1293_v55, %v1298_v5  ;;  %v1181_v30 = vsel %vm1171_vm12, %v1176_v51, %v1296_v62  ;;  %v7723_v57 = vld [vmem:[#allocation9 + $0x280] ss:$16 sps:$4 sm:$0xff]  }
 0x20c   : > { %v7169_v33 = vadd.f32 %v1082_v15, %v9004_v24  ;;  %v1084_v35 = vpop.f32.mrb[10].mxu0  ;;  %2974 = vmatprep.mubr.bf16.mxu0 %v9033_v7  ;;  %v1297_v36 = vsel %vm1171_vm12, %v1295_v9, %v1296_v62  ;;  %v1301_v37 = vsel %vm1171_vm12, %v1296_v62, %v1300_v10  ;;  %v9044_v38 = vpack.c.bf16 %v1299_v29, %v1294_v28  ;;  %v1273_v28 = vld [vmem:[#allocation3 + $0x98] sm:$0x1] }
 0x20d   : > { %v1107_v39 = vmax.f32 %v7168_v13, 0.0  ;;  %v7170_v61 = vadd.f32 %v1084_v35, %v9001_v23  ;;  %v1086_v18 = vpop.f32.mrb[11].mxu0  ;;  %2975 = vmatmul.mubr.bf16.gmra.mrb[20].mxu0 %v9030_v2  ;;  %v9048_v16 = vpack.c.bf16 %v1301_v37, %v1297_v36  ;;  %v9050_v43 = vpack.c.bf16 %v1181_v30, %v1177_v11  ;;  %v1152_v36 = vld [vmem:[#allocation3 + $0x88] sm:$0x1] }
 0x20e   : > { %v1108_v17 = vmax.f32 %v7169_v33, 0.0  ;;  %v7171_v20 = vadd.f32 %v1086_v18, %v9004_v24  ;;  %3010 = vmatpush1.bf16.msra.mxu0 %v7711_v60  ;;  %v1179_v44 = vsel %vm1171_vm12, %v1173_v53, %v1293_v55  ;;  %v7729_v33 = vld [vmem:[#allocation9 + $0x2a0] ss:$16 sps:$4 sm:$0xff]   ;;  %v1320_v35 = vrot.slane %v8990_v26, 1 }
 0x20f   : > { %v1109_v46 = vmax.f32 %v7170_v61, 0.0  ;;  %3011 = vmatprep.subr.bf16.mxu0 %v7719_v27  ;;  %6734 = vmatprep.mubr.msk.bf16.mxu1 %vm8889_vm2, %v9048_v16  ;;  %v1302_v48 = vrot.slane %v1107_v39, 1  ;;  %v9057_v40 = vpack.c.bf16 %v1179_v44, %v1174_v6  ;;  %v9059_v41 = vpack.c.bf16 %v1107_v39, %v1105_v54 }
 0x210   : > { %v1110_v42 = vmax.f32 %v7171_v20, 0.0  ;;  %6737 = vmatmul.mubr.msk.bf16.vlgmr.msra.gmra.mrb[0].mxu1 %vm8889_vm2, %v9044_v38  ;;  %v1304_v49 = vrot.slane %v1108_v17, 1  ;;  %v9064_v50 = vpack.c.bf16 %v1108_v17, %v1106_v59  ;;  %v7731_v59 = vld [vmem:[#allocation9 + $0x2a4] ss:$16 sps:$4 sm:$0xff]  }
 0x211   : > { %v9066_v51 = vpack.c.bf16 %v1109_v46, %v1107_v39  ;;  %v1303_v45 = vsel %vm1171_vm12, %v1298_v5, %v1302_v48  ;;  %v1306_v53 = vrot.slane %v1109_v46, 1  ;;  %v7734_v39 = vld [vmem:[#allocation9 + $0x2c4] ss:$16 sps:$4 sm:$0xff]  }
 0x212   : > { %v9069_v55 = vpack.c.bf16 %v1110_v42, %v1108_v17  ;;  %3012 = vmatpush1.bf16.msra.mxu0 %v7717_v21  ;;  %v1090_v56 = vpop.f32.mrb[12].mxu0  ;;  %v1305_v54 = vsel %vm1171_vm12, %v1300_v10, %v1304_v49  ;;  %v1308_v62 = vrot.slane %v1110_v42, 1  ;;  %v9072_v63 = vpack.c.bf16 %v1303_v45, %v1299_v29  ;;  %v1151_v10 = vld [vmem:[#allocation3 + $0x80] sm:$0x1] }
 0x213   : > { %v7172_v0 = vadd.f32 %v1090_v56, %v9001_v23  ;;  %v1092_v3 = vpop.f32.mrb[13].mxu0  ;;  %3013 = vmatprep.subr.bf16.mxu0 %v7725_v47  ;;  %v1307_v4 = vsel %vm1171_vm12, %v1302_v48, %v1306_v53  ;;  %v9076_v6 = vpack.c.bf16 %v1305_v54, %v1301_v37  ;;  %v1202_v61 = vrot.slane %v1151_v10, 1 }
 0x214   : > { %v7173_v5 = vadd.f32 %v1092_v3, %v9004_v24  ;;  %v1094_v31 = vpop.f32.mrb[14].mxu0  ;;  %2984 = vmatprep.mubr.bf16.mxu0 %v9069_v55  ;;  %v1309_v60 = vsel %vm1171_vm12, %v1304_v49, %v1308_v62  ;;  %v9081_v9 = vpack.c.bf16 %v1307_v4, %v1303_v45  ;;  %v1204_v48 = vrot.slane %v1152_v36, 1  ;;  %v7732_v49 = vld [vmem:[#allocation9 + $0x2c0] ss:$16 sps:$4 sm:$0xff]  }
 0x215   : > { %v1111_v11 = vmax.f32 %v7172_v0, 0.0  ;;  %v7174_v13 = vadd.f32 %v1094_v31, %v9001_v23  ;;  %v1096_v15 = vpop.f32.mrb[15].mxu0  ;;  %2985 = vmatmul.mubr.bf16.gmra.mrb[24].mxu0 %v9066_v51  ;;  %v9085_v27 = vpack.c.bf16 %v1309_v60, %v1305_v54 }
 0x216   : > { %v1112_v29 = vmax.f32 %v7173_v5, 0.0  ;;  %v7175_v30 = vadd.f32 %v1096_v15, %v9004_v24  ;;  %3014 = vmatpush1.bf16.msra.mxu0 %v7723_v57  ;;  %v1324_v24 = vrot.slane %v1273_v28, 1  ;;  %v7740_v15 = vld [vmem:[#allocation9 + $0x304] ss:$16 sps:$4 sm:$0xff]  }
 0x217   : > { %v9089_v37 = vmax.f32 %v7174_v13, 0.0  ;;  %3015 = vmatprep.subr.bf16.mxu0 %v7731_v59  ;;  %6740 = vmatprep.mubr.msk.bf16.mxu1 %vm8928_vm5, %v9085_v27  ;;  %v1310_v23 = vrot.slane %v1111_v11, 1  ;;  %v9094_v18 = vpack.c.bf16 %v1111_v11, %v1109_v46 }
 0x218   : > { %v9096_v17 = vmax.f32 %v7175_v30, 0.0  ;;  %6743 = vmatmul.mubr.msk.bf16.gmra.mrb[4].mxu1 %vm8928_vm5, %v9081_v9  ;;  %v1312_v26 = vrot.slane %v1112_v29, 1  ;;  %v9101_v20 = vpack.c.bf16 %v1112_v29, %v1110_v42  ;;  %v7737_v42 = vld [vmem:[#allocation9 + $0x2e4] ss:$16 sps:$4 sm:$0xff]   ;;  %v1325_v5 = vsel %vm1171_vm12, %v1320_v35, %v1324_v24  ;;  %v7738_v30 = vld [vmem:[#allocation9 + $0x300] ss:$16 sps:$4 sm:$0xff]  }
 0x219   : > { %v9104_v21 = vpack.c.bf16 %v9089_v37, %v1111_v11  ;;  %v1311_v44 = vsel %vm1171_vm12, %v1306_v53, %v1310_v23  ;;  %v1314_v47 = vrot.slane %v9089_v37, 1  ;;  %v7735_v11 = vld [vmem:[#allocation9 + $0x2e0] ss:$16 sps:$4 sm:$0xff]  }
 0x21a   : > { %v9109_v46 = vpack.c.bf16 %v9096_v17, %v1112_v29  ;;  %3016 = vmatpush1.bf16.msra.mxu0 %v7729_v33  ;;  %v1313_v45 = vsel %vm1171_vm12, %v1308_v62, %v1312_v26  ;;  %v1316_v56 = vrot.slane %v9096_v17, 1  ;;  %v9113_v57 = vpack.c.bf16 %v1311_v44, %v1307_v4  ;;  %v1272_v4 = vld [vmem:[#allocation3 + $0x90] sm:$0x1]  ;;  %v7743_v33 = vld [vmem:[#allocation9 + $0x324] ss:$16 sps:$4 sm:$0xff]  }
 0x21b   : > { %3017 = vmatprep.subr.bf16.mxu0 %v7734_v39  ;;  %v1315_v54 = vsel %vm1171_vm12, %v1310_v23, %v1314_v47  ;;  %v9116_v0 = vpack.c.bf16 %v1313_v45, %v1309_v60  ;;  %v1203_v53 = vsel %vm1171_vm12, %v1314_v47, %v1202_v61  ;;  %v1322_v29 = vrot.slane %v1272_v4, 1  ;;  %v7741_v23 = vld [vmem:[#allocation9 + $0x320] ss:$16 sps:$4 sm:$0xff]  }
 0x21c   : > { %2994 = vmatprep.mubr.bf16.mxu0 %v9109_v46  ;;  %v1317_v3 = vsel %vm1171_vm12, %v1312_v26, %v1316_v56  ;;  %v9121_v59 = vpack.c.bf16 %v1315_v54, %v1311_v44  ;;  %v1321_v62 = vsel %vm1171_vm12, %v1316_v56, %v1320_v35  ;;  %v1205_v60 = vsel %vm1171_vm12, %v1316_v56, %v1204_v48  ;;  %v7746_v26 = vld [vmem:[#allocation9 + $0x344] ss:$16 sps:$4 sm:$0xff]   ;;  %v7744_v24 = vld [vmem:[#allocation9 + $0x340] ss:$16 sps:$4 sm:$0xff]  }
 0x21d   : > { %2995 = vmatmul.mubr.bf16.gmra.mrb[28].mxu0 %v9104_v21  ;;  %v9126_v31 = vpack.c.bf16 %v1317_v3, %v1313_v45  ;;  %v9129_v10 = vpack.c.bf16 %v1203_v53, %v1315_v54  ;;  %v9134_v13 = vpack.c.bf16 %v1205_v60, %v1317_v3  ;;  %v9139_v28 = vpack.c.bf16 %v1325_v5, %v1321_v62  ;;  %v7749_v44 = vld [vmem:[#allocation9 + $0x364] ss:$16 sps:$4 sm:$0xff]   ;;  %v7747_v48 = vld [vmem:[#allocation9 + $0x360] ss:$16 sps:$4 sm:$0xff]  }
 0x21e   : > { %3018 = vmatpush1.bf16.msra.mxu0 %v7732_v49  ;;  %6710 = vmatprep.mubr.msk.bf16.mxu0 %vm8889_vm2, %v9050_v43  ;;  %v1319_v36 = vsel %vm1171_vm12, %v1314_v47, %v1320_v35  ;;  %v1323_v39 = vsel %vm1171_vm12, %v1320_v35, %v1322_v29  ;;  %v7752_v47 = vld [vmem:[#allocation9 + $0x384] ss:$16 sps:$4 sm:$0xff]   ;;  %v7750_v35 = vld [vmem:[#allocation9 + $0x380] ss:$16 sps:$4 sm:$0xff]  }
 0x21f   : > { %3019 = vmatprep.subr.bf16.mxu0 %v7737_v42  ;;  %6746 = vmatprep.mubr.msk.bf16.mxu1 %vm8944_vm8, %v9126_v31  ;;  %v9149_v61 = vpack.c.bf16 %v1323_v39, %v1319_v36  ;;  %v7755_v49 = vld [vmem:[#allocation9 + $0x3a4] ss:$16 sps:$4 sm:$0xff]   ;;  %v7753_v45 = vld [vmem:[#allocation9 + $0x3a0] ss:$16 sps:$4 sm:$0xff]  }
 0x220   : > { %6749 = vmatmul.mubr.msk.bf16.gmra.mrb[8].mxu1 %vm8944_vm8, %v9121_v59  ;;  %v7758_v56 = vld [vmem:[#allocation9 + $0x3c4] ss:$16 sps:$4 sm:$0xff]   ;;  %v7756_v42 = vld [vmem:[#allocation9 + $0x3c0] ss:$16 sps:$4 sm:$0xff]  }
 0x221   : > { %6752 = vmatprep.mubr.msk.bf16.mxu1 %vm8956_vm11, %v9139_v28  ;;  %v7761_v54 = vld [vmem:[#allocation9 + $0x3e4] ss:$16 sps:$4 sm:$0xff]   ;;  %v7759_v53 = vld [vmem:[#allocation9 + $0x3e0] ss:$16 sps:$4 sm:$0xff]  }
 0x222   : > { %3020 = vmatpush1.bf16.msra.mxu0 %v7735_v11  ;;  %v7764_v3 = vld [vmem:[#allocation9 + $0x404] ss:$16 sps:$4 sm:$0xff]   ;;  %v7762_v62 = vld [vmem:[#allocation9 + $0x400] ss:$16 sps:$4 sm:$0xff]  }
 0x223   : > { %3021 = vmatprep.subr.bf16.mxu0 %v7740_v15  ;;  %v7767_v5 = vld [vmem:[#allocation9 + $0x424] ss:$16 sps:$4 sm:$0xff]   ;;  %v7765_v4 = vld [vmem:[#allocation9 + $0x420] ss:$16 sps:$4 sm:$0xff]  }
 0x224   : > { %v7770_v60 = vld [vmem:[#allocation9 + $0x444] ss:$16 sps:$4 sm:$0xff]   ;;  %v7768_v11 = vld [vmem:[#allocation9 + $0x440] ss:$16 sps:$4 sm:$0xff]  }
 0x225   : > { %v7773_v15 = vld [vmem:[#allocation9 + $0x464] ss:$16 sps:$4 sm:$0xff]   ;;  %v7771_v29 = vld [vmem:[#allocation9 + $0x460] ss:$16 sps:$4 sm:$0xff]  }
 0x226   : > { %3022 = vmatpush1.bf16.msra.mxu0 %v7738_v30  ;;  %v7776_v30 = vld [vmem:[#allocation9 + $0x484] ss:$16 sps:$4 sm:$0xff]   ;;  %v7777_v39 = vld [vmem:[#allocation9 + $0x4a0] ss:$16 sps:$4 sm:$0xff]  }
 0x227   : > { %3023 = vmatprep.subr.bf16.mxu0 %v7743_v33  ;;  %v7774_v33 = vld [vmem:[#allocation9 + $0x480] ss:$16 sps:$4 sm:$0xff]   ;;  %v7779_v36 = vld [vmem:[#allocation9 + $0x4a4] ss:$16 sps:$4 sm:$0xff]  }
 0x228   : > { %6755 = vmatmul.mubr.msk.bf16.gmra.mrb[12].mxu1 %vm8956_vm11, %v9149_v61 }
 0x22a   : > { %3024 = vmatpush1.bf16.msra.mxu0 %v7741_v23  ;;  %v7782_v23 = vld [vmem:[#allocation9 + $0x4c4] ss:$16 sps:$4 sm:$0xff]  }
 0x22b   : > { %3025 = vmatprep.subr.bf16.mxu0 %v7746_v26  ;;  %v7780_v26 = vld [vmem:[#allocation9 + $0x4c0] ss:$16 sps:$4 sm:$0xff]  }
 0x22e   : > { %3026 = vmatpush1.bf16.msra.mxu0 %v7744_v24  ;;  %v7785_v24 = vld [vmem:[#allocation9 + $0x4e4] ss:$16 sps:$4 sm:$0xff]  }
 0x22f   : > { %3027 = vmatprep.subr.bf16.mxu0 %v7749_v44  ;;  %v7783_v44 = vld [vmem:[#allocation9 + $0x4e0] ss:$16 sps:$4 sm:$0xff]  }
 0x232   : > { %3028 = vmatpush1.bf16.msra.mxu0 %v7747_v48  ;;  %v7788_v48 = vld [vmem:[#allocation9 + $0x504] ss:$16 sps:$4 sm:$0xff]  }
 0x233   : > { %3029 = vmatprep.subr.bf16.mxu0 %v7752_v47  ;;  %v7786_v47 = vld [vmem:[#allocation9 + $0x500] ss:$16 sps:$4 sm:$0xff]  }
 0x236   : > { %3030 = vmatpush1.bf16.msra.mxu0 %v7750_v35  ;;  %v7791_v35 = vld [vmem:[#allocation9 + $0x524] ss:$16 sps:$4 sm:$0xff]  }
 0x237   : > { %3031 = vmatprep.subr.bf16.mxu0 %v7755_v49  ;;  %v7789_v49 = vld [vmem:[#allocation9 + $0x520] ss:$16 sps:$4 sm:$0xff]  }
 0x23a   : > { %3032 = vmatpush1.bf16.msra.mxu0 %v7753_v45  ;;  %v7794_v45 = vld [vmem:[#allocation9 + $0x544] ss:$16 sps:$4 sm:$0xff]  }
 0x23b   : > { %3033 = vmatprep.subr.bf16.mxu0 %v7758_v56  ;;  %v7792_v56 = vld [vmem:[#allocation9 + $0x540] ss:$16 sps:$4 sm:$0xff]  }
 0x23e   : > { %3034 = vmatpush1.bf16.msra.mxu0 %v7756_v42  ;;  %v7797_v42 = vld [vmem:[#allocation9 + $0x564] ss:$16 sps:$4 sm:$0xff]  }
 0x23f   : > { %3035 = vmatprep.subr.bf16.mxu0 %v7761_v54  ;;  %v7795_v54 = vld [vmem:[#allocation9 + $0x560] ss:$16 sps:$4 sm:$0xff]  }
 0x242   : > { %3036 = vmatpush1.bf16.msra.mxu0 %v7759_v53  ;;  %v7800_v53 = vld [vmem:[#allocation9 + $0x584] ss:$16 sps:$4 sm:$0xff]  }
 0x243   : > { %3078 = vmatprep.subr.bf16.mxu0 %v7764_v3  ;;  %v7798_v3 = vld [vmem:[#allocation9 + $0x580] ss:$16 sps:$4 sm:$0xff]  }
 0x245   : > { %6713 = vmatmul.mubr.msk.bf16.vlgmr.msra.gmra.mrb[16].mxu0 %vm8889_vm2, %v9057_v40 }
 0x246   : > { %6716 = vmatprep.mubr.msk.bf16.mxu0 %vm8928_vm5, %v9076_v6  ;;  %3079 = vmatpush1.bf16.msra.mxu0 %v7762_v62  ;;  %v7803_v62 = vld [vmem:[#allocation9 + $0x5a4] ss:$16 sps:$4 sm:$0xff]  }
 0x247   : > { %3080 = vmatprep.subr.bf16.mxu0 %v7767_v5  ;;  %v7801_v5 = vld [vmem:[#allocation9 + $0x5a0] ss:$16 sps:$4 sm:$0xff]  }
 0x24a   : > { %3081 = vmatpush1.bf16.msra.mxu0 %v7765_v4  ;;  %v7806_v4 = vld [vmem:[#allocation9 + $0x5c4] ss:$16 sps:$4 sm:$0xff]  }
 0x24b   : > { %3082 = vmatprep.subr.bf16.mxu0 %v7770_v60  ;;  %v7804_v60 = vld [vmem:[#allocation9 + $0x5c0] ss:$16 sps:$4 sm:$0xff]  }
 0x24d   : > { %6719 = vmatmul.mubr.msk.bf16.gmra.mrb[20].mxu0 %vm8928_vm5, %v9072_v63 }
 0x24e   : > { %6722 = vmatprep.mubr.msk.bf16.mxu0 %vm8944_vm8, %v9116_v0  ;;  %3083 = vmatpush1.bf16.msra.mxu0 %v7768_v11  ;;  %v7809_v11 = vld [vmem:[#allocation9 + $0x5e4] ss:$16 sps:$4 sm:$0xff]  }
 0x24f   : > { %3084 = vmatprep.subr.bf16.mxu0 %v7773_v15  ;;  %v7807_v15 = vld [vmem:[#allocation9 + $0x5e0] ss:$16 sps:$4 sm:$0xff]  }
 0x252   : > { %3085 = vmatpush1.bf16.msra.mxu0 %v7771_v29  ;;  %v7812_v29 = vld [vmem:[#allocation9 + $0xc] ss:$16 sps:$4 sm:$0xff]  }
 0x253   : > { %3086 = vmatprep.subr.bf16.mxu0 %v7776_v30  ;;  %v7810_v30 = vld [vmem:[#allocation9 + $0x8] ss:$16 sps:$4 sm:$0xff]  }
 0x255   : > { %6725 = vmatmul.mubr.msk.bf16.gmra.mrb[24].mxu0 %vm8944_vm8, %v9113_v57 }
 0x256   : > { %6728 = vmatprep.mubr.msk.bf16.mxu0 %vm8956_vm11, %v9134_v13  ;;  %3087 = vmatpush1.bf16.msra.mxu0 %v7774_v33  ;;  %v7815_v33 = vld [vmem:[#allocation9 + $0x2c] ss:$16 sps:$4 sm:$0xff]  }
 0x257   : > { %3088 = vmatprep.subr.bf16.mxu0 %v7779_v36  ;;  %v7813_v36 = vld [vmem:[#allocation9 + $0x28] ss:$16 sps:$4 sm:$0xff]  }
 0x25a   : > { %3089 = vmatpush1.bf16.msra.mxu0 %v7777_v39  ;;  %v7818_v39 = vld [vmem:[#allocation9 + $0x4c] ss:$16 sps:$4 sm:$0xff]  }
 0x25b   : > { %3090 = vmatprep.subr.bf16.mxu0 %v7782_v23  ;;  %v7816_v23 = vld [vmem:[#allocation9 + $0x48] ss:$16 sps:$4 sm:$0xff]  }
 0x25d   : > { %6731 = vmatmul.mubr.msk.bf16.gmra.mrb[28].mxu0 %vm8956_vm11, %v9129_v10 }
 0x25e   : > { %3091 = vmatpush1.bf16.msra.mxu0 %v7780_v26  ;;  %3110 = vmatprep.mubr.bf16.mxu0 %v9028_v1  ;;  %v7821_v26 = vld [vmem:[#allocation9 + $0x6c] ss:$16 sps:$4 sm:$0xff]  }
 0x25f   : > { %3092 = vmatprep.subr.bf16.mxu0 %v7785_v24  ;;  %v7819_v24 = vld [vmem:[#allocation9 + $0x68] ss:$16 sps:$4 sm:$0xff]  }
 0x262   : > { %3093 = vmatpush1.bf16.msra.mxu0 %v7783_v44  ;;  %v7824_v44 = vld [vmem:[#allocation9 + $0x8c] ss:$16 sps:$4 sm:$0xff]  }
 0x263   : > { %3094 = vmatprep.subr.bf16.mxu0 %v7788_v48  ;;  %v7822_v48 = vld [vmem:[#allocation9 + $0x88] ss:$16 sps:$4 sm:$0xff]  }
 0x266   : > { %3095 = vmatpush1.bf16.msra.mxu0 %v7786_v47  ;;  %v7827_v47 = vld [vmem:[#allocation9 + $0xac] ss:$16 sps:$4 sm:$0xff]  }
 0x267   : > { %3096 = vmatprep.subr.bf16.mxu0 %v7791_v35  ;;  %v8419_v35 = vld [vmem:[#allocation2 + $0x40] sm:$0xff] }
 0x26a   : > { %3097 = vmatpush1.bf16.msra.mxu0 %v7789_v49  ;;  %v9181_v49 = vpack.c.bf16 %v8419_v35, %v9096_v17  ;;  %v7831_v17 = vld [vmem:[#allocation9 + $0xe8] ss:$16 sps:$4 sm:$0xff]  }
 0x26b   : > { %3098 = vmatprep.subr.bf16.mxu0 %v7794_v45  ;;  %v7825_v45 = vld [vmem:[#allocation9 + $0xa8] ss:$16 sps:$4 sm:$0xff]  }
 0x26e   : > { %3099 = vmatpush1.bf16.msra.mxu0 %v7792_v56  ;;  %v7830_v56 = vld [vmem:[#allocation9 + $0xcc] ss:$16 sps:$4 sm:$0xff]  }
 0x26f   : > { %3100 = vmatprep.subr.bf16.mxu0 %v7797_v42  ;;  %v7828_v42 = vld [vmem:[#allocation9 + $0xc8] ss:$16 sps:$4 sm:$0xff]  }
 0x272   : > { %3101 = vmatpush1.bf16.msra.mxu0 %v7795_v54  ;;  %v9186_v54 = vpack.c.bf16 %v8419_v35, %v9089_v37  ;;  %v7837_v37 = vld [vmem:[#allocation9 + $0x128] ss:$16 sps:$4 sm:$0xff]  }
 0x273   : > { %3102 = vmatprep.subr.bf16.mxu0 %v7800_v53  ;;  %v7833_v53 = vld [vmem:[#allocation9 + $0xec] ss:$16 sps:$4 sm:$0xff]   ;;  %v7959_v35 = vld [vmem:[#allocation12 + $0x44] ss:$8 sps:$4 sm:$0xff]  }
 0x276   : > { %3103 = vmatpush1.bf16.msra.mxu0 %v7798_v3  ;;  %v7836_v3 = vld [vmem:[#allocation9 + $0x10c] ss:$16 sps:$4 sm:$0xff]  }
 0x277   : > { %3104 = vmatprep.subr.bf16.mxu0 %v7803_v62  ;;  %v7834_v62 = vld [vmem:[#allocation9 + $0x108] ss:$16 sps:$4 sm:$0xff]  }
 0x27a   : > { %3105 = vmatpush1.bf16.msra.mxu0 %v7801_v5  ;;  %v7839_v5 = vld [vmem:[#allocation9 + $0x12c] ss:$16 sps:$4 sm:$0xff]  }
 0x27b   : > { %3106 = vmatprep.subr.bf16.mxu0 %v7806_v4  ;;  %v7933_v4 = vld [vmem:[#allocation12] ss:$8 sps:$4 sm:$0xff]  }
 0x27e   : > { %3107 = vmatpush1.bf16.msra.mxu0 %v7804_v60  ;;  %v7935_v60 = vld [vmem:[#allocation12 + $0x4] ss:$8 sps:$4 sm:$0xff]  }
 0x27f   : > { %3108 = vmatprep.subr.bf16.mxu0 %v7809_v11  ;;  %5612 = vmatprep.subr.bf16.mxu1 %v7935_v60  ;;  %v7842_v11 = vld [vmem:[#allocation9 + $0x14c] ss:$16 sps:$4 sm:$0xff]  }
 0x280   : > { %5613 = vmatpush1.bf16.msra.mxu1 %v7933_v4  ;;  %v7855_v4 = vld [vmem:[#allocation9 + $0x1e8] ss:$16 sps:$4 sm:$0xff]   ;;  %v7860_v60 = vld [vmem:[#allocation9 + $0x20c] ss:$16 sps:$4 sm:$0xff]  }
 0x282   : > { %3109 = vmatpush1.bf16.msra.mxu0 %v7807_v15  ;;  %v7939_v15 = vld [vmem:[#allocation12 + $0x10] ss:$8 sps:$4 sm:$0xff]  }
 0x283   : > { %3224 = vmatprep.subr.bf16.mxu0 %v7812_v29  ;;  %v7941_v29 = vld [vmem:[#allocation12 + $0x14] ss:$8 sps:$4 sm:$0xff]  }
 0x284   : > { %5614 = vmatprep.subr.bf16.mxu1 %v7941_v29  ;;  %v7863_v29 = vld [vmem:[#allocation9 + $0x22c] ss:$16 sps:$4 sm:$0xff]  }
 0x285   : > { %3111 = vmatmul.mubr.bf16.vlgmr.msra.gmra.mrb[16].mxu0 %v9026_v58  ;;  %5615 = vmatpush1.bf16.msra.mxu1 %v7939_v15  ;;  %v7858_v15 = vld [vmem:[#allocation9 + $0x208] ss:$16 sps:$4 sm:$0xff]  }
 0x286   : > { %3120 = vmatprep.mubr.bf16.mxu0 %v9064_v50  ;;  %3225 = vmatpush1.bf16.msra.mxu0 %v7810_v30  ;;  %v7845_v30 = vld [vmem:[#allocation9 + $0x16c] ss:$16 sps:$4 sm:$0xff]  }
 0x287   : > { %3226 = vmatprep.subr.bf16.mxu0 %v7815_v33  ;;  %v7945_v33 = vld [vmem:[#allocation12 + $0x20] ss:$8 sps:$4 sm:$0xff]  }
 0x28a   : > { %3227 = vmatpush1.bf16.msra.mxu0 %v7813_v36  ;;  %v7947_v36 = vld [vmem:[#allocation12 + $0x24] ss:$8 sps:$4 sm:$0xff]  }
 0x28b   : > { %3228 = vmatprep.subr.bf16.mxu0 %v7818_v39  ;;  %5616 = vmatprep.subr.bf16.mxu1 %v7947_v36  ;;  %v7843_v39 = vld [vmem:[#allocation9 + $0x168] ss:$16 sps:$4 sm:$0xff]   ;;  %v7866_v36 = vld [vmem:[#allocation9 + $0x24c] ss:$16 sps:$4 sm:$0xff]  }
 0x28c   : > { %5617 = vmatpush1.bf16.msra.mxu1 %v7945_v33  ;;  %v7983_v33 = vld [vmem:[#allocation12 + $0x84] ss:$8 sps:$4 sm:$0xff]  }
 0x28d   : > { %3121 = vmatmul.mubr.bf16.gmra.mrb[20].mxu0 %v9059_v41 }
 0x28e   : > { %3130 = vmatprep.mubr.bf16.mxu0 %v9101_v20  ;;  %3229 = vmatpush1.bf16.msra.mxu0 %v7816_v23  ;;  %v7848_v23 = vld [vmem:[#allocation9 + $0x18c] ss:$16 sps:$4 sm:$0xff]  }
 0x28f   : > { %3230 = vmatprep.subr.bf16.mxu0 %v7821_v26  ;;  %v7951_v26 = vld [vmem:[#allocation12 + $0x30] ss:$8 sps:$4 sm:$0xff]  }
 0x292   : > { %3231 = vmatpush1.bf16.msra.mxu0 %v7819_v24  ;;  %v7953_v24 = vld [vmem:[#allocation12 + $0x34] ss:$8 sps:$4 sm:$0xff]  }
 0x293   : > { %3232 = vmatprep.subr.bf16.mxu0 %v7824_v44  ;;  %5618 = vmatprep.subr.bf16.mxu1 %v7953_v24  ;;  %v7846_v44 = vld [vmem:[#allocation9 + $0x188] ss:$16 sps:$4 sm:$0xff]   ;;  %v7869_v24 = vld [vmem:[#allocation9 + $0x26c] ss:$16 sps:$4 sm:$0xff]  }
 0x294   : > { %5619 = vmatpush1.bf16.msra.mxu1 %v7951_v26  ;;  %v7864_v26 = vld [vmem:[#allocation9 + $0x248] ss:$16 sps:$4 sm:$0xff]  }
 0x295   : > { %3131 = vmatmul.mubr.bf16.gmra.mrb[24].mxu0 %v9094_v18  ;;  %5620 = vmatprep.subr.bf16.mxu1 %v7959_v35  ;;  %v7999_v35 = vld [vmem:[#allocation12 + $0xb0] ss:$8 sps:$4 sm:$0xff]  }
 0x296   : > { %3140 = vmatprep.mubr.bf16.mxu0 %v9181_v49  ;;  %3233 = vmatpush1.bf16.msra.mxu0 %v7822_v48  ;;  %v7851_v48 = vld [vmem:[#allocation9 + $0x1ac] ss:$16 sps:$4 sm:$0xff]  }
 0x297   : > { %3234 = vmatprep.subr.bf16.mxu0 %v7827_v47  ;;  %v7957_v47 = vld [vmem:[#allocation12 + $0x40] ss:$8 sps:$4 sm:$0xff]  }
 0x298   : > { %5621 = vmatpush1.bf16.msra.mxu1 %v7957_v47  ;;  %v8001_v47 = vld [vmem:[#allocation12 + $0xb4] ss:$8 sps:$4 sm:$0xff]  }
 0x29a   : > { %3235 = vmatpush1.bf16.msra.mxu0 %v7825_v45  ;;  %v7849_v45 = vld [vmem:[#allocation9 + $0x1a8] ss:$16 sps:$4 sm:$0xff]  }
 0x29b   : > { %3236 = vmatprep.subr.bf16.mxu0 %v7830_v56  ;;  %v7854_v56 = vld [vmem:[#allocation9 + $0x1cc] ss:$16 sps:$4 sm:$0xff]  }
 0x29d   : > { %3141 = vmatmul.mubr.bf16.gmra.mrb[28].mxu0 %v9186_v54 }
 0x29e   : > { %3237 = vmatpush1.bf16.msra.mxu0 %v7828_v42  ;;  %3256 = vmatprep.mubr.bf16.mxu0 %v9016_v25  ;;  %v7840_v25 = vld [vmem:[#allocation9 + $0x148] ss:$16 sps:$4 sm:$0xff]   ;;  %v7963_v42 = vld [vmem:[#allocation12 + $0x50] ss:$8 sps:$4 sm:$0xff]  }
 0x29f   : > { %3238 = vmatprep.subr.bf16.mxu0 %v7833_v53  ;;  %v7965_v53 = vld [vmem:[#allocation12 + $0x54] ss:$8 sps:$4 sm:$0xff]  }
 0x2a0   : > { %5622 = vmatprep.subr.bf16.mxu1 %v7965_v53  ;;  %v7878_v53 = vld [vmem:[#allocation9 + $0x2cc] ss:$16 sps:$4 sm:$0xff]  }
 0x2a1   : > { %5623 = vmatpush1.bf16.msra.mxu1 %v7963_v42  ;;  %v8007_v42 = vld [vmem:[#allocation12 + $0xc4] ss:$8 sps:$4 sm:$0xff]  }
 0x2a2   : > { %3239 = vmatpush1.bf16.msra.mxu0 %v7831_v17  ;;  %v7852_v17 = vld [vmem:[#allocation9 + $0x1c8] ss:$16 sps:$4 sm:$0xff]  }
 0x2a3   : > { %3240 = vmatprep.subr.bf16.mxu0 %v7836_v3  ;;  %v7857_v3 = vld [vmem:[#allocation9 + $0x1ec] ss:$16 sps:$4 sm:$0xff]  }
 0x2a6   : > { %3241 = vmatpush1.bf16.msra.mxu0 %v7834_v62  ;;  %v7969_v62 = vld [vmem:[#allocation12 + $0x60] ss:$8 sps:$4 sm:$0xff]  }
 0x2a7   : > { %3242 = vmatprep.subr.bf16.mxu0 %v7839_v5  ;;  %v7971_v5 = vld [vmem:[#allocation12 + $0x64] ss:$8 sps:$4 sm:$0xff]  }
 0x2a8   : > { %5624 = vmatprep.subr.bf16.mxu1 %v7971_v5  ;;  %v8011_v5 = vld [vmem:[#allocation12 + $0xd0] ss:$8 sps:$4 sm:$0xff]  }
 0x2a9   : > { %5625 = vmatpush1.bf16.msra.mxu1 %v7969_v62  ;;  %v8013_v62 = vld [vmem:[#allocation12 + $0xd4] ss:$8 sps:$4 sm:$0xff]  }
 0x2aa   : > { %3243 = vmatpush1.bf16.msra.mxu0 %v7837_v37  ;;  %v7975_v37 = vld [vmem:[#allocation12 + $0x70] ss:$8 sps:$4 sm:$0xff]  }
 0x2ab   : > { %3244 = vmatprep.subr.bf16.mxu0 %v7842_v11  ;;  %v7977_v11 = vld [vmem:[#allocation12 + $0x74] ss:$8 sps:$4 sm:$0xff]  }
 0x2ac   : > { %5626 = vmatprep.subr.bf16.mxu1 %v7977_v11  ;;  %v7887_v11 = vld [vmem:[#allocation9 + $0x32c] ss:$16 sps:$4 sm:$0xff]  }
 0x2ad   : > { %5627 = vmatpush1.bf16.msra.mxu1 %v7975_v37  ;;  %v7882_v37 = vld [vmem:[#allocation9 + $0x308] ss:$16 sps:$4 sm:$0xff]  }
 0x2ae   : > { %3245 = vmatpush1.bf16.msra.mxu0 %v7840_v25  ;;  %v7981_v25 = vld [vmem:[#allocation12 + $0x80] ss:$8 sps:$4 sm:$0xff]   ;;  %5628 = vmatprep.subr.bf16.mxu1 %v7983_v33 }
 0x2af   : > { %3246 = vmatprep.subr.bf16.mxu0 %v7845_v30  ;;  %v7861_v30 = vld [vmem:[#allocation9 + $0x228] ss:$16 sps:$4 sm:$0xff]  }
 0x2b1   : > { %5629 = vmatpush1.bf16.msra.mxu1 %v7981_v25  ;;  %v8023_v25 = vld [vmem:[#allocation12 + $0xf0] ss:$8 sps:$4 sm:$0xff]  }
 0x2b2   : > { %3247 = vmatpush1.bf16.msra.mxu0 %v7843_v39  ;;  %v7989_v39 = vld [vmem:[#allocation12 + $0x94] ss:$8 sps:$4 sm:$0xff]  }
 0x2b3   : > { %3248 = vmatprep.subr.bf16.mxu0 %v7848_v23  ;;  %v7987_v23 = vld [vmem:[#allocation12 + $0x90] ss:$8 sps:$4 sm:$0xff]   ;;  %5630 = vmatprep.subr.bf16.mxu1 %v7989_v39  ;;  %v7888_v39 = vld [vmem:[#allocation9 + $0x348] ss:$16 sps:$4 sm:$0xff]  }
 0x2b5   : > { %5631 = vmatpush1.bf16.msra.mxu1 %v7987_v23  ;;  %v7893_v23 = vld [vmem:[#allocation9 + $0x36c] ss:$16 sps:$4 sm:$0xff]  }
 0x2b6   : > { %3249 = vmatpush1.bf16.msra.mxu0 %v7846_v44  ;;  %v7995_v44 = vld [vmem:[#allocation12 + $0xa4] ss:$8 sps:$4 sm:$0xff]  }
 0x2b7   : > { %3250 = vmatprep.subr.bf16.mxu0 %v7851_v48  ;;  %v7872_v48 = vld [vmem:[#allocation9 + $0x28c] ss:$16 sps:$4 sm:$0xff]   ;;  %5632 = vmatprep.subr.bf16.mxu1 %v7995_v44 }
 0x2ba   : > { %3251 = vmatpush1.bf16.msra.mxu0 %v7849_v45  ;;  %v7870_v45 = vld [vmem:[#allocation9 + $0x288] ss:$16 sps:$4 sm:$0xff]  }
 0x2bb   : > { %3252 = vmatprep.subr.bf16.mxu0 %v7854_v56  ;;  %v7875_v56 = vld [vmem:[#allocation9 + $0x2ac] ss:$16 sps:$4 sm:$0xff]  }
 0x2be   : > { %3253 = vmatpush1.bf16.msra.mxu0 %v7852_v17  ;;  %v7876_v17 = vld [vmem:[#allocation9 + $0x2c8] ss:$16 sps:$4 sm:$0xff]  }
 0x2bf   : > { %3254 = vmatprep.subr.bf16.mxu0 %v7857_v3  ;;  %v7881_v3 = vld [vmem:[#allocation9 + $0x2ec] ss:$16 sps:$4 sm:$0xff]  }
 0x2c2   : > { %3255 = vmatpush1.bf16.msra.mxu0 %v7855_v4  ;;  %v8019_v4 = vld [vmem:[#allocation12 + $0xe4] ss:$8 sps:$4 sm:$0xff]  }
 0x2c3   : > { %3297 = vmatprep.subr.bf16.mxu0 %v7860_v60  ;;  %v8017_v60 = vld [vmem:[#allocation12 + $0xe0] ss:$8 sps:$4 sm:$0xff]  }
 0x2c5   : > { %3257 = vmatmul.mubr.bf16.vlgmr.msra.gmra.mrb[32].mxu0 %v9014_v19  ;;  %v7993_v19 = vld [vmem:[#allocation12 + $0xa0] ss:$8 sps:$4 sm:$0xff]  }
 0x2c6   : > { %3266 = vmatprep.mubr.bf16.mxu0 %v9033_v7  ;;  %3298 = vmatpush1.bf16.msra.mxu0 %v7858_v15  ;;  %v7867_v7 = vld [vmem:[#allocation9 + $0x268] ss:$16 sps:$4 sm:$0xff]  }
 0x2c7   : > { %3299 = vmatprep.subr.bf16.mxu0 %v7863_v29  ;;  %5633 = vmatpush1.bf16.msra.mxu1 %v7993_v19 }
 0x2c8   : > { %5634 = vmatprep.subr.bf16.mxu1 %v8001_v47  ;;  %v7894_v47 = vld [vmem:[#allocation9 + $0x388] ss:$16 sps:$4 sm:$0xff]  }
 0x2ca   : > { %3300 = vmatpush1.bf16.msra.mxu0 %v7861_v30 }
 0x2cb   : > { %3301 = vmatprep.subr.bf16.mxu0 %v7866_v36  ;;  %5635 = vmatpush1.bf16.msra.mxu1 %v7999_v35  ;;  %v7890_v36 = vld [vmem:[#allocation9 + $0x34c] ss:$16 sps:$4 sm:$0xff]  }
 0x2cc   : > { %5636 = vmatprep.subr.bf16.mxu1 %v8007_v42  ;;  %v7899_v35 = vld [vmem:[#allocation9 + $0x3ac] ss:$16 sps:$4 sm:$0xff]  }
 0x2cd   : > { %3267 = vmatmul.mubr.bf16.gmra.mrb[36].mxu0 %v9030_v2  ;;  %v8005_v2 = vld [vmem:[#allocation12 + $0xc0] ss:$8 sps:$4 sm:$0xff]  }
 0x2ce   : > { %3276 = vmatprep.mubr.bf16.mxu0 %v9069_v55  ;;  %3302 = vmatpush1.bf16.msra.mxu0 %v7864_v26  ;;  %v7873_v55 = vld [vmem:[#allocation9 + $0x2a8] ss:$16 sps:$4 sm:$0xff]  }
 0x2cf   : > { %3303 = vmatprep.subr.bf16.mxu0 %v7869_v24  ;;  %5637 = vmatpush1.bf16.msra.mxu1 %v8005_v2 }
 0x2d0   : > { %5638 = vmatprep.subr.bf16.mxu1 %v8013_v62 }
 0x2d2   : > { %3304 = vmatpush1.bf16.msra.mxu0 %v7867_v7  ;;  %v7891_v7 = vld [vmem:[#allocation9 + $0x368] ss:$16 sps:$4 sm:$0xff]  }
 0x2d3   : > { %3305 = vmatprep.subr.bf16.mxu0 %v7872_v48  ;;  %5639 = vmatpush1.bf16.msra.mxu1 %v8011_v5  ;;  %v7896_v48 = vld [vmem:[#allocation9 + $0x38c] ss:$16 sps:$4 sm:$0xff]  }
 0x2d4   : > { %5640 = vmatprep.subr.bf16.mxu1 %v8019_v4 }
 0x2d5   : > { %3277 = vmatmul.mubr.bf16.gmra.mrb[40].mxu0 %v9066_v51  ;;  %v7879_v51 = vld [vmem:[#allocation9 + $0x2e8] ss:$16 sps:$4 sm:$0xff]  }
 0x2d6   : > { %3286 = vmatprep.mubr.bf16.mxu0 %v9109_v46  ;;  %3306 = vmatpush1.bf16.msra.mxu0 %v7870_v45  ;;  %v7884_v46 = vld [vmem:[#allocation9 + $0x30c] ss:$16 sps:$4 sm:$0xff]  }
 0x2d7   : > { %3307 = vmatprep.subr.bf16.mxu0 %v7875_v56  ;;  %5641 = vmatpush1.bf16.msra.mxu1 %v8017_v60  ;;  %v7908_v60 = vld [vmem:[#allocation9 + $0x40c] ss:$16 sps:$4 sm:$0xff]  }
 0x2da   : > { %3308 = vmatpush1.bf16.msra.mxu0 %v7873_v55  ;;  %v7897_v55 = vld [vmem:[#allocation9 + $0x3a8] ss:$16 sps:$4 sm:$0xff]  }
 0x2db   : > { %3309 = vmatprep.subr.bf16.mxu0 %v7878_v53  ;;  %v7902_v53 = vld [vmem:[#allocation9 + $0x3cc] ss:$16 sps:$4 sm:$0xff]  }
 0x2dd   : > { %3287 = vmatmul.mubr.bf16.gmra.mrb[44].mxu0 %v9104_v21  ;;  %v8025_v21 = vld [vmem:[#allocation12 + $0xf4] ss:$8 sps:$4 sm:$0xff]  }
 0x2de   : > { %3310 = vmatpush1.bf16.msra.mxu0 %v7876_v17  ;;  %6758 = vmatprep.mubr.msk.bf16.mxu0 %vm8889_vm2, %v9050_v43  ;;  %v7885_v43 = vld [vmem:[#allocation9 + $0x328] ss:$16 sps:$4 sm:$0xff]  }
 0x2df   : > { %3311 = vmatprep.subr.bf16.mxu0 %v7881_v3  ;;  %5642 = vmatprep.subr.bf16.mxu1 %v8025_v21  ;;  %v7900_v17 = vld [vmem:[#allocation9 + $0x3c8] ss:$16 sps:$4 sm:$0xff]   ;;  %v7905_v3 = vld [vmem:[#allocation9 + $0x3ec] ss:$16 sps:$4 sm:$0xff]  }
 0x2e0   : > { %5643 = vmatpush1.bf16.msra.mxu1 %v8023_v25  ;;  %v7909_v21 = vld [vmem:[#allocation9 + $0x428] ss:$16 sps:$4 sm:$0xff]   ;;  %v7914_v25 = vld [vmem:[#allocation9 + $0x44c] ss:$16 sps:$4 sm:$0xff]  }
 0x2e2   : > { %3312 = vmatpush1.bf16.msra.mxu0 %v7879_v51 }
 0x2e3   : > { %3313 = vmatprep.subr.bf16.mxu0 %v7884_v46  ;;  %v9200_v15 = vpop.f32.mrb[0].mxu1  ;;  %v7903_v46 = vld [vmem:[#allocation9 + $0x3e8] ss:$16 sps:$4 sm:$0xff]  }
 0x2e4   : > { %v9202_v29 = vpop.f32.mrb[1].mxu1 }
 0x2e5   : > { %v9204_v30 = vpop.f32.mrb[2].mxu1 }
 0x2e6   : > { %3314 = vmatpush1.bf16.msra.mxu0 %v7882_v37  ;;  %v9206_v33 = vpop.f32.mrb[3].mxu1  ;;  %v7906_v37 = vld [vmem:[#allocation9 + $0x408] ss:$16 sps:$4 sm:$0xff]  }
 0x2e7   : > { %3315 = vmatprep.subr.bf16.mxu0 %v7887_v11  ;;  %v7911_v11 = vld [vmem:[#allocation9 + $0x42c] ss:$16 sps:$4 sm:$0xff]  }
 0x2ea   : > { %3316 = vmatpush1.bf16.msra.mxu0 %v7885_v43  ;;  %v7912_v43 = vld [vmem:[#allocation9 + $0x448] ss:$16 sps:$4 sm:$0xff]  }
 0x2eb   : > { %3317 = vmatprep.subr.bf16.mxu0 %v7890_v36  ;;  %v9208_v26 = vpop.f32.mrb[4].mxu1  ;;  %v7917_v36 = vld [vmem:[#allocation9 + $0x46c] ss:$16 sps:$4 sm:$0xff]  }
 0x2ec   : > { %v9210_v24 = vpop.f32.mrb[5].mxu1 }
 0x2ed   : > { %v9212_v19 = vpop.f32.mrb[6].mxu1 }
 0x2ee   : > { %3318 = vmatpush1.bf16.msra.mxu0 %v7888_v39  ;;  %v9214_v44 = vpop.f32.mrb[7].mxu1  ;;  %v7918_v39 = vld [vmem:[#allocation9 + $0x488] ss:$16 sps:$4 sm:$0xff]  }
 0x2ef   : > { %3319 = vmatprep.subr.bf16.mxu0 %v7893_v23  ;;  %v7923_v23 = vld [vmem:[#allocation9 + $0x4ac] ss:$16 sps:$4 sm:$0xff]  }
 0x2f2   : > { %3320 = vmatpush1.bf16.msra.mxu0 %v7891_v7  ;;  %v7924_v7 = vld [vmem:[#allocation9 + $0x4c8] ss:$16 sps:$4 sm:$0xff]  }
 0x2f3   : > { %3321 = vmatprep.subr.bf16.mxu0 %v7896_v48  ;;  %v9216_v45 = vpop.f32.mrb[8].mxu1  ;;  %v7929_v48 = vld [vmem:[#allocation9 + $0x4ec] ss:$16 sps:$4 sm:$0xff]  }
 0x2f4   : > { %v9218_v56 = vpop.f32.mrb[9].mxu1 }
 0x2f5   : > { %v9220_v2 = vpop.f32.mrb[10].mxu1 }
 0x2f6   : > { %3322 = vmatpush1.bf16.msra.mxu0 %v7894_v47  ;;  %v9222_v42 = vpop.f32.mrb[11].mxu1  ;;  %v8052_v47 = vld [vmem:[#allocation12 + $0x104] ss:$8 sps:$4 sm:$0xff]  }
 0x2f7   : > { %3323 = vmatprep.subr.bf16.mxu0 %v7899_v35  ;;  %v7932_v35 = vld [vmem:[#allocation9 + $0x50c] ss:$16 sps:$4 sm:$0xff]   ;;  %5685 = vmatprep.subr.bf16.mxu1 %v8052_v47 }
 0x2f8   : > { %v8004_v47 = vld [vmem:[#allocation9 + $0x68c] ss:$16 sps:$4 sm:$0xff]  }
 0x2fa   : > { %3324 = vmatpush1.bf16.msra.mxu0 %v7897_v55  ;;  %v7938_v55 = vld [vmem:[#allocation9 + $0x52c] ss:$16 sps:$4 sm:$0xff]  }
 0x2fb   : > { %3325 = vmatprep.subr.bf16.mxu0 %v7902_v53  ;;  %v9224_v62 = vpop.f32.mrb[12].mxu1  ;;  %v7936_v53 = vld [vmem:[#allocation9 + $0x528] ss:$16 sps:$4 sm:$0xff]  }
 0x2fc   : > { %v9226_v5 = vpop.f32.mrb[13].mxu1 }
 0x2fd   : > { %v9228_v51 = vpop.f32.mrb[14].mxu1 }
 0x2fe   : > { %3326 = vmatpush1.bf16.msra.mxu0 %v7900_v17  ;;  %v9230_v4 = vpop.f32.mrb[15].mxu1  ;;  %v7944_v17 = vld [vmem:[#allocation9 + $0x54c] ss:$16 sps:$4 sm:$0xff]  }
 0x2ff   : > { %3327 = vmatprep.subr.bf16.mxu0 %v7905_v3  ;;  %v7942_v3 = vld [vmem:[#allocation9 + $0x548] ss:$16 sps:$4 sm:$0xff]  }
 0x302   : > { %3328 = vmatpush1.bf16.msra.mxu0 %v7903_v46  ;;  %v7948_v46 = vld [vmem:[#allocation9 + $0x568] ss:$16 sps:$4 sm:$0xff]  }
 0x303   : > { %3370 = vmatprep.subr.bf16.mxu0 %v7908_v60  ;;  %v7954_v60 = vld [vmem:[#allocation9 + $0x588] ss:$16 sps:$4 sm:$0xff]  }
 0x305   : > { %6761 = vmatmul.mubr.msk.bf16.vlgmr.msra.gmra.mrb[32].mxu0 %vm8889_vm2, %v9057_v40  ;;  %v7915_v40 = vld [vmem:[#allocation9 + $0x468] ss:$16 sps:$4 sm:$0xff]  }
 0x306   : > { %6764 = vmatprep.mubr.msk.bf16.mxu0 %vm8928_vm5, %v9076_v6  ;;  %3371 = vmatpush1.bf16.msra.mxu0 %v7906_v37  ;;  %v7920_v6 = vld [vmem:[#allocation9 + $0x48c] ss:$16 sps:$4 sm:$0xff]  }
 0x307   : > { %3372 = vmatprep.subr.bf16.mxu0 %v7911_v11  ;;  %v7962_v37 = vld [vmem:[#allocation9 + $0x5ac] ss:$16 sps:$4 sm:$0xff]   ;;  %v7960_v11 = vld [vmem:[#allocation9 + $0x5a8] ss:$16 sps:$4 sm:$0xff]  }
 0x30a   : > { %3373 = vmatpush1.bf16.msra.mxu0 %v7909_v21  ;;  %v7968_v21 = vld [vmem:[#allocation9 + $0x5cc] ss:$16 sps:$4 sm:$0xff]  }
 0x30b   : > { %3374 = vmatprep.subr.bf16.mxu0 %v7914_v25  ;;  %v7966_v25 = vld [vmem:[#allocation9 + $0x5c8] ss:$16 sps:$4 sm:$0xff]  }
 0x30d   : > { %6767 = vmatmul.mubr.msk.bf16.gmra.mrb[36].mxu0 %vm8928_vm5, %v9072_v63  ;;  %v7921_v63 = vld [vmem:[#allocation9 + $0x4a8] ss:$16 sps:$4 sm:$0xff]  }
 0x30e   : > { %6770 = vmatprep.mubr.msk.bf16.mxu0 %vm8944_vm8, %v9116_v0  ;;  %3375 = vmatpush1.bf16.msra.mxu0 %v7912_v43  ;;  %v7926_v0 = vld [vmem:[#allocation9 + $0x4cc] ss:$16 sps:$4 sm:$0xff]  }
 0x30f   : > { %3376 = vmatprep.subr.bf16.mxu0 %v7917_v36  ;;  %v7974_v43 = vld [vmem:[#allocation9 + $0x5ec] ss:$16 sps:$4 sm:$0xff]   ;;  %v7972_v36 = vld [vmem:[#allocation9 + $0x5e8] ss:$16 sps:$4 sm:$0xff]  }
 0x312   : > { %3377 = vmatpush1.bf16.msra.mxu0 %v7915_v40  ;;  %v7980_v40 = vld [vmem:[#allocation9 + $0x60c] ss:$16 sps:$4 sm:$0xff]  }
 0x313   : > { %3378 = vmatprep.subr.bf16.mxu0 %v7920_v6  ;;  %v7978_v6 = vld [vmem:[#allocation9 + $0x608] ss:$16 sps:$4 sm:$0xff]  }
 0x315   : > { %6773 = vmatmul.mubr.msk.bf16.gmra.mrb[40].mxu0 %vm8944_vm8, %v9113_v57  ;;  %v7927_v57 = vld [vmem:[#allocation9 + $0x4e8] ss:$16 sps:$4 sm:$0xff]  }
 0x316   : > { %6776 = vmatprep.mubr.msk.bf16.mxu0 %vm8956_vm11, %v9134_v13  ;;  %3379 = vmatpush1.bf16.msra.mxu0 %v7918_v39  ;;  %v7930_v13 = vld [vmem:[#allocation9 + $0x508] ss:$16 sps:$4 sm:$0xff]   ;;  %v7986_v39 = vld [vmem:[#allocation9 + $0x62c] ss:$16 sps:$4 sm:$0xff]  }
 0x317   : > { %3380 = vmatprep.subr.bf16.mxu0 %v7923_v23  ;;  %v7984_v23 = vld [vmem:[#allocation9 + $0x628] ss:$16 sps:$4 sm:$0xff]  }
 0x31a   : > { %3381 = vmatpush1.bf16.msra.mxu0 %v7921_v63  ;;  %v7992_v63 = vld [vmem:[#allocation9 + $0x64c] ss:$16 sps:$4 sm:$0xff]  }
 0x31b   : > { %3382 = vmatprep.subr.bf16.mxu0 %v7926_v0  ;;  %v7990_v0 = vld [vmem:[#allocation9 + $0x648] ss:$16 sps:$4 sm:$0xff]  }
 0x31d   : > { %6779 = vmatmul.mubr.msk.bf16.gmra.mrb[44].mxu0 %vm8956_vm11, %v9129_v10  ;;  %v7950_v10 = vld [vmem:[#allocation9 + $0x56c] ss:$16 sps:$4 sm:$0xff]  }
 0x31e   : > { %3383 = vmatpush1.bf16.msra.mxu0 %v7924_v7  ;;  %3402 = vmatprep.mubr.bf16.mxu0 %v9028_v1  ;;  %v7956_v1 = vld [vmem:[#allocation9 + $0x58c] ss:$16 sps:$4 sm:$0xff]  }
 0x31f   : > { %3384 = vmatprep.subr.bf16.mxu0 %v7929_v48  ;;  %v7998_v7 = vld [vmem:[#allocation9 + $0x66c] ss:$16 sps:$4 sm:$0xff]   ;;  %v7996_v48 = vld [vmem:[#allocation9 + $0x668] ss:$16 sps:$4 sm:$0xff]  }
 0x322   : > { %3385 = vmatpush1.bf16.msra.mxu0 %v7927_v57  ;;  %v9258_v57 = vld [vmem:[#allocation10] sm:$0xf] }
 0x323   : > { %3386 = vmatprep.subr.bf16.mxu0 %v7932_v35  ;;  %v9263_v35 = vrot.slane %v9258_v57, %v8995_v14 }
 0x326   : > { %3387 = vmatpush1.bf16.msra.mxu0 %v7930_v13  ;;  %v8016_v13 = vld [vmem:[#allocation9 + $0x6cc] ss:$16 sps:$4 sm:$0xff]  }
 0x327   : > { %3388 = vmatprep.subr.bf16.mxu0 %v7938_v55 }
 0x32a   : > { %3389 = vmatpush1.bf16.msra.mxu0 %v7936_v53 }
 0x32b   : > { %3390 = vmatprep.subr.bf16.mxu0 %v7944_v17 }
 0x32e   : > { %3391 = vmatpush1.bf16.msra.mxu0 %v7942_v3 }
 0x32f   : > { %3392 = vmatprep.subr.bf16.mxu0 %v7950_v10  ;;  %v8014_v10 = vld [vmem:[#allocation9 + $0x6c8] ss:$16 sps:$4 sm:$0xff]  }
 0x332   : > { %3393 = vmatpush1.bf16.msra.mxu0 %v7948_v46 }
 0x333   : > { %3394 = vmatprep.subr.bf16.mxu0 %v7956_v1 }
 0x336   : > { %3395 = vmatpush1.bf16.msra.mxu0 %v7954_v60  ;;  %v8022_v60 = vld [vmem:[#allocation9 + $0x6ec] ss:$16 sps:$4 sm:$0xff]  }
 0x337   : > { %3396 = vmatprep.subr.bf16.mxu0 %v7962_v37 }
 0x33a   : > { %3397 = vmatpush1.bf16.msra.mxu0 %v7960_v11 }
 0x33b   : > { %3398 = vmatprep.subr.bf16.mxu0 %v7968_v21 }
 0x33e   : > { %3399 = vmatpush1.bf16.msra.mxu0 %v7966_v25 }
 0x33f   : > { %3400 = vmatprep.subr.bf16.mxu0 %v7974_v43 }
 0x342   : > { %3401 = vmatpush1.bf16.msra.mxu0 %v7972_v36 }
 0x343   : > { %3443 = vmatprep.subr.bf16.mxu0 %v7980_v40 }
 0x345   : > { %3403 = vmatmul.mubr.bf16.vlgmr.msra.gmra.mrb[32].mxu0 %v9026_v58  ;;  %v8002_v58 = vld [vmem:[#allocation9 + $0x688] ss:$16 sps:$4 sm:$0xff]  }
 0x346   : > { %3412 = vmatprep.mubr.bf16.mxu0 %v9064_v50  ;;  %3444 = vmatpush1.bf16.msra.mxu0 %v7978_v6  ;;  %v8010_v50 = vld [vmem:[#allocation9 + $0x6ac] ss:$16 sps:$4 sm:$0xff]  }
 0x347   : > { %3445 = vmatprep.subr.bf16.mxu0 %v7986_v39 }
 0x34a   : > { %3446 = vmatpush1.bf16.msra.mxu0 %v7984_v23 }
 0x34b   : > { %3447 = vmatprep.subr.bf16.mxu0 %v7992_v63 }
 0x34d   : > { %3413 = vmatmul.mubr.bf16.gmra.mrb[36].mxu0 %v9059_v41  ;;  %v9268_v41 = vrot.slane %v9258_v57, %v8998_v22 }
 0x34e   : > { %3422 = vmatprep.mubr.bf16.mxu0 %v9101_v20  ;;  %3448 = vmatpush1.bf16.msra.mxu0 %v7990_v0  ;;  %v8008_v20 = vld [vmem:[#allocation9 + $0x6a8] ss:$16 sps:$4 sm:$0xff]  }
 0x34f   : > { %3449 = vmatprep.subr.bf16.mxu0 %v7998_v7  ;;  %v8026_v0 = vld [vmem:[#allocation9 + $0x708] ss:$16 sps:$4 sm:$0xff]   ;;  %v8050_v7 = vld [vmem:[#allocation12 + $0x100] ss:$8 sps:$4 sm:$0xff]  }
 0x352   : > { %3450 = vmatpush1.bf16.msra.mxu0 %v7996_v48 }
 0x353   : > { %3451 = vmatprep.subr.bf16.mxu0 %v8004_v47 }
 0x355   : > { %3423 = vmatmul.mubr.bf16.gmra.mrb[40].mxu0 %v9094_v18 }
 0x356   : > { %3432 = vmatprep.mubr.bf16.mxu0 %v9181_v49  ;;  %3452 = vmatpush1.bf16.msra.mxu0 %v8002_v58 }
 0x357   : > { %3453 = vmatprep.subr.bf16.mxu0 %v8010_v50  ;;  %v8031_v50 = vld [vmem:[#allocation9 + $0x72c] ss:$16 sps:$4 sm:$0xff]  }
 0x358   : > { %v3112_v55 = vpop.f32.mrb[16].mxu0 }
 0x359   : > { %v7176_v53 = vadd.f32 %v3112_v55, %v9263_v35  ;;  %v3114_v17 = vpop.f32.mrb[17].mxu0 }
 0x35a   : > { %v7178_v18 = vadd.f32 %v3114_v17, %v9268_v41  ;;  %v3116_v3 = vpop.f32.mrb[18].mxu0  ;;  %3454 = vmatpush1.bf16.msra.mxu0 %v8008_v20  ;;  %v8055_v20 = vld [vmem:[#allocation12 + $0x114] ss:$8 sps:$4 sm:$0xff]  }
 0x35b   : > { %v7177_v46 = vadd.f32 %v7176_v53, %v9200_v15  ;;  %v7180_v49 = vadd.f32 %v3116_v3, %v9263_v35  ;;  %v3118_v1 = vpop.f32.mrb[19].mxu0  ;;  %3455 = vmatprep.subr.bf16.mxu0 %v8016_v13  ;;  %v8020_v15 = vld [vmem:[#allocation9 + $0x6e8] ss:$16 sps:$4 sm:$0xff]   ;;  %v8034_v3 = vld [vmem:[#allocation9 + $0x74c] ss:$16 sps:$4 sm:$0xff]  }
 0x35c   : > { %v7179_v37 = vadd.f32 %v7178_v18, %v9202_v29  ;;  %v7182_v11 = vadd.f32 %v3118_v1, %v9268_v41  ;;  %v8028_v29 = vld [vmem:[#allocation9 + $0x70c] ss:$16 sps:$4 sm:$0xff]   ;;  %v8029_v53 = vld [vmem:[#allocation9 + $0x728] ss:$16 sps:$4 sm:$0xff]  }
 0x35d   : > { %v3516_v21 = vmax.f32 %v7177_v46, 0.0  ;;  %v7181_v25 = vadd.f32 %v7180_v49, %v9204_v30  ;;  %3433 = vmatmul.mubr.bf16.gmra.mrb[44].mxu0 %v9186_v54 }
 0x35e   : > { %v3517_v43 = vmax.f32 %v7179_v37, 0.0  ;;  %v7183_v36 = vadd.f32 %v7182_v11, %v9206_v33  ;;  %3456 = vmatpush1.bf16.msra.mxu0 %v8014_v10  ;;  %6782 = vmatprep.mubr.msk.bf16.mxu0 %vm8889_vm2, %v9048_v16  ;;  %v8053_v10 = vld [vmem:[#allocation12 + $0x110] ss:$8 sps:$4 sm:$0xff]  }
 0x35f   : > { %3556 = vst [vmem:[#allocation4] sm:$0xff] %v3516_v21  ;;  %v9282_v40 = vmax.f32 %v7181_v25, 0.0  ;;  %3457 = vmatprep.subr.bf16.mxu0 %v8022_v60 }
 0x360   : > { %3557 = vst [vmem:[#allocation4 + $0x8] sm:$0xff] %v3517_v43  ;;  %v9284_v6 = vmax.f32 %v7183_v36, 0.0  ;;  %v3122_v30 = vpop.f32.mrb[20].mxu0 }
 0x361   : > { %3560 = vst [vmem:[#allocation4 + $0x20] sm:$0xff] %v9282_v40  ;;  %v4048_v54 = vpack.c.bf16 %v9282_v40, %v3516_v21  ;;  %v7184_v33 = vadd.f32 %v3122_v30, %v9263_v35  ;;  %v3124_v39 = vpop.f32.mrb[21].mxu0  ;;  %v3661_v60 = vrot.slane %v9282_v40, 1 }
 0x362   : > { %3561 = vst [vmem:[#allocation4 + $0x28] sm:$0xff] %v9284_v6  ;;  %v7186_v16 = vadd.f32 %v3124_v39, %v9268_v41  ;;  %v3126_v23 = vpop.f32.mrb[22].mxu0  ;;  %3458 = vmatpush1.bf16.msra.mxu0 %v8020_v15  ;;  %v4049_v63 = vpack.c.bf16 %v9284_v6, %v3517_v43 }
 0x363   : > { %v7185_v48 = vadd.f32 %v7184_v33, %v9208_v26  ;;  %v7188_v47 = vadd.f32 %v3126_v23, %v9263_v35  ;;  %v3128_v58 = vpop.f32.mrb[23].mxu0  ;;  %3459 = vmatprep.subr.bf16.mxu0 %v8028_v29  ;;  %v8058_v26 = vld [vmem:[#allocation12 + $0x124] ss:$8 sps:$4 sm:$0xff]  }
 0x364   : > { %v7187_v13 = vadd.f32 %v7186_v16, %v9210_v24  ;;  %v7190_v55 = vadd.f32 %v3128_v58, %v9268_v41  ;;  %5644 = vmatprep.mubr.bf16.mxu1 %v4049_v63  ;;  %v3664_v24 = vrot.slane %v9284_v6, 1 }
 0x365   : > { %v9296_v17 = vmax.f32 %v7185_v48, 0.0  ;;  %v7189_v18 = vadd.f32 %v7188_v47, %v9212_v19  ;;  %5645 = vmatmul.mubr.bf16.vlgmr.msra.gmra.mrb[16].mxu1 %v4048_v54  ;;  %v8056_v48 = vld [vmem:[#allocation12 + $0x120] ss:$8 sps:$4 sm:$0xff]  }
 0x366   : > { %v9299_v46 = vmax.f32 %v7187_v13, 0.0  ;;  %v7191_v49 = vadd.f32 %v7190_v55, %v9214_v44  ;;  %3460 = vmatpush1.bf16.msra.mxu0 %v8026_v0  ;;  %5686 = vmatpush1.bf16.msra.mxu1 %v8050_v7  ;;  %v3588_v1 = vld [vmem:[#allocation4] sm:$0xfe]  ;;  %v8032_v7 = vld [vmem:[#allocation9 + $0x748] ss:$16 sps:$4 sm:$0xff]  }
 0x367   : > { %3564 = vst [vmem:[#allocation4 + $0x40] sm:$0xff] %v9296_v17  ;;  %v9305_v37 = vmax.f32 %v7189_v18, 0.0  ;;  %3461 = vmatprep.subr.bf16.mxu0 %v8031_v50  ;;  %5687 = vmatprep.subr.bf16.mxu1 %v8055_v20  ;;  %v3589_v19 = vld [vmem:[#allocation4 + $0x8] sm:$0xfe]  ;;  %v3660_v11 = vrot.slane %v3588_v1, 1  ;;  %v3672_v21 = vrot.slane %v9296_v17, 1 }
 0x368   : > { %3565 = vst [vmem:[#allocation4 + $0x48] sm:$0xff] %v9299_v46  ;;  %v9311_v25 = vmax.f32 %v7191_v49, 0.0  ;;  %v3132_v43 = vpop.f32.mrb[24].mxu0  ;;  %v3663_v36 = vrot.slane %v3589_v19, 1  ;;  %v3674_v15 = vrot.slane %v9299_v46, 1 }
 0x369   : > { %3568 = vst [vmem:[#allocation4 + $0x60] sm:$0xff] %v9305_v37  ;;  %v7192_v30 = vadd.f32 %v3132_v43, %v9263_v35  ;;  %v3134_v54 = vpop.f32.mrb[25].mxu0  ;;  %v4052_v33 = vpack.c.bf16 %v9305_v37, %v9296_v17  ;;  %v9321_v39 = vsel %vm1171_vm12, %v3660_v11, %v3661_v60  ;;  %v9324_v16 = vsel %vm1171_vm12, %v3661_v60, %v3672_v21  ;;  %v8037_v55 = vld [vmem:[#allocation9 + $0x76c] ss:$16 sps:$4 sm:$0xff]   ;;  %v8035_v43 = vld [vmem:[#allocation9 + $0x768] ss:$16 sps:$4 sm:$0xff]  }
 0x36a   : > { %3569 = vst [vmem:[#allocation4 + $0x68] sm:$0xff] %v9311_v25  ;;  %v7194_v23 = vadd.f32 %v3134_v54, %v9268_v41  ;;  %v3136_v63 = vpop.f32.mrb[26].mxu0  ;;  %3462 = vmatpush1.bf16.msra.mxu0 %v8029_v53  ;;  %v4053_v0 = vpack.c.bf16 %v9311_v25, %v9299_v46  ;;  %5688 = vmatpush1.bf16.msra.mxu1 %v8053_v10  ;;  %v3682_v58 = vrot.slane %v9311_v25, 1  ;;  %v8061_v53 = vld [vmem:[#allocation12 + $0x134] ss:$8 sps:$4 sm:$0xff]   ;;  %v3680_v10 = vrot.slane %v9305_v37, 1 }
 0x36b   : > { %v9331_v47 = vsel %vm1171_vm12, %v3663_v36, %v3664_v24  ;;  %v7193_v50 = vadd.f32 %v7192_v30, %v9216_v45  ;;  %v7196_v20 = vadd.f32 %v3136_v63, %v9263_v35  ;;  %v3138_v13 = vpop.f32.mrb[27].mxu0  ;;  %3463 = vmatprep.subr.bf16.mxu0 %v8034_v3  ;;  %5689 = vmatprep.subr.bf16.mxu1 %v8058_v26  ;;  %v8059_v36 = vld [vmem:[#allocation12 + $0x130] ss:$8 sps:$4 sm:$0xff]   ;;  %v8109_v60 = vld [vmem:[#allocation12 + $0x234] ss:$8 sps:$4 sm:$0xff]  }
 0x36c   : > { %v9337_v18 = vsel %vm1171_vm12, %v3664_v24, %v3674_v15  ;;  %v7195_v49 = vadd.f32 %v7194_v23, %v9218_v56  ;;  %v7198_v1 = vadd.f32 %v3138_v13, %v9268_v41  ;;  %5654 = vmatprep.mubr.bf16.mxu1 %v4053_v0  ;;  %v9350_v24 = vsel %vm1171_vm12, %v3674_v15, %v3682_v58  ;;  %v8064_v15 = vld [vmem:[#allocation12 + $0x144] ss:$8 sps:$4 sm:$0xff]  }
 0x36d   : > { %v9346_v3 = vmax.f32 %v7193_v50, 0.0  ;;  %v7197_v26 = vadd.f32 %v7196_v20, %v9220_v2  ;;  %5655 = vmatmul.mubr.bf16.gmra.mrb[20].mxu1 %v4052_v33  ;;  %v9353_v19 = vsel %vm1171_vm12, %v3672_v21, %v3680_v10  ;;  %v8040_v2 = vld [vmem:[#allocation9 + $0x78c] ss:$16 sps:$4 sm:$0xff]  }
 0x36e   : > { %v9355_v56 = vmax.f32 %v7195_v49, 0.0  ;;  %v7199_v11 = vadd.f32 %v7198_v1, %v9222_v42  ;;  %3464 = vmatpush1.bf16.msra.mxu0 %v8032_v7  ;;  %5690 = vmatpush1.bf16.msra.mxu1 %v8056_v48  ;;  %v8038_v49 = vld [vmem:[#allocation9 + $0x788] ss:$16 sps:$4 sm:$0xff]   ;;  %v8062_v1 = vld [vmem:[#allocation12 + $0x140] ss:$8 sps:$4 sm:$0xff]  }
 0x36f   : > { %3572 = vst [vmem:[#allocation4 + $0x80] sm:$0xff] %v9346_v3  ;;  %v9359_v30 = vmax.f32 %v7197_v26, 0.0  ;;  %3465 = vmatprep.subr.bf16.mxu0 %v8037_v55  ;;  %5691 = vmatprep.subr.bf16.mxu1 %v8061_v53  ;;  %v3688_v54 = vrot.slane %v9346_v3, 1 }
 0x370   : > { %3573 = vst [vmem:[#allocation4 + $0x88] sm:$0xff] %v9355_v56  ;;  %v9365_v42 = vmax.f32 %v7199_v11, 0.0  ;;  %v3142_v33 = vpop.f32.mrb[28].mxu0  ;;  %v3690_v23 = vrot.slane %v9355_v56, 1 }
 0x371   : > { %9944 = vst [vmem:[#allocation21_spill] sm:$0xff] %v9359_v30  ;;  %3576 = vst [vmem:[#allocation4 + $0xa0] sm:$0xff] %v9359_v30  ;;  %v7200_v0 = vadd.f32 %v3142_v33, %v9263_v35  ;;  %v3144_v7 = vpop.f32.mrb[29].mxu0  ;;  %v4056_v48 = vpack.c.bf16 %v9359_v30, %v9346_v3  ;;  %v9375_v50 = vsel %vm1171_vm12, %v3680_v10, %v3688_v54  ;;  %v3696_v20 = vrot.slane %v9359_v30, 1  ;;  %v3623_v30 = vld [vmem:[#allocation4 + $0x118] sm:$0x1] }
 0x372   : > { %3577 = vst [vmem:[#allocation4 + $0xa8] sm:$0xff] %v9365_v42  ;;  %v7202_v13 = vadd.f32 %v3144_v7, %v9268_v41  ;;  %v3146_v55 = vpop.f32.mrb[30].mxu0  ;;  %3466 = vmatpush1.bf16.msra.mxu0 %v8035_v43  ;;  %v4057_v53 = vpack.c.bf16 %v9365_v42, %v9355_v56  ;;  %5692 = vmatpush1.bf16.msra.mxu1 %v8059_v36  ;;  %v3698_v10 = vrot.slane %v9365_v42, 1  ;;  %v8043_v7 = vld [vmem:[#allocation9 + $0x7ac] ss:$16 sps:$4 sm:$0xff]  }
 0x373   : > { %v9383_v26 = vsel %vm1171_vm12, %v3682_v58, %v3690_v23  ;;  %v7201_v11 = vadd.f32 %v7200_v0, %v9224_v62  ;;  %v7204_v33 = vadd.f32 %v3146_v55, %v9263_v35  ;;  %v3148_v21 = vpop.f32.mrb[31].mxu0  ;;  %3467 = vmatprep.subr.bf16.mxu0 %v8040_v2  ;;  %5693 = vmatprep.subr.bf16.mxu1 %v8064_v15  ;;  %v8067_v43 = vld [vmem:[#allocation12 + $0x154] ss:$8 sps:$4 sm:$0xff]   ;;  %v3620_v35 = vld [vmem:[#allocation4 + $0x100] sm:$0x1] }
 0x374   : > { %v7203_v36 = vadd.f32 %v7202_v13, %v9226_v5  ;;  %v7206_v44 = vadd.f32 %v3148_v21, %v9268_v41  ;;  %5664 = vmatprep.mubr.bf16.mxu1 %v4057_v53  ;;  %v9395_v62 = vsel %vm1171_vm12, %v3690_v23, %v3698_v10  ;;  %v8041_v15 = vld [vmem:[#allocation9 + $0x7a8] ss:$16 sps:$4 sm:$0xff]   ;;  %v9401_v55 = vsel %vm1171_vm12, %v3688_v54, %v3696_v20  ;;  %v3621_v5 = vld [vmem:[#allocation4 + $0x108] sm:$0x1]  ;;  %v8046_v21 = vld [vmem:[#allocation9 + $0x7cc] ss:$16 sps:$4 sm:$0xff]  }
 0x375   : > { %v9397_v0 = vmax.f32 %v7201_v11, 0.0  ;;  %v7205_v2 = vadd.f32 %v7204_v33, %v9228_v51  ;;  %5665 = vmatmul.mubr.bf16.gmra.mrb[24].mxu1 %v4056_v48  ;;  %v8065_v23 = vld [vmem:[#allocation12 + $0x150] ss:$8 sps:$4 sm:$0xff]   ;;  %v8070_v51 = vld [vmem:[#allocation12 + $0x164] ss:$8 sps:$4 sm:$0xff]   ;;  %v3720_v54 = vrot.slane %v3620_v35, 1 }
 0x376   : > { %v9403_v13 = vmax.f32 %v7203_v36, 0.0  ;;  %v7207_v41 = vadd.f32 %v7206_v44, %v9230_v4  ;;  %3468 = vmatpush1.bf16.msra.mxu0 %v8038_v49  ;;  %5694 = vmatpush1.bf16.msra.mxu1 %v8062_v1  ;;  %v3722_v49 = vrot.slane %v3621_v5, 1  ;;  %v8044_v35 = vld [vmem:[#allocation9 + $0x7c8] ss:$16 sps:$4 sm:$0xff]   ;;  %v8049_v11 = vld [vmem:[#allocation9 + $0x7ec] ss:$16 sps:$4 sm:$0xff]  }
 0x377   : > { %9945 = vst [vmem:[#allocation22_spill] sm:$0xff] %v9397_v0  ;;  %3580 = vst [vmem:[#allocation4 + $0xc0] sm:$0xff] %v9397_v0  ;;  %v9407_v53 = vmax.f32 %v7205_v2, 0.0  ;;  %3469 = vmatprep.subr.bf16.mxu0 %v8043_v7  ;;  %5695 = vmatprep.subr.bf16.mxu1 %v8067_v43  ;;  %v3704_v48 = vrot.slane %v9397_v0, 1  ;;  %v8068_v2 = vld [vmem:[#allocation12 + $0x160] ss:$8 sps:$4 sm:$0xff]  }
 0x378   : > { %3581 = vst [vmem:[#allocation4 + $0xc8] sm:$0xff] %v9403_v13  ;;  %v9413_v4 = vmax.f32 %v7207_v41, 0.0  ;;  %v3706_v44 = vrot.slane %v9403_v13, 1  ;;  %v8073_v1 = vld [vmem:[#allocation12 + $0x174] ss:$8 sps:$4 sm:$0xff]  }
 0x379   : > { %9946 = vst [vmem:[#allocation23_spill] sm:$0xff] %v9407_v53  ;;  %3584 = vst [vmem:[#allocation4 + $0xe0] sm:$0xff] %v9407_v53  ;;  %v4060_v33 = vpack.c.bf16 %v9407_v53, %v9397_v0  ;;  %v9422_v7 = vsel %vm1171_vm12, %v3696_v20, %v3704_v48  ;;  %v3712_v43 = vrot.slane %v9407_v53, 1 }
 0x37a   : > { %3585 = vst [vmem:[#allocation4 + $0xe8] sm:$0xff] %v9413_v4  ;;  %3470 = vmatpush1.bf16.msra.mxu0 %v8041_v15  ;;  %v4061_v36 = vpack.c.bf16 %v9413_v4, %v9403_v13  ;;  %5696 = vmatpush1.bf16.msra.mxu1 %v8065_v23  ;;  %v9429_v5 = vsel %vm1171_vm12, %v3698_v10, %v3706_v44  ;;  %v3714_v20 = vrot.slane %v9413_v4, 1  ;;  %v8071_v15 = vld [vmem:[#allocation12 + $0x170] ss:$8 sps:$4 sm:$0xff]  }
 0x37b   : > { %3471 = vmatprep.subr.bf16.mxu0 %v8046_v21  ;;  %5697 = vmatprep.subr.bf16.mxu1 %v8070_v51  ;;  %v9437_v29 = vsel %vm1171_vm12, %v3704_v48, %v3712_v43  ;;  %v9440_v23 = vsel %vm1171_vm12, %v3712_v43, %v3720_v54  ;;  %v8047_v48 = vld [vmem:[#allocation9 + $0x7e8] ss:$16 sps:$4 sm:$0xff]   ;;  %v8104_v21 = vld [vmem:[#allocation12 + $0x220] ss:$8 sps:$4 sm:$0xff]  }
 0x37c   : > { %5674 = vmatprep.mubr.bf16.mxu1 %v4061_v36  ;;  %v9443_v10 = vsel %vm1171_vm12, %v3706_v44, %v3714_v20  ;;  %v9446_v41 = vsel %vm1171_vm12, %v3714_v20, %v3722_v49  ;;  %v8076_v54 = vld [vmem:[#allocation12 + $0x184] ss:$8 sps:$4 sm:$0xff]   ;;  %v8074_v44 = vld [vmem:[#allocation12 + $0x180] ss:$8 sps:$4 sm:$0xff]   ;;  %v8079_v49 = vld [vmem:[#allocation12 + $0x194] ss:$8 sps:$4 sm:$0xff]  }
 0x37d   : > { %5675 = vmatmul.mubr.bf16.gmra.mrb[28].mxu1 %v4060_v33  ;;  %v8077_v33 = vld [vmem:[#allocation12 + $0x190] ss:$8 sps:$4 sm:$0xff]   ;;  %v8082_v43 = vld [vmem:[#allocation12 + $0x1a4] ss:$8 sps:$4 sm:$0xff]   ;;  %v8086_v36 = vld [vmem:[#allocation12 + $0x1c0] ss:$8 sps:$4 sm:$0xff]  }
 0x37e   : > { %3472 = vmatpush1.bf16.msra.mxu0 %v8044_v35  ;;  %5698 = vmatpush1.bf16.msra.mxu1 %v8068_v2  ;;  %v8091_v35 = vld [vmem:[#allocation12 + $0x1d4] ss:$8 sps:$4 sm:$0xff]   ;;  %v8092_v2 = vld [vmem:[#allocation12 + $0x1e0] ss:$8 sps:$4 sm:$0xff]   ;;  %v8095_v20 = vld [vmem:[#allocation12 + $0x1f0] ss:$8 sps:$4 sm:$0xff]  }
 0x37f   : > { %3473 = vmatprep.subr.bf16.mxu0 %v8049_v11  ;;  %5699 = vmatprep.subr.bf16.mxu1 %v8073_v1  ;;  %v8080_v11 = vld [vmem:[#allocation12 + $0x1a0] ss:$8 sps:$4 sm:$0xff]   ;;  %v8085_v1 = vld [vmem:[#allocation12 + $0x1b4] ss:$8 sps:$4 sm:$0xff]  }
 0x382   : > { %3474 = vmatpush1.bf16.msra.mxu0 %v8047_v48  ;;  %5700 = vmatpush1.bf16.msra.mxu1 %v8071_v15  ;;  %v8097_v15 = vld [vmem:[#allocation12 + $0x1f4] ss:$8 sps:$4 sm:$0xff]   ;;  %v1646_v48 = vsub.s32 3, %v8854_v12 }
 0x383   : > { %5701 = vmatprep.subr.bf16.mxu1 %v8076_v54 }
 0x385   : > { %6785 = vmatmul.mubr.msk.bf16.vlgmr.msra.gmra.mrb[32].mxu0 %vm8889_vm2, %v9044_v38  ;;  %v8083_v38 = vld [vmem:[#allocation12 + $0x1b0] ss:$8 sps:$4 sm:$0xff]  }
 0x386   : > { %6788 = vmatprep.mubr.msk.bf16.mxu0 %vm8928_vm5, %v9085_v27  ;;  %5702 = vmatpush1.bf16.msra.mxu1 %v8074_v44  ;;  %v8088_v27 = vld [vmem:[#allocation12 + $0x1c4] ss:$8 sps:$4 sm:$0xff]   ;;  %v9479_v44 = vrot.slane %v9258_v57, %v1646_v48 }
 0x387   : > { %5703 = vmatprep.subr.bf16.mxu1 %v8079_v49 }
 0x38a   : > { %5704 = vmatpush1.bf16.msra.mxu1 %v8077_v33 }
 0x38b   : > { %5705 = vmatprep.subr.bf16.mxu1 %v8082_v43 }
 0x38d   : > { %6791 = vmatmul.mubr.msk.bf16.gmra.mrb[36].mxu0 %vm8928_vm5, %v9081_v9  ;;  %v8089_v9 = vld [vmem:[#allocation12 + $0x1d0] ss:$8 sps:$4 sm:$0xff]  }
 0x38e   : > { %6794 = vmatprep.mubr.msk.bf16.mxu0 %vm8944_vm8, %v9126_v31  ;;  %5706 = vmatpush1.bf16.msra.mxu1 %v8080_v11  ;;  %v8094_v31 = vld [vmem:[#allocation12 + $0x1e4] ss:$8 sps:$4 sm:$0xff]  }
 0x38f   : > { %5707 = vmatprep.subr.bf16.mxu1 %v8085_v1 }
 0x392   : > { %5708 = vmatpush1.bf16.msra.mxu1 %v8083_v38 }
 0x393   : > { %5709 = vmatprep.subr.bf16.mxu1 %v8088_v27 }
 0x395   : > { %6797 = vmatmul.mubr.msk.bf16.gmra.mrb[40].mxu0 %vm8944_vm8, %v9121_v59  ;;  %v8100_v59 = vld [vmem:[#allocation12 + $0x204] ss:$8 sps:$4 sm:$0xff]  }
 0x396   : > { %6800 = vmatprep.mubr.msk.bf16.mxu0 %vm8956_vm11, %v9139_v28  ;;  %5710 = vmatpush1.bf16.msra.mxu1 %v8086_v36  ;;  %v1642_v28 = vsub.s32 2, %v8854_v12 }
 0x397   : > { %5711 = vmatprep.subr.bf16.mxu1 %v8091_v35 }
 0x398   : > { %v9476_v54 = vrot.slane %v9258_v57, %v1642_v28  ;;  %v8103_v28 = vld [vmem:[#allocation12 + $0x214] ss:$8 sps:$4 sm:$0xff]  }
 0x39a   : > { %5712 = vmatpush1.bf16.msra.mxu1 %v8089_v9 }
 0x39b   : > { %5713 = vmatprep.subr.bf16.mxu1 %v8094_v31 }
 0x39d   : > { %6803 = vmatmul.mubr.msk.bf16.gmra.mrb[44].mxu0 %vm8956_vm11, %v9149_v61 }
 0x39e   : > { %5714 = vmatpush1.bf16.msra.mxu1 %v8092_v2 }
 0x39f   : > { %5715 = vmatprep.subr.bf16.mxu1 %v8097_v15 }
 0x3a2   : > { %5716 = vmatpush1.bf16.msra.mxu1 %v8095_v20  ;;  %v8098_v20 = vld [vmem:[#allocation12 + $0x200] ss:$8 sps:$4 sm:$0xff]  }
 0x3a3   : > { %5758 = vmatprep.subr.bf16.mxu1 %v8100_v59 }
 0x458   : > { %v3477_v61 = vpop.f32.mrb[32].mxu0 }
 0x459   : > { %v7208_v49 = vadd.f32 %v3477_v61, %v9476_v54  ;;  %v3479_v33 = vpop.f32.mrb[33].mxu0 }
 0x45a   : > { %v7209_v43 = vadd.f32 %v3479_v33, %v9479_v44  ;;  %v3481_v11 = vpop.f32.mrb[34].mxu0 }
 0x45b   : > { %v3518_v1 = vmax.f32 %v7208_v49, 0.0  ;;  %v7210_v38 = vadd.f32 %v3481_v11, %v9476_v54  ;;  %v3483_v27 = vpop.f32.mrb[35].mxu0  ;;  %v8101_v11 = vld [vmem:[#allocation12 + $0x210] ss:$8 sps:$4 sm:$0xff]  }
 0x45c   : > { %v3519_v36 = vmax.f32 %v7209_v43, 0.0  ;;  %v7211_v12 = vadd.f32 %v3483_v27, %v9479_v44 }
 0x45d   : > { %3558 = vst [vmem:[#allocation4 + $0x10] sm:$0xff] %v3518_v1  ;;  %v9485_v35 = vmax.f32 %v7210_v38, 0.0 }
 0x45e   : > { %3559 = vst [vmem:[#allocation4 + $0x18] sm:$0xff] %v3519_v36  ;;  %v9487_v57 = vmax.f32 %v7211_v12, 0.0 }
 0x45f   : > { %9947 = vst [vmem:[#allocation24_spill] sm:$0xff] %v9485_v35  ;;  %3562 = vst [vmem:[#allocation4 + $0x30] sm:$0xff] %v9485_v35  ;;  %v4050_v9 = vpack.c.bf16 %v9485_v35, %v3518_v1  ;;  %v8106_v1 = vld [vmem:[#allocation12 + $0x224] ss:$8 sps:$4 sm:$0xff]  }
 0x460   : > { %9948 = vst [vmem:[#allocation25_spill] sm:$0xff] %v9487_v57  ;;  %3563 = vst [vmem:[#allocation4 + $0x38] sm:$0xff] %v9487_v57  ;;  %v4051_v31 = vpack.c.bf16 %v9487_v57, %v3519_v36  ;;  %v3487_v2 = vpop.f32.mrb[36].mxu0  ;;  %v3670_v36 = vrot.slane %v9487_v57, 1  ;;  %v8113_v57 = vld [vmem:[#allocation12 + $0x250] ss:$8 sps:$4 sm:$0xff]  }
 0x461   : > { %v7212_v15 = vadd.f32 %v3487_v2, %v9476_v54  ;;  %v3489_v59 = vpop.f32.mrb[37].mxu0  ;;  %v3667_v2 = vrot.slane %v9485_v35, 1 }
 0x462   : > { %v7213_v48 = vadd.f32 %v3489_v59, %v9479_v44  ;;  %v3491_v61 = vpop.f32.mrb[38].mxu0  ;;  %5717 = vmatprep.mubr.bf16.mxu1 %v4051_v31 }
 0x463   : > { %v9495_v49 = vmax.f32 %v7212_v15, 0.0  ;;  %v7214_v33 = vadd.f32 %v3491_v61, %v9476_v54  ;;  %v3493_v43 = vpop.f32.mrb[39].mxu0  ;;  %5718 = vmatmul.mubr.bf16.vlgmr.msra.gmra.mrb[16].mxu1 %v4050_v9 }
 0x464   : > { %v9498_v38 = vmax.f32 %v7213_v48, 0.0  ;;  %v7215_v27 = vadd.f32 %v3493_v43, %v9479_v44  ;;  %5759 = vmatpush1.bf16.msra.mxu1 %v8098_v20  ;;  %v3590_v12 = vld [vmem:[#allocation4 + $0x10] sm:$0xfe] }
 0x465   : > { %9949 = vst [vmem:[#allocation26_spill] sm:$0xff] %v9495_v49  ;;  %3566 = vst [vmem:[#allocation4 + $0x50] sm:$0xff] %v9495_v49  ;;  %v9504_v31 = vmax.f32 %v7214_v33, 0.0  ;;  %5760 = vmatprep.subr.bf16.mxu1 %v8103_v28  ;;  %v3591_v15 = vld [vmem:[#allocation4 + $0x18] sm:$0xfe]  ;;  %v3666_v59 = vrot.slane %v3590_v12, 1 }
 0x466   : > { %9950 = vst [vmem:[#allocation27_spill] sm:$0xff] %v9498_v38  ;;  %v3676_v9 = vrot.slane %v9495_v49, 1  ;;  %3567 = vst [vmem:[#allocation4 + $0x58] sm:$0xff] %v9498_v38  ;;  %v9510_v20 = vmax.f32 %v7215_v27, 0.0  ;;  %v3669_v61 = vrot.slane %v3591_v15, 1  ;;  %v3678_v43 = vrot.slane %v9498_v38, 1 }
 0x467   : > { %9951 = vst [vmem:[#allocation28_spill] sm:$0xff] %v9504_v31  ;;  %3570 = vst [vmem:[#allocation4 + $0x70] sm:$0xff] %v9504_v31  ;;  %v4054_v28 = vpack.c.bf16 %v9504_v31, %v9495_v49  ;;  %v9519_v33 = vsel %vm1171_vm12, %v3666_v59, %v3667_v2  ;;  %v3684_v27 = vrot.slane %v9504_v31, 1  ;;  %v8115_v49 = vld [vmem:[#allocation12 + $0x254] ss:$8 sps:$4 sm:$0xff]  }
 0x468   : > { %9952 = vst [vmem:[#allocation29_spill] sm:$0xff] %v9510_v20  ;;  %v9522_v12 = vsel %vm1171_vm12, %v3667_v2, %v3676_v9  ;;  %3571 = vst [vmem:[#allocation4 + $0x78] sm:$0xff] %v9510_v20  ;;  %v4055_v15 = vpack.c.bf16 %v9510_v20, %v9498_v38  ;;  %5761 = vmatpush1.bf16.msra.mxu1 %v8101_v11  ;;  %v3497_v48 = vpop.f32.mrb[40].mxu0  ;;  %v9529_v51 = vsel %vm1171_vm12, %v3669_v61, %v3670_v36  ;;  %v3622_v31 = vld [vmem:[#allocation4 + $0x110] sm:$0x1] }
 0x469   : > { %v9532_v58 = vsel %vm1171_vm12, %v3670_v36, %v3678_v43  ;;  %v7216_v59 = vadd.f32 %v3497_v48, %v9476_v54  ;;  %v3499_v63 = vpop.f32.mrb[41].mxu0  ;;  %5762 = vmatprep.subr.bf16.mxu1 %v8106_v1  ;;  %v3686_v11 = vrot.slane %v9510_v20, 1  ;;  %v9541_v22 = vsel %vm1171_vm12, %v3676_v9, %v3684_v27  ;;  %v8107_v9 = vld [vmem:[#allocation12 + $0x230] ss:$8 sps:$4 sm:$0xff]  }
 0x46a   : > { %v7217_v61 = vadd.f32 %v3499_v63, %v9479_v44  ;;  %v3501_v36 = vpop.f32.mrb[42].mxu0  ;;  %5727 = vmatprep.mubr.bf16.mxu1 %v4055_v15  ;;  %v8112_v15 = vld [vmem:[#allocation12 + $0x244] ss:$8 sps:$4 sm:$0xff]  }
 0x46b   : > { %v9544_v14 = vmax.f32 %v7216_v59, 0.0  ;;  %v7218_v2 = vadd.f32 %v3501_v36, %v9476_v54  ;;  %v3503_v48 = vpop.f32.mrb[43].mxu0  ;;  %5728 = vmatmul.mubr.bf16.gmra.mrb[20].mxu1 %v4054_v28  ;;  %v9548_v1 = vsel %vm1171_vm12, %v3678_v43, %v3686_v11  ;;  %v8110_v28 = vld [vmem:[#allocation12 + $0x240] ss:$8 sps:$4 sm:$0xff]  }
 0x46c   : > { %v9550_v35 = vmax.f32 %v7217_v61, 0.0  ;;  %v7219_v45 = vadd.f32 %v3503_v48, %v9479_v44  ;;  %5763 = vmatpush1.bf16.msra.mxu1 %v8104_v21 }
 0x46d   : > { %9953 = vst [vmem:[#allocation30_spill] sm:$0xff] %v9544_v14  ;;  %3574 = vst [vmem:[#allocation4 + $0x90] sm:$0xff] %v9544_v14  ;;  %v9554_v63 = vmax.f32 %v7218_v2, 0.0  ;;  %5764 = vmatprep.subr.bf16.mxu1 %v8109_v60  ;;  %v3692_v59 = vrot.slane %v9544_v14, 1 }
 0x46e   : > { %9954 = vst [vmem:[#allocation31_spill] sm:$0xff] %v9550_v35  ;;  %3575 = vst [vmem:[#allocation4 + $0x98] sm:$0xff] %v9550_v35  ;;  %v9560_v43 = vmax.f32 %v7219_v45, 0.0  ;;  %v3694_v61 = vrot.slane %v9550_v35, 1 }
 0x46f   : > { %9955 = vst [vmem:[#allocation32_spill] sm:$0xff] %v9554_v63  ;;  %3578 = vst [vmem:[#allocation4 + $0xb0] sm:$0xff] %v9554_v63  ;;  %v4058_v60 = vpack.c.bf16 %v9554_v63, %v9544_v14  ;;  %v9569_v2 = vsel %vm1171_vm12, %v3684_v27, %v3692_v59  ;;  %v3700_v36 = vrot.slane %v9554_v63, 1 }
 0x470   : > { %3579 = vst [vmem:[#allocation4 + $0xb8] sm:$0xff] %v9560_v43  ;;  %v4059_v45 = vpack.c.bf16 %v9560_v43, %v9550_v35  ;;  %5765 = vmatpush1.bf16.msra.mxu1 %v8107_v9  ;;  %v3507_v48 = vpop.f32.mrb[44].mxu0  ;;  %v9576_v21 = vsel %vm1171_vm12, %v3686_v11, %v3694_v61  ;;  %v3702_v14 = vrot.slane %v9560_v43, 1 }
 0x471   : > { %v7220_v27 = vadd.f32 %v3507_v48, %v9476_v54  ;;  %v3509_v20 = vpop.f32.mrb[45].mxu0  ;;  %5766 = vmatprep.subr.bf16.mxu1 %v8112_v15  ;;  %v9585_v9 = vsel %vm1171_vm12, %v3692_v59, %v3700_v36 }
 0x472   : > { %v7221_v35 = vadd.f32 %v3509_v20, %v9479_v44  ;;  %v3511_v11 = vpop.f32.mrb[46].mxu0  ;;  %5737 = vmatprep.mubr.bf16.mxu1 %v4059_v45  ;;  %v9589_v38 = vsel %vm1171_vm12, %v3694_v61, %v3702_v14  ;;  %v8118_v61 = vld [vmem:[#allocation12 + $0x264] ss:$8 sps:$4 sm:$0xff]  }
 0x473   : > { %v9591_v53 = vmax.f32 %v7220_v27, 0.0  ;;  %v7222_v48 = vadd.f32 %v3511_v11, %v9476_v54  ;;  %v3513_v15 = vpop.f32.mrb[47].mxu0  ;;  %5738 = vmatmul.mubr.bf16.gmra.mrb[24].mxu1 %v4058_v60  ;;  %v3724_v27 = vrot.slane %v3622_v31, 1 }
 0x474   : > { %v9594_v0 = vmax.f32 %v7221_v35, 0.0  ;;  %v7223_v59 = vadd.f32 %v3513_v15, %v9479_v44  ;;  %5767 = vmatpush1.bf16.msra.mxu1 %v8110_v28  ;;  %v3726_v28 = vrot.slane %v3623_v30, 1  ;;  %v8116_v30 = vld [vmem:[#allocation12 + $0x260] ss:$8 sps:$4 sm:$0xff]  }
 0x475   : > { %3582 = vst [vmem:[#allocation4 + $0xd0] sm:$0xff] %v9591_v53  ;;  %v9598_v20 = vmax.f32 %v7222_v48, 0.0  ;;  %5768 = vmatprep.subr.bf16.mxu1 %v8115_v49  ;;  %v3708_v45 = vrot.slane %v9591_v53, 1 }
 0x476   : > { %3583 = vst [vmem:[#allocation4 + $0xd8] sm:$0xff] %v9594_v0  ;;  %v9604_v35 = vmax.f32 %v7223_v59, 0.0  ;;  %v3710_v44 = vrot.slane %v9594_v0, 1 }
 0x477   : > { %9956 = vst [vmem:[#allocation33_spill] sm:$0xff] %v9598_v20  ;;  %3586 = vst [vmem:[#allocation4 + $0xf0] sm:$0xff] %v9598_v20  ;;  %v4062_v49 = vpack.c.bf16 %v9598_v20, %v9591_v53  ;;  %v9613_v31 = vsel %vm1171_vm12, %v3700_v36, %v3708_v45  ;;  %v3716_v11 = vrot.slane %v9598_v20, 1  ;;  %v8121_v36 = vld [vmem:[#allocation12 + $0x274] ss:$8 sps:$4 sm:$0xff]  }
 0x478   : > { %3587 = vst [vmem:[#allocation4 + $0xf8] sm:$0xff] %v9604_v35  ;;  %v4063_v48 = vpack.c.bf16 %v9604_v35, %v9594_v0  ;;  %5769 = vmatpush1.bf16.msra.mxu1 %v8113_v57  ;;  %v9620_v15 = vsel %vm1171_vm12, %v3702_v14, %v3710_v44  ;;  %v3718_v54 = vrot.slane %v9604_v35, 1 }
 0x479   : > { %5770 = vmatprep.subr.bf16.mxu1 %v8118_v61  ;;  %v7097_v60 = vpack.c.bf16 %v9620_v15, %v9589_v38  ;;  %v9628_v20 = vsel %vm1171_vm12, %v3708_v45, %v3716_v11  ;;  %v9631_v63 = vsel %vm1171_vm12, %v3716_v11, %v3724_v27  ;;  %v9957_v45 = vpack.c.bf16 %v9337_v18, %v9331_v47  ;;  %v8119_v27 = vld [vmem:[#allocation12 + $0x270] ss:$8 sps:$4 sm:$0xff]   ;;  %v8136_v18 = vld [vmem:[#allocation12 + $0x2c4] ss:$8 sps:$4 sm:$0xff]   ;;  %v8217_v15 = vld [vmem:[#allocation12 + $0x474] ss:$8 sps:$4 sm:$0xff]  }
 0x47a   : > { %5747 = vmatprep.mubr.bf16.mxu1 %v4063_v48  ;;  %v9634_v14 = vsel %vm1171_vm12, %v3710_v44, %v3718_v54  ;;  %v9637_v57 = vsel %vm1171_vm12, %v3718_v54, %v3726_v28  ;;  %v7106_v61 = vpack.c.bf16 %v9631_v63, %v9628_v20  ;;  %v8124_v44 = vld [vmem:[#allocation12 + $0x284] ss:$8 sps:$4 sm:$0xff]   ;;  %v8122_v54 = vld [vmem:[#allocation12 + $0x280] ss:$8 sps:$4 sm:$0xff]   ;;  %v8127_v28 = vld [vmem:[#allocation12 + $0x294] ss:$8 sps:$4 sm:$0xff]  }
 0x47b   : > { %5748 = vmatmul.mubr.bf16.gmra.mrb[28].mxu1 %v4062_v49  ;;  %v7103_v59 = vpack.c.bf16 %v9637_v57, %v9634_v14  ;;  %v8125_v11 = vld [vmem:[#allocation12 + $0x290] ss:$8 sps:$4 sm:$0xff]   ;;  %v8130_v49 = vld [vmem:[#allocation12 + $0x2a4] ss:$8 sps:$4 sm:$0xff]   ;;  %v8128_v48 = vld [vmem:[#allocation12 + $0x2a0] ss:$8 sps:$4 sm:$0xff]  }
 0x47c   : > { %5771 = vmatpush1.bf16.msra.mxu1 %v8116_v30  ;;  %7062 = vmatprep.mubr.msk.bf16.mxu1 %vm8889_vm2, %v9957_v45  ;;  %v8133_v30 = vld [vmem:[#allocation12 + $0x2b4] ss:$8 sps:$4 sm:$0xff]   ;;  %v8131_v47 = vld [vmem:[#allocation12 + $0x2b0] ss:$8 sps:$4 sm:$0xff]   ;;  %v8134_v45 = vld [vmem:[#allocation12 + $0x2c0] ss:$8 sps:$4 sm:$0xff]  }
 0x47d   : > { %5772 = vmatprep.subr.bf16.mxu1 %v8121_v36  ;;  %v8139_v36 = vld [vmem:[#allocation12 + $0x2d4] ss:$8 sps:$4 sm:$0xff]   ;;  %v8209_v38 = vld [vmem:[#allocation12 + $0x450] ss:$8 sps:$4 sm:$0xff]   ;;  %v8218_v14 = vld [vmem:[#allocation12 + $0x480] ss:$8 sps:$4 sm:$0xff]  }
 0x47e   : > { %v8223_v57 = vld [vmem:[#allocation12 + $0x494] ss:$8 sps:$4 sm:$0xff]   ;;  %v8224_v63 = vld [vmem:[#allocation12 + $0x4a0] ss:$8 sps:$4 sm:$0xff]  }
 0x47f   : > { %v8229_v20 = vld [vmem:[#allocation12 + $0x4b4] ss:$8 sps:$4 sm:$0xff]  }
 0x480   : > { %5773 = vmatpush1.bf16.msra.mxu1 %v8119_v27  ;;  %v8137_v27 = vld [vmem:[#allocation12 + $0x2d0] ss:$8 sps:$4 sm:$0xff]  }
 0x481   : > { %5774 = vmatprep.subr.bf16.mxu1 %v8124_v44  ;;  %v8142_v44 = vld [vmem:[#allocation12 + $0x2e4] ss:$8 sps:$4 sm:$0xff]  }
 0x484   : > { %5775 = vmatpush1.bf16.msra.mxu1 %v8122_v54  ;;  %v8140_v54 = vld [vmem:[#allocation12 + $0x2e0] ss:$8 sps:$4 sm:$0xff]  }
 0x485   : > { %5776 = vmatprep.subr.bf16.mxu1 %v8127_v28  ;;  %v8145_v28 = vld [vmem:[#allocation12 + $0x2f4] ss:$8 sps:$4 sm:$0xff]  }
 0x488   : > { %5777 = vmatpush1.bf16.msra.mxu1 %v8125_v11  ;;  %v8143_v11 = vld [vmem:[#allocation12 + $0x2f0] ss:$8 sps:$4 sm:$0xff]  }
 0x489   : > { %5778 = vmatprep.subr.bf16.mxu1 %v8130_v49  ;;  %v8148_v49 = vld [vmem:[#allocation12 + $0x304] ss:$8 sps:$4 sm:$0xff]  }
 0x48c   : > { %5779 = vmatpush1.bf16.msra.mxu1 %v8128_v48  ;;  %v8146_v48 = vld [vmem:[#allocation12 + $0x300] ss:$8 sps:$4 sm:$0xff]  }
 0x48d   : > { %5780 = vmatprep.subr.bf16.mxu1 %v8133_v30  ;;  %v8151_v30 = vld [vmem:[#allocation12 + $0x314] ss:$8 sps:$4 sm:$0xff]  }
 0x490   : > { %5781 = vmatpush1.bf16.msra.mxu1 %v8131_v47  ;;  %v9958_v47 = vpack.c.bf16 %v9324_v16, %v9321_v39  ;;  %v9960_v39 = vpack.c.bf16 %v9375_v50, %v9353_v19  ;;  %v9961_v16 = vpack.c.bf16 %v9429_v5, %v9395_v62  ;;  %v9962_v19 = vpack.c.bf16 %v9422_v7, %v9401_v55  ;;  %v8161_v62 = vld [vmem:[#allocation12 + $0x350] ss:$8 sps:$4 sm:$0xff]   ;;  %v8166_v5 = vld [vmem:[#allocation12 + $0x364] ss:$8 sps:$4 sm:$0xff]  }
 0x491   : > { %5782 = vmatprep.subr.bf16.mxu1 %v8136_v18  ;;  %v9959_v18 = vpack.c.bf16 %v9383_v26, %v9350_v24  ;;  %v8155_v24 = vld [vmem:[#allocation12 + $0x330] ss:$8 sps:$4 sm:$0xff]   ;;  %v8160_v26 = vld [vmem:[#allocation12 + $0x344] ss:$8 sps:$4 sm:$0xff]   ;;  %v9963_v50 = vpack.c.bf16 %v9446_v41, %v9443_v10  ;;  %v9964_v55 = vpack.c.bf16 %v9440_v23, %v9437_v29  ;;  %v9965_v7 = vpack.c.bf16 %v9532_v58, %v9529_v51  ;;  %v8176_v23 = vld [vmem:[#allocation12 + $0x3a0] ss:$8 sps:$4 sm:$0xff]  }
 0x492   : > { %v8167_v41 = vld [vmem:[#allocation12 + $0x370] ss:$8 sps:$4 sm:$0xff]   ;;  %v8172_v10 = vld [vmem:[#allocation12 + $0x384] ss:$8 sps:$4 sm:$0xff]  }
 0x493   : > { %v8178_v29 = vld [vmem:[#allocation12 + $0x3a4] ss:$8 sps:$4 sm:$0xff]   ;;  %v8179_v58 = vld [vmem:[#allocation12 + $0x3b0] ss:$8 sps:$4 sm:$0xff]  }
 0x494   : > { %5783 = vmatpush1.bf16.msra.mxu1 %v8134_v45  ;;  %v8149_v45 = vld [vmem:[#allocation12 + $0x310] ss:$8 sps:$4 sm:$0xff]   ;;  %v8184_v51 = vld [vmem:[#allocation12 + $0x3c4] ss:$8 sps:$4 sm:$0xff]  }
 0x495   : > { %5784 = vmatprep.subr.bf16.mxu1 %v8139_v36  ;;  %v8154_v36 = vld [vmem:[#allocation12 + $0x324] ss:$8 sps:$4 sm:$0xff]  }
 0x498   : > { %5785 = vmatpush1.bf16.msra.mxu1 %v8137_v27  ;;  %v8152_v27 = vld [vmem:[#allocation12 + $0x320] ss:$8 sps:$4 sm:$0xff]  }
 0x499   : > { %5786 = vmatprep.subr.bf16.mxu1 %v8142_v44  ;;  %v8157_v44 = vld [vmem:[#allocation12 + $0x334] ss:$8 sps:$4 sm:$0xff]  }
 0x49c   : > { %5787 = vmatpush1.bf16.msra.mxu1 %v8140_v54  ;;  %v8158_v54 = vld [vmem:[#allocation12 + $0x340] ss:$8 sps:$4 sm:$0xff]  }
 0x49d   : > { %5788 = vmatprep.subr.bf16.mxu1 %v8145_v28  ;;  %v8163_v28 = vld [vmem:[#allocation12 + $0x354] ss:$8 sps:$4 sm:$0xff]  }
 0x4a0   : > { %5789 = vmatpush1.bf16.msra.mxu1 %v8143_v11  ;;  %v8164_v11 = vld [vmem:[#allocation12 + $0x360] ss:$8 sps:$4 sm:$0xff]  }
 0x4a1   : > { %5831 = vmatprep.subr.bf16.mxu1 %v8148_v49  ;;  %v8169_v49 = vld [vmem:[#allocation12 + $0x374] ss:$8 sps:$4 sm:$0xff]  }
 0x4a3   : > { %7065 = vmatmul.mubr.msk.bf16.vlgmr.msra.gmra.mrb[16].mxu1 %vm8889_vm2, %v9958_v47  ;;  %v8173_v47 = vld [vmem:[#allocation12 + $0x390] ss:$8 sps:$4 sm:$0xff]  }
 0x4a4   : > { %7068 = vmatprep.mubr.msk.bf16.mxu1 %vm8928_vm5, %v9959_v18  ;;  %5832 = vmatpush1.bf16.msra.mxu1 %v8146_v48  ;;  %v8170_v48 = vld [vmem:[#allocation12 + $0x380] ss:$8 sps:$4 sm:$0xff]   ;;  %v8181_v18 = vld [vmem:[#allocation12 + $0x3b4] ss:$8 sps:$4 sm:$0xff]  }
 0x4a5   : > { %5833 = vmatprep.subr.bf16.mxu1 %v8151_v30  ;;  %v8175_v30 = vld [vmem:[#allocation12 + $0x394] ss:$8 sps:$4 sm:$0xff]  }
 0x4a8   : > { %5834 = vmatpush1.bf16.msra.mxu1 %v8149_v45  ;;  %v8182_v45 = vld [vmem:[#allocation12 + $0x3c0] ss:$8 sps:$4 sm:$0xff]  }
 0x4a9   : > { %5835 = vmatprep.subr.bf16.mxu1 %v8154_v36  ;;  %v8187_v36 = vld [vmem:[#allocation12 + $0x3d4] ss:$8 sps:$4 sm:$0xff]  }
 0x4ab   : > { %7071 = vmatmul.mubr.msk.bf16.gmra.mrb[20].mxu1 %vm8928_vm5, %v9960_v39  ;;  %v8188_v39 = vld [vmem:[#allocation12 + $0x3e0] ss:$8 sps:$4 sm:$0xff]  }
 0x4ac   : > { %7074 = vmatprep.mubr.msk.bf16.mxu1 %vm8944_vm8, %v9961_v16  ;;  %5836 = vmatpush1.bf16.msra.mxu1 %v8152_v27  ;;  %v8185_v27 = vld [vmem:[#allocation12 + $0x3d0] ss:$8 sps:$4 sm:$0xff]   ;;  %v8193_v16 = vld [vmem:[#allocation12 + $0x3f4] ss:$8 sps:$4 sm:$0xff]  }
 0x4ad   : > { %5837 = vmatprep.subr.bf16.mxu1 %v8157_v44  ;;  %v8190_v44 = vld [vmem:[#allocation12 + $0x3e4] ss:$8 sps:$4 sm:$0xff]  }
 0x4b0   : > { %5838 = vmatpush1.bf16.msra.mxu1 %v8155_v24  ;;  %v8191_v24 = vld [vmem:[#allocation12 + $0x3f0] ss:$8 sps:$4 sm:$0xff]  }
 0x4b1   : > { %5839 = vmatprep.subr.bf16.mxu1 %v8160_v26  ;;  %v8196_v26 = vld [vmem:[#allocation12 + $0x404] ss:$8 sps:$4 sm:$0xff]  }
 0x4b3   : > { %7077 = vmatmul.mubr.msk.bf16.gmra.mrb[24].mxu1 %vm8944_vm8, %v9962_v19  ;;  %v9966_v19 = vpack.c.bf16 %v9522_v12, %v9519_v33  ;;  %v9968_v33 = vpack.c.bf16 %v9569_v2, %v9541_v22  ;;  %v8203_v12 = vld [vmem:[#allocation12 + $0x430] ss:$8 sps:$4 sm:$0xff]   ;;  %v9969_v22 = vpack.c.bf16 %v9613_v31, %v9585_v9  ;;  %v8214_v2 = vld [vmem:[#allocation12 + $0x464] ss:$8 sps:$4 sm:$0xff]   ;;  %v9970_v9 = vpack.c.bf16 %v9299_v46, %v9284_v6  ;;  %v8230_v46 = vld [vmem:[#allocation12 + $0x4c0] ss:$8 sps:$4 sm:$0xff]  }
 0x4b4   : > { %7080 = vmatprep.mubr.msk.bf16.mxu1 %vm8956_vm11, %v9963_v50  ;;  %5840 = vmatpush1.bf16.msra.mxu1 %v8158_v54  ;;  %v8194_v54 = vld [vmem:[#allocation12 + $0x400] ss:$8 sps:$4 sm:$0xff]   ;;  %v9967_v50 = vpack.c.bf16 %v9576_v21, %v9548_v1  ;;  %v8208_v1 = vld [vmem:[#allocation12 + $0x444] ss:$8 sps:$4 sm:$0xff]   ;;  %v8215_v31 = vld [vmem:[#allocation12 + $0x470] ss:$8 sps:$4 sm:$0xff]  }
 0x4b5   : > { %5841 = vmatprep.subr.bf16.mxu1 %v8163_v28  ;;  %v8199_v28 = vld [vmem:[#allocation12 + $0x414] ss:$8 sps:$4 sm:$0xff]   ;;  %v8206_v21 = vld [vmem:[#allocation12 + $0x440] ss:$8 sps:$4 sm:$0xff]   ;;  %v8232_v6 = vld [vmem:[#allocation12 + $0x4c4] ss:$8 sps:$4 sm:$0xff]  }
 0x4b8   : > { %5842 = vmatpush1.bf16.msra.mxu1 %v8161_v62  ;;  %v8197_v62 = vld [vmem:[#allocation12 + $0x410] ss:$8 sps:$4 sm:$0xff]  }
 0x4b9   : > { %5843 = vmatprep.subr.bf16.mxu1 %v8166_v5  ;;  %v8202_v5 = vld [vmem:[#allocation12 + $0x424] ss:$8 sps:$4 sm:$0xff]  }
 0x4bb   : > { %7083 = vmatmul.mubr.msk.bf16.gmra.mrb[28].mxu1 %vm8956_vm11, %v9964_v55  ;;  %v8211_v55 = vld [vmem:[#allocation12 + $0x454] ss:$8 sps:$4 sm:$0xff]  }
 0x4bc   : > { %5844 = vmatpush1.bf16.msra.mxu1 %v8164_v11  ;;  %7086 = vmatprep.mubr.msk.bf16.mxu1 %vm8889_vm2, %v9965_v7  ;;  %v8200_v11 = vld [vmem:[#allocation12 + $0x420] ss:$8 sps:$4 sm:$0xff]   ;;  %v8221_v7 = vld [vmem:[#allocation12 + $0x490] ss:$8 sps:$4 sm:$0xff]  }
 0x4bd   : > { %5845 = vmatprep.subr.bf16.mxu1 %v8169_v49  ;;  %v8205_v49 = vld [vmem:[#allocation12 + $0x434] ss:$8 sps:$4 sm:$0xff]  }
 0x4c0   : > { %5846 = vmatpush1.bf16.msra.mxu1 %v8167_v41  ;;  %v8226_v41 = vld [vmem:[#allocation12 + $0x4a4] ss:$8 sps:$4 sm:$0xff]  }
 0x4c1   : > { %5847 = vmatprep.subr.bf16.mxu1 %v8172_v10  ;;  %v8235_v10 = vld [vmem:[#allocation12 + $0x4d4] ss:$8 sps:$4 sm:$0xff]  }
 0x4c4   : > { %5848 = vmatpush1.bf16.msra.mxu1 %v8170_v48  ;;  %v8233_v48 = vld [vmem:[#allocation12 + $0x4d0] ss:$8 sps:$4 sm:$0xff]  }
 0x4c5   : > { %5849 = vmatprep.subr.bf16.mxu1 %v8175_v30  ;;  %v8238_v30 = vld [vmem:[#allocation12 + $0x4e4] ss:$8 sps:$4 sm:$0xff]  }
 0x4c8   : > { %5850 = vmatpush1.bf16.msra.mxu1 %v8173_v47  ;;  %v8236_v47 = vld [vmem:[#allocation12 + $0x4e0] ss:$8 sps:$4 sm:$0xff]  }
 0x4c9   : > { %5851 = vmatprep.subr.bf16.mxu1 %v8178_v29  ;;  %v8241_v29 = vld [vmem:[#allocation12 + $0x4f4] ss:$8 sps:$4 sm:$0xff]  }
 0x4cc   : > { %5852 = vmatpush1.bf16.msra.mxu1 %v8176_v23  ;;  %v8239_v23 = vld [vmem:[#allocation12 + $0x4f0] ss:$8 sps:$4 sm:$0xff]  }
 0x4cd   : > { %5853 = vmatprep.subr.bf16.mxu1 %v8181_v18  ;;  %v8244_v18 = vld [vmem:[#allocation12 + $0x504] ss:$8 sps:$4 sm:$0xff]  }
 0x4d0   : > { %5854 = vmatpush1.bf16.msra.mxu1 %v8179_v58  ;;  %v8242_v58 = vld [vmem:[#allocation12 + $0x500] ss:$8 sps:$4 sm:$0xff]  }
 0x4d1   : > { %5855 = vmatprep.subr.bf16.mxu1 %v8184_v51  ;;  %v8247_v51 = vld [vmem:[#allocation12 + $0x514] ss:$8 sps:$4 sm:$0xff]  }
 0x4d4   : > { %5856 = vmatpush1.bf16.msra.mxu1 %v8182_v45  ;;  %v9971_v45 = vpack.c.bf16 %v9296_v17, %v9282_v40  ;;  %v9974_v40 = vpack.c.bf16 %v9403_v13, %v9365_v42  ;;  %v8251_v17 = vld [vmem:[#allocation12 + $0x530] ss:$8 sps:$4 sm:$0xff]   ;;  %v8262_v13 = vld [vmem:[#allocation12 + $0x564] ss:$8 sps:$4 sm:$0xff]  }
 0x4d5   : > { %5857 = vmatprep.subr.bf16.mxu1 %v8187_v36  ;;  %v9972_v36 = vpack.c.bf16 %v9355_v56, %v9311_v25  ;;  %v8256_v25 = vld [vmem:[#allocation12 + $0x544] ss:$8 sps:$4 sm:$0xff]   ;;  %v8254_v56 = vld [vmem:[#allocation12 + $0x540] ss:$8 sps:$4 sm:$0xff]   ;;  %v8257_v42 = vld [vmem:[#allocation12 + $0x550] ss:$8 sps:$4 sm:$0xff]  }
 0x4d8   : > { %5858 = vmatpush1.bf16.msra.mxu1 %v8185_v27  ;;  %v8245_v27 = vld [vmem:[#allocation12 + $0x510] ss:$8 sps:$4 sm:$0xff]  }
 0x4d9   : > { %5859 = vmatprep.subr.bf16.mxu1 %v8190_v44  ;;  %v8250_v44 = vld [vmem:[#allocation12 + $0x524] ss:$8 sps:$4 sm:$0xff]  }
 0x4dc   : > { %5860 = vmatpush1.bf16.msra.mxu1 %v8188_v39  ;;  %v8248_v39 = vld [vmem:[#allocation12 + $0x520] ss:$8 sps:$4 sm:$0xff]  }
 0x4dd   : > { %5861 = vmatprep.subr.bf16.mxu1 %v8193_v16  ;;  %v8253_v16 = vld [vmem:[#allocation12 + $0x534] ss:$8 sps:$4 sm:$0xff]  }
 0x4e0   : > { %5862 = vmatpush1.bf16.msra.mxu1 %v8191_v24  ;;  %v9973_v24 = vpack.c.bf16 %v9346_v3, %v9305_v37  ;;  %v9976_v37 = vld [vmem:[#allocation21_spill] sm:$0xff] }
 0x4e1   : > { %5904 = vmatprep.subr.bf16.mxu1 %v8196_v26  ;;  %v8259_v26 = vld [vmem:[#allocation12 + $0x554] ss:$8 sps:$4 sm:$0xff]  }
 0x4e3   : > { %7089 = vmatmul.mubr.msk.bf16.vlgmr.msra.gmra.mrb[16].mxu1 %vm8889_vm2, %v9966_v19  ;;  %v9975_v19 = vld [vmem:[#allocation22_spill] sm:$0xff] }
 0x4e4   : > { %7092 = vmatprep.mubr.msk.bf16.mxu1 %vm8928_vm5, %v9967_v50  ;;  %5905 = vmatpush1.bf16.msra.mxu1 %v8194_v54  ;;  %v9738_v54 = vld [vmem:[#allocation2 + $0x40] sm:$0xff]  ;;  %v9977_v3 = vpack.c.bf16 %v9975_v19, %v9976_v37  ;;  %v3829_v19 = vld [vmem:[#allocation4 + $0x28] sm:$0xfe] }
 0x4e5   : > { %5906 = vmatprep.subr.bf16.mxu1 %v8199_v28  ;;  %v3825_v28 = vpack.c.bf16 %v9738_v54, %v9413_v4  ;;  %v8260_v50 = vld [vmem:[#allocation12 + $0x560] ss:$8 sps:$4 sm:$0xff]   ;;  %v9980_v4 = vld [vmem:[#allocation25_spill] sm:$0xff]  ;;  %v8310_v37 = vld [vmem:[#allocation12 + $0x664] ss:$8 sps:$4 sm:$0xff]  }
 0x4e8   : > { %5907 = vmatpush1.bf16.msra.mxu1 %v8197_v62  ;;  %v9978_v62 = vld [vmem:[#allocation23_spill] sm:$0xff] }
 0x4e9   : > { %5908 = vmatprep.subr.bf16.mxu1 %v8202_v5  ;;  %v3824_v5 = vpack.c.bf16 %v9738_v54, %v9978_v62 }
 0x4eb   : > { %7095 = vmatmul.mubr.msk.bf16.gmra.mrb[20].mxu1 %vm8928_vm5, %v9968_v33 }
 0x4ec   : > { %7098 = vmatprep.mubr.msk.bf16.mxu1 %vm8944_vm8, %v7097_v60  ;;  %5909 = vmatpush1.bf16.msra.mxu1 %v8200_v11  ;;  %v8212_v60 = vld [vmem:[#allocation12 + $0x460] ss:$8 sps:$4 sm:$0xff]   ;;  %v8265_v11 = vld [vmem:[#allocation12 + $0x574] ss:$8 sps:$4 sm:$0xff]  }
 0x4ed   : > { %5910 = vmatprep.subr.bf16.mxu1 %v8205_v49  ;;  %v9979_v49 = vld [vmem:[#allocation27_spill] sm:$0xff] }
 0x4ee   : > { %v9981_v33 = vpack.c.bf16 %v9979_v49, %v9980_v4  ;;  %v8311_v49 = vld [vmem:[#allocation12 + $0x670] ss:$8 sps:$4 sm:$0xff]   ;;  %v8316_v4 = vld [vmem:[#allocation12 + $0x684] ss:$8 sps:$4 sm:$0xff]  }
 0x4f0   : > { %5911 = vmatpush1.bf16.msra.mxu1 %v8203_v12  ;;  %v8263_v12 = vld [vmem:[#allocation12 + $0x570] ss:$8 sps:$4 sm:$0xff]  }
 0x4f1   : > { %5912 = vmatprep.subr.bf16.mxu1 %v8208_v1  ;;  %v8268_v1 = vld [vmem:[#allocation12 + $0x584] ss:$8 sps:$4 sm:$0xff]  }
 0x4f3   : > { %7101 = vmatmul.mubr.msk.bf16.gmra.mrb[24].mxu1 %vm8944_vm8, %v9969_v22  ;;  %v8269_v22 = vld [vmem:[#allocation12 + $0x590] ss:$8 sps:$4 sm:$0xff]  }
 0x4f4   : > { %7104 = vmatprep.mubr.msk.bf16.mxu1 %vm8956_vm11, %v7103_v59  ;;  %5913 = vmatpush1.bf16.msra.mxu1 %v8206_v21  ;;  %v8220_v59 = vld [vmem:[#allocation12 + $0x484] ss:$8 sps:$4 sm:$0xff]   ;;  %v8266_v21 = vld [vmem:[#allocation12 + $0x580] ss:$8 sps:$4 sm:$0xff]  }
 0x4f5   : > { %5914 = vmatprep.subr.bf16.mxu1 %v8211_v55  ;;  %v8271_v55 = vld [vmem:[#allocation12 + $0x594] ss:$8 sps:$4 sm:$0xff]  }
 0x4f8   : > { %5915 = vmatpush1.bf16.msra.mxu1 %v8209_v38  ;;  %v8274_v38 = vld [vmem:[#allocation12 + $0x5a4] ss:$8 sps:$4 sm:$0xff]  }
 0x4f9   : > { %5916 = vmatprep.subr.bf16.mxu1 %v8214_v2  ;;  %v8272_v2 = vld [vmem:[#allocation12 + $0x5a0] ss:$8 sps:$4 sm:$0xff]  }
 0x4fb   : > { %7107 = vmatmul.mubr.msk.bf16.gmra.mrb[28].mxu1 %vm8956_vm11, %v7106_v61  ;;  %v8227_v61 = vld [vmem:[#allocation12 + $0x4b0] ss:$8 sps:$4 sm:$0xff]  }
 0x4fc   : > { %5917 = vmatpush1.bf16.msra.mxu1 %v8212_v60  ;;  %5936 = vmatprep.mubr.bf16.mxu1 %v9970_v9  ;;  %v8277_v60 = vld [vmem:[#allocation12 + $0x5b4] ss:$8 sps:$4 sm:$0xff]   ;;  %v8280_v9 = vld [vmem:[#allocation12 + $0x5c4] ss:$8 sps:$4 sm:$0xff]  }
 0x4fd   : > { %5918 = vmatprep.subr.bf16.mxu1 %v8217_v15  ;;  %v8275_v15 = vld [vmem:[#allocation12 + $0x5b0] ss:$8 sps:$4 sm:$0xff]  }
 0x500   : > { %5919 = vmatpush1.bf16.msra.mxu1 %v8215_v31  ;;  %v8278_v31 = vld [vmem:[#allocation12 + $0x5c0] ss:$8 sps:$4 sm:$0xff]  }
 0x501   : > { %5920 = vmatprep.subr.bf16.mxu1 %v8220_v59  ;;  %v8283_v59 = vld [vmem:[#allocation12 + $0x5d4] ss:$8 sps:$4 sm:$0xff]  }
 0x504   : > { %5921 = vmatpush1.bf16.msra.mxu1 %v8218_v14  ;;  %v8281_v14 = vld [vmem:[#allocation12 + $0x5d0] ss:$8 sps:$4 sm:$0xff]  }
 0x505   : > { %5922 = vmatprep.subr.bf16.mxu1 %v8223_v57  ;;  %v8286_v57 = vld [vmem:[#allocation12 + $0x5e4] ss:$8 sps:$4 sm:$0xff]  }
 0x508   : > { %5923 = vmatpush1.bf16.msra.mxu1 %v8221_v7  ;;  %v8284_v7 = vld [vmem:[#allocation12 + $0x5e0] ss:$8 sps:$4 sm:$0xff]  }
 0x509   : > { %5924 = vmatprep.subr.bf16.mxu1 %v8226_v41  ;;  %v8289_v41 = vld [vmem:[#allocation12 + $0x5f4] ss:$8 sps:$4 sm:$0xff]  }
 0x50c   : > { %5925 = vmatpush1.bf16.msra.mxu1 %v8224_v63  ;;  %v8287_v63 = vld [vmem:[#allocation12 + $0x5f0] ss:$8 sps:$4 sm:$0xff]  }
 0x50d   : > { %5926 = vmatprep.subr.bf16.mxu1 %v8229_v20  ;;  %v8292_v20 = vld [vmem:[#allocation12 + $0x604] ss:$8 sps:$4 sm:$0xff]  }
 0x510   : > { %5927 = vmatpush1.bf16.msra.mxu1 %v8227_v61  ;;  %v8290_v61 = vld [vmem:[#allocation12 + $0x600] ss:$8 sps:$4 sm:$0xff]  }
 0x511   : > { %5928 = vmatprep.subr.bf16.mxu1 %v8232_v6  ;;  %v8295_v6 = vld [vmem:[#allocation12 + $0x614] ss:$8 sps:$4 sm:$0xff]  }
 0x514   : > { %5929 = vmatpush1.bf16.msra.mxu1 %v8230_v46  ;;  %v9982_v46 = vld [vmem:[#allocation26_spill] sm:$0xff] }
 0x515   : > { %5930 = vmatprep.subr.bf16.mxu1 %v8235_v10  ;;  %v9983_v10 = vld [vmem:[#allocation24_spill] sm:$0xff] }
 0x518   : > { %5931 = vmatpush1.bf16.msra.mxu1 %v8233_v48  ;;  %v9984_v48 = vpack.c.bf16 %v9982_v46, %v9983_v10  ;;  %v8335_v46 = vld [vmem:[#allocation12 + $0x6f0] ss:$8 sps:$4 sm:$0xff]  }
 0x519   : > { %5932 = vmatprep.subr.bf16.mxu1 %v8238_v30  ;;  %v9985_v30 = vld [vmem:[#allocation31_spill] sm:$0xff] }
 0x51c   : > { %5933 = vmatpush1.bf16.msra.mxu1 %v8236_v47  ;;  %v9986_v47 = vld [vmem:[#allocation29_spill] sm:$0xff] }
 0x51d   : > { %5934 = vmatprep.subr.bf16.mxu1 %v8241_v29  ;;  %v9987_v29 = vpack.c.bf16 %v9985_v30, %v9986_v47 }
 0x520   : > { %5935 = vmatpush1.bf16.msra.mxu1 %v8239_v23  ;;  %v8293_v23 = vld [vmem:[#allocation12 + $0x610] ss:$8 sps:$4 sm:$0xff]  }
 0x521   : > { %5977 = vmatprep.subr.bf16.mxu1 %v8244_v18  ;;  %v8298_v18 = vld [vmem:[#allocation12 + $0x624] ss:$8 sps:$4 sm:$0xff]  }
 0x523   : > { %5937 = vmatmul.mubr.bf16.vlgmr.msra.gmra.mrb[16].mxu1 %v9971_v45  ;;  %v9988_v45 = vld [vmem:[#allocation30_spill] sm:$0xff] }
 0x524   : > { %5946 = vmatprep.mubr.bf16.mxu1 %v9972_v36  ;;  %5978 = vmatpush1.bf16.msra.mxu1 %v8242_v58  ;;  %v8296_v58 = vld [vmem:[#allocation12 + $0x620] ss:$8 sps:$4 sm:$0xff]  }
 0x525   : > { %5979 = vmatprep.subr.bf16.mxu1 %v8247_v51  ;;  %v8301_v51 = vld [vmem:[#allocation12 + $0x634] ss:$8 sps:$4 sm:$0xff]   ;;  %v9989_v36 = vld [vmem:[#allocation28_spill] sm:$0xff] }
 0x528   : > { %5980 = vmatpush1.bf16.msra.mxu1 %v8245_v27  ;;  %v9990_v27 = vpack.c.bf16 %v9988_v45, %v9989_v36  ;;  %v3853_v45 = vld [vmem:[#allocation4 + $0xe8] sm:$0xff] }
 0x529   : > { %5981 = vmatprep.subr.bf16.mxu1 %v8250_v44  ;;  %v9991_v44 = vpack.c.bf16 %v9594_v0, %v9560_v43  ;;  %v8305_v43 = vld [vmem:[#allocation12 + $0x650] ss:$8 sps:$4 sm:$0xff]  }
 0x52b   : > { %5947 = vmatmul.mubr.bf16.gmra.mrb[20].mxu1 %v9973_v24  ;;  %v8302_v24 = vld [vmem:[#allocation12 + $0x640] ss:$8 sps:$4 sm:$0xff]  }
 0x52c   : > { %5956 = vmatprep.mubr.bf16.mxu1 %v9974_v40  ;;  %5982 = vmatpush1.bf16.msra.mxu1 %v8248_v39  ;;  %v8299_v39 = vld [vmem:[#allocation12 + $0x630] ss:$8 sps:$4 sm:$0xff]   ;;  %v9762_v40 = vld [vmem:[#allocation4 + $0x68] sm:$0xff] }
 0x52d   : > { %5983 = vmatprep.subr.bf16.mxu1 %v8253_v16  ;;  %v8304_v16 = vld [vmem:[#allocation12 + $0x644] ss:$8 sps:$4 sm:$0xff]   ;;  %v3914_v0 = vrot.slane %v9762_v40, 1 }
 0x530   : > { %5984 = vmatpush1.bf16.msra.mxu1 %v8251_v17  ;;  %v8307_v17 = vld [vmem:[#allocation12 + $0x654] ss:$8 sps:$4 sm:$0xff]  }
 0x531   : > { %5985 = vmatprep.subr.bf16.mxu1 %v8256_v25  ;;  %v3827_v25 = vpack.c.bf16 %v9738_v54, %v9604_v35  ;;  %v8308_v35 = vld [vmem:[#allocation12 + $0x660] ss:$8 sps:$4 sm:$0xff]  }
 0x533   : > { %5957 = vmatmul.mubr.bf16.gmra.mrb[24].mxu1 %v9977_v3 }
 0x534   : > { %5966 = vmatprep.mubr.bf16.mxu1 %v3825_v28  ;;  %5986 = vmatpush1.bf16.msra.mxu1 %v8254_v56  ;;  %v3833_v56 = vld [vmem:[#allocation4 + $0x48] sm:$0xff] }
 0x535   : > { %5987 = vmatprep.subr.bf16.mxu1 %v8259_v26  ;;  %v9992_v26 = vld [vmem:[#allocation32_spill] sm:$0xff]  ;;  %v3904_v3 = vrot.slane %v3833_v56, 1 }
 0x536   : > { %v9993_v28 = vpack.c.bf16 %v9591_v53, %v9992_v26  ;;  %v8341_v56 = vld [vmem:[#allocation12 + $0x710] ss:$8 sps:$4 sm:$0xff]  }
 0x538   : > { %5988 = vmatpush1.bf16.msra.mxu1 %v8257_v42  ;;  %v3903_v42 = vrot.slane %v3829_v19, 1  ;;  %v3852_v19 = vld [vmem:[#allocation4 + $0xe0] sm:$0xff] }
 0x539   : > { %5989 = vmatprep.subr.bf16.mxu1 %v8262_v13  ;;  %v3915_v13 = vsel %vm1171_vm12, %v3904_v3, %v3914_v0 }
 0x53a   : > { %v3905_v62 = vsel %vm1171_vm12, %v3903_v42, %v3904_v3  ;;  %v8344_v3 = vld [vmem:[#allocation12 + $0x720] ss:$8 sps:$4 sm:$0xff]  }
 0x53b   : > { %5967 = vmatmul.mubr.bf16.gmra.mrb[28].mxu1 %v3824_v5  ;;  %v8313_v5 = vld [vmem:[#allocation12 + $0x674] ss:$8 sps:$4 sm:$0xff]   ;;  %v3861_v42 = vld [vmem:[#allocation4 + $0x128] sm:$0x1] }
 0x53c   : > { %5990 = vmatpush1.bf16.msra.mxu1 %v8260_v50  ;;  %6009 = vmatprep.mubr.bf16.mxu1 %v9981_v33  ;;  %v9994_v50 = vld [vmem:[#allocation33_spill] sm:$0xff]  ;;  %v8314_v33 = vld [vmem:[#allocation12 + $0x680] ss:$8 sps:$4 sm:$0xff]  }
 0x53d   : > { %5991 = vmatprep.subr.bf16.mxu1 %v8265_v11  ;;  %v3826_v53 = vpack.c.bf16 %v9738_v54, %v9994_v50  ;;  %v7109_v11 = vpack.c.bf16 %v3915_v13, %v3905_v62  ;;  %v8349_v50 = vld [vmem:[#allocation12 + $0x734] ss:$8 sps:$4 sm:$0xff]  }
 0x540   : > { %5992 = vmatpush1.bf16.msra.mxu1 %v8263_v12  ;;  %v8319_v12 = vld [vmem:[#allocation12 + $0x694] ss:$8 sps:$4 sm:$0xff]  }
 0x541   : > { %5993 = vmatprep.subr.bf16.mxu1 %v8268_v1  ;;  %v8317_v1 = vld [vmem:[#allocation12 + $0x690] ss:$8 sps:$4 sm:$0xff]  }
 0x544   : > { %5994 = vmatpush1.bf16.msra.mxu1 %v8266_v21  ;;  %v8322_v21 = vld [vmem:[#allocation12 + $0x6a4] ss:$8 sps:$4 sm:$0xff]  }
 0x545   : > { %5995 = vmatprep.subr.bf16.mxu1 %v8271_v55  ;;  %v8320_v55 = vld [vmem:[#allocation12 + $0x6a0] ss:$8 sps:$4 sm:$0xff]  }
 0x548   : > { %5996 = vmatpush1.bf16.msra.mxu1 %v8269_v22  ;;  %v8325_v22 = vld [vmem:[#allocation12 + $0x6b4] ss:$8 sps:$4 sm:$0xff]  }
 0x549   : > { %5997 = vmatprep.subr.bf16.mxu1 %v8274_v38  ;;  %v8323_v38 = vld [vmem:[#allocation12 + $0x6b0] ss:$8 sps:$4 sm:$0xff]  }
 0x54c   : > { %5998 = vmatpush1.bf16.msra.mxu1 %v8272_v2  ;;  %v8328_v2 = vld [vmem:[#allocation12 + $0x6c4] ss:$8 sps:$4 sm:$0xff]  }
 0x54d   : > { %5999 = vmatprep.subr.bf16.mxu1 %v8277_v60  ;;  %v8326_v60 = vld [vmem:[#allocation12 + $0x6c0] ss:$8 sps:$4 sm:$0xff]  }
 0x550   : > { %6000 = vmatpush1.bf16.msra.mxu1 %v8275_v15  ;;  %v8331_v15 = vld [vmem:[#allocation12 + $0x6d4] ss:$8 sps:$4 sm:$0xff]  }
 0x551   : > { %6001 = vmatprep.subr.bf16.mxu1 %v8280_v9  ;;  %v8329_v9 = vld [vmem:[#allocation12 + $0x6d0] ss:$8 sps:$4 sm:$0xff]  }
 0x554   : > { %6002 = vmatpush1.bf16.msra.mxu1 %v8278_v31  ;;  %v8334_v31 = vld [vmem:[#allocation12 + $0x6e4] ss:$8 sps:$4 sm:$0xff]  }
 0x555   : > { %6003 = vmatprep.subr.bf16.mxu1 %v8283_v59  ;;  %v3836_v59 = vld [vmem:[#allocation4 + $0x60] sm:$0xff] }
 0x558   : > { %6004 = vmatpush1.bf16.msra.mxu1 %v8281_v14  ;;  %v8332_v14 = vld [vmem:[#allocation12 + $0x6e0] ss:$8 sps:$4 sm:$0xff]  }
 0x559   : > { %6005 = vmatprep.subr.bf16.mxu1 %v8286_v57  ;;  %v3845_v57 = vld [vmem:[#allocation4 + $0xa8] sm:$0xff] }
 0x55c   : > { %6006 = vmatpush1.bf16.msra.mxu1 %v8284_v7  ;;  %v8337_v7 = vld [vmem:[#allocation12 + $0x6f4] ss:$8 sps:$4 sm:$0xff]  }
 0x55d   : > { %6007 = vmatprep.subr.bf16.mxu1 %v8289_v41  ;;  %v3832_v41 = vld [vmem:[#allocation4 + $0x40] sm:$0xff] }
 0x55e   : > { %v3901_v10 = vrot.slane %v3832_v41, 1  ;;  %v8358_v41 = vld [vmem:[#allocation12 + $0x764] ss:$8 sps:$4 sm:$0xff]  }
 0x560   : > { %6008 = vmatpush1.bf16.msra.mxu1 %v8287_v63  ;;  %v3912_v63 = vrot.slane %v3836_v59, 1  ;;  %v3835_v59 = vld [vmem:[#allocation4 + $0x58] sm:$0xff] }
 0x561   : > { %6050 = vmatprep.subr.bf16.mxu1 %v8292_v20  ;;  %v3841_v20 = vld [vmem:[#allocation4 + $0x88] sm:$0xff] }
 0x562   : > { %v3922_v30 = vrot.slane %v3841_v20, 1 }
 0x563   : > { %6010 = vmatmul.mubr.bf16.vlgmr.msra.gmra.mrb[16].mxu1 %v9984_v48  ;;  %v8340_v48 = vld [vmem:[#allocation12 + $0x704] ss:$8 sps:$4 sm:$0xff]  }
 0x564   : > { %6019 = vmatprep.mubr.bf16.mxu1 %v9987_v29  ;;  %6051 = vmatpush1.bf16.msra.mxu1 %v8290_v61  ;;  %v3828_v61 = vld [vmem:[#allocation4 + $0x20] sm:$0xfe]  ;;  %v3913_v29 = vsel %vm1171_vm12, %v3901_v10, %v3912_v63 }
 0x565   : > { %6052 = vmatprep.subr.bf16.mxu1 %v8295_v6  ;;  %v3930_v6 = vrot.slane %v3845_v57, 1  ;;  %v3900_v47 = vrot.slane %v3828_v61, 1  ;;  %v8353_v57 = vld [vmem:[#allocation12 + $0x750] ss:$8 sps:$4 sm:$0xff]  }
 0x568   : > { %6053 = vmatpush1.bf16.msra.mxu1 %v8293_v23  ;;  %v3931_v23 = vsel %vm1171_vm12, %v3922_v30, %v3930_v6 }
 0x569   : > { %6054 = vmatprep.subr.bf16.mxu1 %v8298_v18  ;;  %v3844_v18 = vld [vmem:[#allocation4 + $0xa0] sm:$0xff] }
 0x56b   : > { %6020 = vmatmul.mubr.bf16.gmra.mrb[20].mxu1 %v9990_v27  ;;  %v3923_v27 = vsel %vm1171_vm12, %v3914_v0, %v3922_v30 }
 0x56c   : > { %6029 = vmatprep.mubr.bf16.mxu1 %v9991_v44  ;;  %6055 = vmatpush1.bf16.msra.mxu1 %v8296_v58  ;;  %v3902_v58 = vsel %vm1171_vm12, %v3900_v47, %v3901_v10  ;;  %v8343_v44 = vld [vmem:[#allocation12 + $0x714] ss:$8 sps:$4 sm:$0xff]   ;;  %v8356_v10 = vld [vmem:[#allocation12 + $0x760] ss:$8 sps:$4 sm:$0xff]  }
 0x56d   : > { %6056 = vmatprep.subr.bf16.mxu1 %v8301_v51  ;;  %v8338_v51 = vld [vmem:[#allocation12 + $0x700] ss:$8 sps:$4 sm:$0xff]   ;;  %v7112_v36 = vpack.c.bf16 %v3913_v29, %v3902_v58  ;;  %v8361_v47 = vld [vmem:[#allocation12 + $0x774] ss:$8 sps:$4 sm:$0xff]  }
 0x56e   : > { %v8362_v58 = vld [vmem:[#allocation12 + $0x780] ss:$8 sps:$4 sm:$0xff]  }
 0x570   : > { %6057 = vmatpush1.bf16.msra.mxu1 %v8299_v39  ;;  %v3840_v39 = vld [vmem:[#allocation4 + $0x80] sm:$0xff] }
 0x571   : > { %6058 = vmatprep.subr.bf16.mxu1 %v8304_v16  ;;  %v7115_v16 = vpack.c.bf16 %v3931_v23, %v3923_v27  ;;  %v3920_v26 = vrot.slane %v3840_v39, 1  ;;  %v8359_v23 = vld [vmem:[#allocation12 + $0x770] ss:$8 sps:$4 sm:$0xff]   ;;  %v8368_v27 = vld [vmem:[#allocation12 + $0x7a0] ss:$8 sps:$4 sm:$0xff]  }
 0x572   : > { %v8371_v39 = vld [vmem:[#allocation12 + $0x7b0] ss:$8 sps:$4 sm:$0xff]  }
 0x573   : > { %6030 = vmatmul.mubr.bf16.gmra.mrb[24].mxu1 %v9993_v28  ;;  %v8346_v28 = vld [vmem:[#allocation12 + $0x724] ss:$8 sps:$4 sm:$0xff]  }
 0x574   : > { %6039 = vmatprep.mubr.bf16.mxu1 %v3827_v25  ;;  %6059 = vmatpush1.bf16.msra.mxu1 %v8302_v24  ;;  %v3928_v24 = vrot.slane %v3844_v18, 1  ;;  %v3946_v25 = vrot.slane %v3853_v45, 1  ;;  %v8364_v18 = vld [vmem:[#allocation12 + $0x784] ss:$8 sps:$4 sm:$0xff]   ;;  %v8365_v45 = vld [vmem:[#allocation12 + $0x790] ss:$8 sps:$4 sm:$0xff]  }
 0x575   : > { %6060 = vmatprep.subr.bf16.mxu1 %v8307_v17  ;;  %v3849_v17 = vld [vmem:[#allocation4 + $0xc8] sm:$0xff] }
 0x576   : > { %v3938_v40 = vrot.slane %v3849_v17, 1  ;;  %v3929_v0 = vsel %vm1171_vm12, %v3920_v26, %v3928_v24  ;;  %v8379_v17 = vld [vmem:[#allocation12 + $0x7d4] ss:$8 sps:$4 sm:$0xff]  }
 0x578   : > { %6061 = vmatpush1.bf16.msra.mxu1 %v8305_v43  ;;  %v3947_v43 = vsel %vm1171_vm12, %v3938_v40, %v3946_v25 }
 0x579   : > { %6062 = vmatprep.subr.bf16.mxu1 %v8310_v37  ;;  %v3921_v37 = vsel %vm1171_vm12, %v3912_v63, %v3920_v26  ;;  %v3910_v63 = vrot.slane %v3835_v59, 1  ;;  %v3838_v26 = vld [vmem:[#allocation4 + $0x70] sm:$0xff] }
 0x57a   : > { %v7118_v13 = vpack.c.bf16 %v3929_v0, %v3921_v37  ;;  %v8385_v0 = vld [vmem:[#allocation12 + $0x7f4] ss:$8 sps:$4 sm:$0xff]  }
 0x57b   : > { %6040 = vmatmul.mubr.bf16.gmra.mrb[28].mxu1 %v3826_v53  ;;  %v3848_v53 = vld [vmem:[#allocation4 + $0xc0] sm:$0xff]  ;;  %v3843_v37 = vld [vmem:[#allocation4 + $0x98] sm:$0xff] }
 0x57c   : > { %6063 = vmatpush1.bf16.msra.mxu1 %v8308_v35  ;;  %7110 = vmatprep.mubr.msk.bf16.mxu1 %vm8889_vm2, %v7109_v11  ;;  %v3939_v35 = vsel %vm1171_vm12, %v3930_v6, %v3938_v40  ;;  %v9795_v11 = vrot.slane %v9738_v54, 1  ;;  %v3847_v40 = vld [vmem:[#allocation4 + $0xb8] sm:$0xff] }
 0x57d   : > { %6064 = vmatprep.subr.bf16.mxu1 %v8313_v5  ;;  %v7121_v62 = vpack.c.bf16 %v3947_v43, %v3939_v35  ;;  %v3944_v5 = vrot.slane %v3852_v19, 1  ;;  %v3834_v43 = vld [vmem:[#allocation4 + $0x50] sm:$0xff]  ;;  %v3916_v19 = vrot.slane %v3838_v26, 1 }
 0x57e   : > { %v3907_v35 = vrot.slane %v3834_v43, 1 }
 0x57f   : > { %v3953_v20 = vsel %vm1171_vm12, %v3944_v5, %v9795_v11 }
 0x580   : > { %6065 = vmatpush1.bf16.msra.mxu1 %v8311_v49  ;;  %v3962_v49 = vrot.slane %v3861_v42, 1  ;;  %v3934_v42 = vrot.slane %v3847_v40, 1 }
 0x581   : > { %6066 = vmatprep.subr.bf16.mxu1 %v8316_v4  ;;  %v8347_v4 = vld [vmem:[#allocation12 + $0x730] ss:$8 sps:$4 sm:$0xff]  }
 0x584   : > { %6067 = vmatpush1.bf16.msra.mxu1 %v8314_v33  ;;  %v3936_v33 = vrot.slane %v3848_v53, 1 }
 0x585   : > { %6068 = vmatprep.subr.bf16.mxu1 %v8319_v12  ;;  %v8352_v12 = vld [vmem:[#allocation12 + $0x744] ss:$8 sps:$4 sm:$0xff]  }
 0x586   : > { %v3937_v54 = vsel %vm1171_vm12, %v3928_v24, %v3936_v33  ;;  %v8374_v24 = vld [vmem:[#allocation12 + $0x7c0] ss:$8 sps:$4 sm:$0xff]  }
 0x588   : > { %6069 = vmatpush1.bf16.msra.mxu1 %v8317_v1  ;;  %v3945_v1 = vsel %vm1171_vm12, %v3936_v33, %v3944_v5  ;;  %v3855_v33 = vld [vmem:[#allocation4 + $0xf8] sm:$0xff] }
 0x589   : > { %6070 = vmatprep.subr.bf16.mxu1 %v8322_v21  ;;  %v3955_v21 = vsel %vm1171_vm12, %v3946_v25, %v9795_v11  ;;  %v8377_v25 = vld [vmem:[#allocation12 + $0x7d0] ss:$8 sps:$4 sm:$0xff]  }
 0x58c   : > { %6071 = vmatpush1.bf16.msra.mxu1 %v8320_v55  ;;  %v3963_v55 = vsel %vm1171_vm12, %v9795_v11, %v3962_v49  ;;  %v3846_v49 = vld [vmem:[#allocation4 + $0xb0] sm:$0xff] }
 0x58d   : > { %6072 = vmatprep.subr.bf16.mxu1 %v8325_v22  ;;  %v3860_v22 = vld [vmem:[#allocation4 + $0x120] sm:$0x1] }
 0x590   : > { %6073 = vmatpush1.bf16.msra.mxu1 %v8323_v38  ;;  %v8350_v38 = vld [vmem:[#allocation12 + $0x740] ss:$8 sps:$4 sm:$0xff]  }
 0x591   : > { %6074 = vmatprep.subr.bf16.mxu1 %v8328_v2  ;;  %v9805_v2 = vld [vmem:[#allocation4 + $0x78] sm:$0xff] }
 0x594   : > { %6075 = vmatpush1.bf16.msra.mxu1 %v8326_v60  ;;  %v7124_v60 = vpack.c.bf16 %v3945_v1, %v3937_v54  ;;  %v3851_v54 = vld [vmem:[#allocation4 + $0xd8] sm:$0xff] }
 0x595   : > { %6076 = vmatprep.subr.bf16.mxu1 %v8331_v15  ;;  %v8355_v15 = vld [vmem:[#allocation12 + $0x754] ss:$8 sps:$4 sm:$0xff]  }
 0x598   : > { %6077 = vmatpush1.bf16.msra.mxu1 %v8329_v9  ;;  %v7127_v9 = vpack.c.bf16 %v3963_v55, %v3955_v21  ;;  %v3842_v21 = vld [vmem:[#allocation4 + $0x90] sm:$0xff] }
 0x599   : > { %6078 = vmatprep.subr.bf16.mxu1 %v8334_v31  ;;  %v3960_v31 = vrot.slane %v3860_v22, 1  ;;  %v3932_v22 = vrot.slane %v3846_v49, 1 }
 0x59b   : > { %v3961_v61 = vsel %vm1171_vm12, %v9795_v11, %v3960_v31 }
 0x59c   : > { %6079 = vmatpush1.bf16.msra.mxu1 %v8332_v14  ;;  %v3918_v14 = vrot.slane %v9805_v2, 1  ;;  %v3854_v2 = vld [vmem:[#allocation4 + $0xf0] sm:$0xff] }
 0x59d   : > { %6080 = vmatprep.subr.bf16.mxu1 %v8337_v7  ;;  %v3831_v7 = vld [vmem:[#allocation4 + $0x38] sm:$0xfe] }
 0x59e   : > { %v3909_v6 = vrot.slane %v3831_v7, 1 }
 0x5a0   : > { %6081 = vmatpush1.bf16.msra.mxu1 %v8335_v46  ;;  %v3919_v46 = vsel %vm1171_vm12, %v3910_v63, %v3918_v14  ;;  %v3911_v30 = vsel %vm1171_vm12, %v3909_v6, %v3910_v63  ;;  %v3948_v63 = vrot.slane %v3854_v2, 1 }
 0x5a1   : > { %6123 = vmatprep.subr.bf16.mxu1 %v8340_v48  ;;  %v7130_v48 = vpack.c.bf16 %v3961_v61, %v3953_v20  ;;  %v7133_v29 = vpack.c.bf16 %v3919_v46, %v3911_v30 }
 0x5a3   : > { %7113 = vmatmul.mubr.msk.bf16.vlgmr.msra.gmra.mrb[16].mxu1 %vm8889_vm2, %v7112_v36  ;;  %v8370_v36 = vld [vmem:[#allocation12 + $0x7a4] ss:$8 sps:$4 sm:$0xff]  }
 0x5a4   : > { %7116 = vmatprep.mubr.msk.bf16.mxu1 %vm8928_vm5, %v7115_v16  ;;  %6124 = vmatpush1.bf16.msra.mxu1 %v8338_v51  ;;  %v8367_v51 = vld [vmem:[#allocation12 + $0x794] ss:$8 sps:$4 sm:$0xff]   ;;  %v8376_v16 = vld [vmem:[#allocation12 + $0x7c4] ss:$8 sps:$4 sm:$0xff]  }
 0x5a5   : > { %6125 = vmatprep.subr.bf16.mxu1 %v8343_v44  ;;  %v8373_v44 = vld [vmem:[#allocation12 + $0x7b4] ss:$8 sps:$4 sm:$0xff]  }
 0x5a8   : > { %6126 = vmatpush1.bf16.msra.mxu1 %v8341_v56  ;;  %v8382_v56 = vld [vmem:[#allocation12 + $0x7e4] ss:$8 sps:$4 sm:$0xff]  }
 0x5a9   : > { %6127 = vmatprep.subr.bf16.mxu1 %v8346_v28  ;;  %v8380_v28 = vld [vmem:[#allocation12 + $0x7e0] ss:$8 sps:$4 sm:$0xff]  }
 0x5ab   : > { %7119 = vmatmul.mubr.msk.bf16.gmra.mrb[20].mxu1 %vm8928_vm5, %v7118_v13  ;;  %v8383_v13 = vld [vmem:[#allocation12 + $0x7f0] ss:$8 sps:$4 sm:$0xff]  }
 0x5ac   : > { %7122 = vmatprep.mubr.msk.bf16.mxu1 %vm8944_vm8, %v7121_v62  ;;  %6128 = vmatpush1.bf16.msra.mxu1 %v8344_v3  ;;  %v3830_v3 = vld [vmem:[#allocation4 + $0x30] sm:$0xfe]  ;;  %v3917_v62 = vsel %vm1171_vm12, %v3907_v35, %v3916_v19 }
 0x5ad   : > { %6129 = vmatprep.subr.bf16.mxu1 %v8349_v50  ;;  %v3926_v50 = vrot.slane %v3843_v37, 1  ;;  %v3906_v53 = vrot.slane %v3830_v3, 1 }
 0x5af   : > { %v3935_v5 = vsel %vm1171_vm12, %v3926_v50, %v3934_v42  ;;  %v3927_v1 = vsel %vm1171_vm12, %v3918_v14, %v3926_v50  ;;  %v3863_v14 = vld [vmem:[#allocation4 + $0x138] sm:$0x1] }
 0x5b0   : > { %6130 = vmatpush1.bf16.msra.mxu1 %v8347_v4  ;;  %v3908_v4 = vsel %vm1171_vm12, %v3906_v53, %v3907_v35  ;;  %v7139_v55 = vpack.c.bf16 %v3935_v5, %v3927_v1  ;;  %v3966_v20 = vrot.slane %v3863_v14, 1 }
 0x5b1   : > { %6131 = vmatprep.subr.bf16.mxu1 %v8352_v12  ;;  %v7136_v12 = vpack.c.bf16 %v3917_v62, %v3908_v4 }
 0x5b3   : > { %7125 = vmatmul.mubr.msk.bf16.gmra.mrb[24].mxu1 %vm8944_vm8, %v7124_v60  ;;  %v3924_v60 = vrot.slane %v3842_v21, 1 }
 0x5b4   : > { %7128 = vmatprep.mubr.msk.bf16.mxu1 %vm8956_vm11, %v7127_v9  ;;  %6132 = vmatpush1.bf16.msra.mxu1 %v8350_v38  ;;  %v3950_v38 = vrot.slane %v3855_v33, 1 }
 0x5b5   : > { %6133 = vmatprep.subr.bf16.mxu1 %v8355_v15  ;;  %v3942_v15 = vrot.slane %v3851_v54, 1  ;;  %v3933_v9 = vsel %vm1171_vm12, %v3924_v60, %v3932_v22  ;;  %v3925_v59 = vsel %vm1171_vm12, %v3916_v19, %v3924_v60 }
 0x5b6   : > { %v3959_v46 = vsel %vm1171_vm12, %v3950_v38, %v9795_v11 }
 0x5b7   : > { %v3951_v31 = vsel %vm1171_vm12, %v3942_v15, %v3950_v38  ;;  %v3943_v7 = vsel %vm1171_vm12, %v3934_v42, %v3942_v15 }
 0x5b8   : > { %6134 = vmatpush1.bf16.msra.mxu1 %v8353_v57  ;;  %v7142_v57 = vpack.c.bf16 %v3933_v9, %v3925_v59  ;;  %v7145_v32 = vpack.c.bf16 %v3951_v31, %v3943_v7 }
 0x5b9   : > { %6135 = vmatprep.subr.bf16.mxu1 %v8358_v41  ;;  %v3850_v41 = vld [vmem:[#allocation4 + $0xd0] sm:$0xff] }
 0x5ba   : > { %v3940_v61 = vrot.slane %v3850_v41, 1 }
 0x5bb   : > { %7131 = vmatmul.mubr.msk.bf16.gmra.mrb[28].mxu1 %vm8956_vm11, %v7130_v48  ;;  %v3862_v48 = vld [vmem:[#allocation4 + $0x130] sm:$0x1] }
 0x5bc   : > { %6136 = vmatpush1.bf16.msra.mxu1 %v8356_v10  ;;  %7134 = vmatprep.mubr.msk.bf16.mxu1 %vm8889_vm2, %v7133_v29  ;;  %v3949_v6 = vsel %vm1171_vm12, %v3940_v61, %v3948_v63  ;;  %v3967_v10 = vsel %vm1171_vm12, %v9795_v11, %v3966_v20  ;;  %v3941_v30 = vsel %vm1171_vm12, %v3932_v22, %v3940_v61  ;;  %v3964_v8 = vrot.slane %v3862_v48, 1 }
 0x5bd   : > { %6137 = vmatprep.subr.bf16.mxu1 %v8361_v47  ;;  %v7148_v47 = vpack.c.bf16 %v3949_v6, %v3941_v30  ;;  %v7151_v29 = vpack.c.bf16 %v3967_v10, %v3959_v46 }
 0x5c0   : > { %6138 = vmatpush1.bf16.msra.mxu1 %v8359_v23  ;;  %v3957_v23 = vsel %vm1171_vm12, %v3948_v63, %v9795_v11 }
 0x5c1   : > { %6139 = vmatprep.subr.bf16.mxu1 %v8364_v18  ;;  %v3965_v18 = vsel %vm1171_vm12, %v9795_v11, %v3964_v8 }
 0x5c4   : > { %6140 = vmatpush1.bf16.msra.mxu1 %v8362_v58  ;;  %v7154_v58 = vpack.c.bf16 %v3965_v18, %v3957_v23 }
 0x5c5   : > { %6141 = vmatprep.subr.bf16.mxu1 %v8367_v51  ;;  %v4320_v51 = vld [vmem:[#allocation13] sm:$0x3] }
 0x5c8   : > { %6142 = vmatpush1.bf16.msra.mxu1 %v8365_v45  ;;  %v9995_v45 = vld [vmem:[#allocation19_spill] sm:$0xff] }
 0x5c9   : > { %6143 = vmatprep.subr.bf16.mxu1 %v8370_v36  ;;  %v4325_v36 = vrot.slane %v4320_v51, %v9995_v45 }
 0x5cc   : > { %6144 = vmatpush1.bf16.msra.mxu1 %v8368_v27  ;;  %v9996_v27 = vld [vmem:[#allocation20_spill] sm:$0xff] }
 0x5cd   : > { %6145 = vmatprep.subr.bf16.mxu1 %v8373_v44  ;;  %v9860_v34 = vrot.slane %v4320_v51, %v9996_v27 }
 0x5d0   : > { %6146 = vmatpush1.bf16.msra.mxu1 %v8371_v39 }
 0x5d1   : > { %6147 = vmatprep.subr.bf16.mxu1 %v8376_v16 }
 0x5d4   : > { %6148 = vmatpush1.bf16.msra.mxu1 %v8374_v24 }
 0x5d5   : > { %6149 = vmatprep.subr.bf16.mxu1 %v8379_v17 }
 0x5d8   : > { %6150 = vmatpush1.bf16.msra.mxu1 %v8377_v25 }
 0x5d9   : > { %6151 = vmatprep.subr.bf16.mxu1 %v8382_v56 }
 0x5dc   : > { %6152 = vmatpush1.bf16.msra.mxu1 %v8380_v28 }
 0x5dd   : > { %6153 = vmatprep.subr.bf16.mxu1 %v8385_v0 }
 0x5e0   : > { %6154 = vmatpush1.bf16.msra.mxu1 %v8383_v13 }
 0x5e3   : > { %7137 = vmatmul.mubr.msk.bf16.vlgmr.msra.gmra.mrb[16].mxu1 %vm8889_vm2, %v7136_v12 }
 0x5e4   : > { %7140 = vmatprep.mubr.msk.bf16.mxu1 %vm8928_vm5, %v7139_v55 }
 0x5eb   : > { %7143 = vmatmul.mubr.msk.bf16.gmra.mrb[20].mxu1 %vm8928_vm5, %v7142_v57 }
 0x5ec   : > { %7146 = vmatprep.mubr.msk.bf16.mxu1 %vm8944_vm8, %v7145_v32 }
 0x5f3   : > { %7149 = vmatmul.mubr.msk.bf16.gmra.mrb[24].mxu1 %vm8944_vm8, %v7148_v47 }
 0x5f4   : > { %7152 = vmatprep.mubr.msk.bf16.mxu1 %vm8956_vm11, %v7151_v29 }
 0x5fb   : > { %7155 = vmatmul.mubr.msk.bf16.gmra.mrb[28].mxu1 %vm8956_vm11, %v7154_v58 }
 0x6b6   : > { %v6157_v44 = vpop.f32.mrb[16].mxu1 }
 0x6b7   : > { %v7224_v39 = vadd.f32 %v6157_v44, %v4325_v36  ;;  %v6159_v16 = vpop.f32.mrb[17].mxu1 }
 0x6b8   : > { %v7225_v24 = vadd.f32 %v6159_v16, %v9860_v34  ;;  %v6161_v17 = vpop.f32.mrb[18].mxu1 }
 0x6b9   : > { %8386 = vtanh.f32 %v7224_v39  ;;  %v7226_v25 = vadd.f32 %v6161_v17, %v4325_v36  ;;  %v6163_v11 = vpop.f32.mrb[19].mxu1 }
 0x6ba   : > { %8388 = vtanh.f32 %v7225_v24  ;;  %v7227_v52 = vadd.f32 %v6163_v11, %v9860_v34 }
 0x6bb   : > { %8390 = vtanh.f32 %v7226_v25 }
 0x6bc   : > { %8392 = vtanh.f32 %v7227_v52 }
 0x6be   : > { %v6167_v56 = vpop.f32.mrb[20].mxu1 }
 0x6bf   : > { %v7228_v26 = vadd.f32 %v6167_v56, %v4325_v36  ;;  %v6169_v28 = vpop.f32.mrb[21].mxu1 }
 0x6c0   : > { %v7229_v40 = vadd.f32 %v6169_v28, %v9860_v34  ;;  %v6171_v0 = vpop.f32.mrb[22].mxu1 }
 0x6c1   : > { %8394 = vtanh.f32 %v7228_v26  ;;  %v7230_v43 = vadd.f32 %v6171_v0, %v4325_v36  ;;  %v6173_v19 = vpop.f32.mrb[23].mxu1 }
 0x6c2   : > { %8396 = vtanh.f32 %v7229_v40  ;;  %v7231_v37 = vadd.f32 %v6173_v19, %v9860_v34 }
 0x6c3   : > { %v8387_v3 = vpop.eup %8386  ;;  %8398 = vtanh.f32 %v7230_v43 }
 0x6c4   : > { %v8389_v42 = vpop.eup %8388  ;;  %6212 = vst [vmem:[%s9869_s22] sm:$0xff] %v8387_v3  ;;  %8400 = vtanh.f32 %v7231_v37 }
 0x6c5   : > { %v8391_v13 = vpop.eup %8390  ;;  %6213 = vst [vmem:[%s9869_s22 + $0x8] sm:$0xff] %v8389_v42 }
 0x6c6   : > { %v8393_v35 = vpop.eup %8392  ;;  %6214 = vst [vmem:[%s9869_s22 + $0x10] sm:$0xff] %v8391_v13  ;;  %v6177_v50 = vpop.f32.mrb[24].mxu1 }
 0x6c7   : > { %6215 = vst [vmem:[%s9869_s22 + $0x18] sm:$0xff] %v8393_v35  ;;  %v7232_v53 = vadd.f32 %v6177_v50, %v4325_v36  ;;  %v6179_v62 = vpop.f32.mrb[25].mxu1 }
 0x6c8   : > { %v7233_v5 = vadd.f32 %v6179_v62, %v9860_v34  ;;  %v6181_v49 = vpop.f32.mrb[26].mxu1 }
 0x6c9   : > { %8402 = vtanh.f32 %v7232_v53  ;;  %v7234_v4 = vadd.f32 %v6181_v49, %v4325_v36  ;;  %v6183_v33 = vpop.f32.mrb[27].mxu1 }
 0x6ca   : > { %8404 = vtanh.f32 %v7233_v5  ;;  %v7235_v12 = vadd.f32 %v6183_v33, %v9860_v34 }
 0x6cb   : > { %v8395_v1 = vpop.eup %8394  ;;  %8406 = vtanh.f32 %v7234_v4 }
 0x6cc   : > { %v8397_v21 = vpop.eup %8396  ;;  %6216 = vst [vmem:[%s9869_s22 + $0x20] sm:$0xff] %v8395_v1  ;;  %8408 = vtanh.f32 %v7235_v12 }
 0x6cd   : > { %v8399_v55 = vpop.eup %8398  ;;  %6217 = vst [vmem:[%s9869_s22 + $0x28] sm:$0xff] %v8397_v21 }
 0x6ce   : > { %v8401_v22 = vpop.eup %8400  ;;  %6218 = vst [vmem:[%s9869_s22 + $0x30] sm:$0xff] %v8399_v55  ;;  %v6187_v54 = vpop.f32.mrb[28].mxu1 }
 0x6cf   : > { %6219 = vst [vmem:[%s9869_s22 + $0x38] sm:$0xff] %v8401_v22  ;;  %v7236_v38 = vadd.f32 %v6187_v54, %v4325_v36  ;;  %v6189_v60 = vpop.f32.mrb[29].mxu1 }
 0x6d0   : > { %v7237_v15 = vadd.f32 %v6189_v60, %v9860_v34  ;;  %v6191_v9 = vpop.f32.mrb[30].mxu1 }
 0x6d1   : > { %8410 = vtanh.f32 %v7236_v38  ;;  %v7238_v31 = vadd.f32 %v6191_v9, %v4325_v36  ;;  %v6193_v2 = vpop.f32.mrb[31].mxu1 }
 0x6d2   : > { %8412 = vtanh.f32 %v7237_v15  ;;  %v7239_v59 = vadd.f32 %v6193_v2, %v9860_v34 }
 0x6d3   : > { %v8403_v14 = vpop.eup %8402  ;;  %8414 = vtanh.f32 %v7238_v31 }
 0x6d4   : > { %v8405_v57 = vpop.eup %8404  ;;  %6220 = vst [vmem:[%s9869_s22 + $0x40] sm:$0xff] %v8403_v14  ;;  %8416 = vtanh.f32 %v7239_v59 }
 0x6d5   : > { %v8407_v7 = vpop.eup %8406  ;;  %6221 = vst [vmem:[%s9869_s22 + $0x48] sm:$0xff] %v8405_v57 }
 0x6d6   : > { %v8409_v41 = vpop.eup %8408  ;;  %6222 = vst [vmem:[%s9869_s22 + $0x50] sm:$0xff] %v8407_v7 }
 0x6d7   : > { %6223 = vst [vmem:[%s9869_s22 + $0x58] sm:$0xff] %v8409_v41 }
 0x6db   : > { %v8411_v32 = vpop.eup %8410 }
 0x6dc   : > { %v8413_v63 = vpop.eup %8412  ;;  %6224 = vst [vmem:[%s9869_s22 + $0x60] sm:$0xff] %v8411_v32 }
 0x6dd   : > { %v8415_v20 = vpop.eup %8414  ;;  %6225 = vst [vmem:[%s9869_s22 + $0x68] sm:$0xff] %v8413_v63 }
 0x6de   : > { %v8417_v61 = vpop.eup %8416  ;;  %6226 = vst [vmem:[%s9869_s22 + $0x70] sm:$0xff] %v8415_v20 }
 0x6df   : > { %6227 = vst [vmem:[%s9869_s22 + $0x78] sm:$0xff] %v8417_v61 }
 0x6e0 PF: > { %s21_s24 = sadd.s32 1, %s8611_s24  }
 0x6e1   : > { %p18_p9 = scmp.ge.s32.totalorder %s21_s24, 4  }
 0x6e3   :  { %20 = sbr.rel (!%p18_p9) target bundleno = 4 (0x4), region = 103 }
 0x6ea   :  { %6249 = vsyncpa [#allocation6], 1 }
 0x6eb   :  { %6251 = vsyncpa [#allocation6 + $0x1], 1 }
 0x6ec   :  { %6252 = vsyncpa [#allocation8], 1 }
 0x6ed   :  { %6253 = vsyncpa [#allocation11], 1 }
 0x6ee   :  { %6254 = vsyncpa [#allocation14], 1 }

</bundles_post_ra>
